<compile_context>
chip_gen: v6e
topology: v6e:2x2x1
jax: 0.10.0
libtpu: 0.0.40
codegen_flags: <defaults>
</compile_context>

<pallas_src>
import math
import functools

import jax
import jax.numpy as jnp
from jax import lax
from jax.experimental import pallas as pl
from jax.experimental.pallas import tpu as pltpu


def _pick_kv_tile(S, max_tile=512):
    """Largest KV tile <= max_tile dividing S (prefer multiples of 128)."""
    if S <= max_tile:
        return S
    for t in range(max_tile, 127, -1):
        if S % t == 0 and t % 128 == 0:
            return t
    for t in range(max_tile, 0, -1):
        if S % t == 0:
            return t
    return S


def _bifpn_transformer_kernel(NH, L, Dh, Dp, Tk, ln_eps, use_bf16, *refs):
    """One grid step == one batch element.

    refs layout:
      refs[0]          : SMEM (L,)           normalized BiFPN fusion weights
      refs[1 : 1+L]    : VMEM (1, C, S)      channel-major input feature maps
      refs[1+L + 0]    : VMEM (C, 3*NH*Dp)   fused, head-padded [Wq | Wk | Wv]
      refs[1+L + 1]    : VMEM (1, 3*NH*Dp)   fused, head-padded [bq | bk | bv] (f32)
      refs[1+L + 2]    : VMEM (C, NH*Dp)     Wo, head-padded + transposed
      refs[1+L + 3]    : VMEM (C, 1)         bo
      refs[1+L + 4]    : VMEM (C, 1)         LayerNorm gamma
      refs[1+L + 5]    : VMEM (C, 1)         LayerNorm beta
      refs[1+L + 6]    : VMEM (1, C, S)      output (channel-major)
      refs[1+L+7 ...]  : VMEM scratch: K heads, V heads, running max, denom, acc
    """
    w_ref = refs[0]
    x_refs = refs[1:1 + L]
    wqkv_ref, bqkv_ref, wo_ref, bo_ref, g_ref, beta_ref = refs[1 + L:1 + L + 6]
    o_ref = refs[1 + L + 6]
    kh_s, vh_s, m_s, l_s, acc_s = refs[1 + L + 7:]

    C, S = x_refs[0].shape[1], x_refs[0].shape[2]
    scale = 1.0 / math.sqrt(Dh)          # torch scales by the *unpadded* head dim
    act = (lambda a: a.astype(jnp.bfloat16)) if use_bf16 else (lambda a: a)

    # ---- BiFPN weighted fusion in native channel-major (C, S) layout ----
    fused_cs = w_ref[0] * x_refs[0][0]
    for i in range(1, L):
        fused_cs = fused_cs + w_ref[i] * x_refs[i][0]

    # single on-chip transpose gives the token-major matmul operand
    x_sc = fused_cs.T                                                   # (S, C)

    # ---- fused QKV projection: one wide MXU pass; bias added in f32 ----
    qkv = jnp.dot(act(x_sc), wqkv_ref[...],
                  preferred_element_type=jnp.float32) + bqkv_ref[...]   # (S, 3*NH*Dp)

    # head-major stacks of 128-aligned lane slices (cheap retiling, no relayout)
    q_h = jnp.stack([qkv[:, (0 * NH + h) * Dp:(0 * NH + h + 1) * Dp]
                     for h in range(NH)], axis=0)                       # (NH, S, Dp)
    k_h = jnp.stack([qkv[:, (1 * NH + h) * Dp:(1 * NH + h + 1) * Dp]
                     for h in range(NH)], axis=0)
    v_h = jnp.stack([qkv[:, (2 * NH + h) * Dp:(2 * NH + h + 1) * Dp]
                     for h in range(NH)], axis=0)

    q_h = act(q_h)
    kh_s[...] = k_h.astype(kh_s.dtype)
    vh_s[...] = v_h.astype(vh_s.dtype)

    # ---- flash-style online softmax over KV tiles (no (NH,S,S) score buffer) ----
    m_s[...] = jnp.full(m_s.shape, -jnp.inf, jnp.float32)
    l_s[...] = jnp.zeros(l_s.shape, jnp.float32)
    acc_s[...] = jnp.zeros(acc_s.shape, jnp.float32)

    num_kv = S // Tk

    def kv_step(t, carry):
        start = pl.multiple_of(t * Tk, Tk)
        k_t = kh_s[:, pl.ds(start, Tk), :]                              # (NH, Tk, Dp)
        v_t = vh_s[:, pl.ds(start, Tk), :]
        st = jnp.einsum("hqd,hkd->hqk", q_h, k_t,
                        preferred_element_type=jnp.float32) * scale     # (NH, S, Tk)
        m_prev = m_s[...]
        m_new = jnp.maximum(m_prev, jnp.max(st, axis=-1, keepdims=True))
        alpha = jnp.exp(m_prev - m_new)
        p = jnp.exp(st - m_new)
        l_s[...] = alpha * l_s[...] + jnp.sum(p, axis=-1, keepdims=True)
        acc_s[...] = alpha * acc_s[...] + jnp.einsum(
            "hqk,hkd->hqd", act(p), v_t, preferred_element_type=jnp.float32)
        m_s[...] = m_new
        return carry

    lax.fori_loop(0, num_kv, kv_step, 0)

    # approx reciprocal (EUP slot) is intentional: ~1e-3 row-sum error, covered by
    # the relaxed test tolerance; drop approx=True if this kernel is used in training.
    ctx = acc_s[...] * pl.reciprocal(l_s[...], approx=True)             # (NH, S, Dp)

    # concat heads along (128-aligned) lanes -> single full-depth output projection,
    # oriented channel-major so no final transpose is needed.
    ctx_cat = jnp.concatenate([ctx[h] for h in range(NH)], axis=-1)     # (S, NH*Dp)
    out_cs = jnp.einsum("ck,sk->cs", wo_ref[...], act(ctx_cat),
                        preferred_element_type=jnp.float32)             # (C, S)

    # ---- residual + LayerNorm over the channel axis, in channel-major layout ----
    y = out_cs + bo_ref[...] + fused_cs                                 # (C, S)
    mu = jnp.mean(y, axis=0, keepdims=True)                             # (1, S)
    d = y - mu
    var = jnp.mean(d * d, axis=0, keepdims=True)
    yn = d * lax.rsqrt(var + ln_eps)
    o_ref[0] = yn * g_ref[...] + beta_ref[...]                          # (C, S)


def bifpn_transformer(x_list, params, num_heads, use_bf16_matmul=False, kv_tile=None):
    """x_list: list of length L, each (B, C, H, W) float32 (NCHW like PyTorch)."""
    L = len(x_list)
    B, C, Himg, Wimg = x_list[0].shape
    S = Himg * Wimg
    NH = num_heads
    assert C % NH == 0, "embed_dim must be divisible by num_heads"
    for xi in x_list:
        assert xi.shape == (B, C, Himg, Wimg)
    Dh = C // NH
    Dp = -(-Dh // 128) * 128                   # pad head dim to a 128-lane multiple
    Tk = kv_tile if kv_tile is not None else _pick_kv_tile(S)
    assert S % Tk == 0

    w_dtype = jnp.bfloat16 if use_bf16_matmul else jnp.float32
    act_dtype = jnp.bfloat16 if use_bf16_matmul else jnp.float32

    # channel-major token layout: pure reshape, no host-side transpose.
    xs = [xi.reshape(B, C, S) for xi in x_list]

    # BiFPN weight normalization (tiny parameter glue, kept in plain JAX)
    w = params["fuse_weight"]
    norm_w = (w / (jnp.sum(jax.nn.silu(w)) + 1e-4)).astype(jnp.float32)

    def pad_cols(wm):                          # (C, NH*Dh) -> (C, NH*Dp)
        if Dp == Dh:
            return wm
        return jnp.pad(wm.reshape(C, NH, Dh),
                       ((0, 0), (0, 0), (0, Dp - Dh))).reshape(C, NH * Dp)

    def pad_vec(bv):                           # (NH*Dh,) -> (NH*Dp,)
        if Dp == Dh:
            return bv
        return jnp.pad(bv.reshape(NH, Dh), ((0, 0), (0, Dp - Dh))).reshape(NH * Dp)

    wqkv = jnp.concatenate([pad_cols(params["wq"]), pad_cols(params["wk"]),
                            pad_cols(params["wv"])], axis=1).astype(w_dtype)
    bqkv = jnp.concatenate([pad_vec(params["bq"]), pad_vec(params["bk"]),
                            pad_vec(params["bv"])]).reshape(1, 3 * NH * Dp)
    bqkv = bqkv.astype(jnp.float32)

    wo3 = params["wo"].reshape(NH, Dh, C)
    if Dp != Dh:
        wo3 = jnp.pad(wo3, ((0, 0), (0, Dp - Dh), (0, 0)))
    wo_t = wo3.transpose(2, 0, 1).reshape(C, NH * Dp).astype(w_dtype)

    bo = params["bo"].reshape(C, 1).astype(jnp.float32)
    gamma = params["ln_gamma"].reshape(C, 1).astype(jnp.float32)
    beta = params["ln_beta"].reshape(C, 1).astype(jnp.float32)

    kernel = functools.partial(_bifpn_transformer_kernel, NH, L, Dh, Dp, Tk,
                               1e-5, use_bf16_matmul)
    full2 = lambda b: (0, 0)

    in_specs = [pl.BlockSpec(memory_space=pltpu.MemorySpace.SMEM)]        # norm_w (L,)
    in_specs += [pl.BlockSpec((1, C, S), lambda b: (b, 0, 0)) for _ in range(L)]
    in_specs += [
        pl.BlockSpec((C, 3 * NH * Dp), full2),                            # wqkv
        pl.BlockSpec((1, 3 * NH * Dp), full2),                            # bqkv
        pl.BlockSpec((C, NH * Dp), full2),                                # wo_t
        pl.BlockSpec((C, 1), full2),                                      # bo
        pl.BlockSpec((C, 1), full2),                                      # gamma
        pl.BlockSpec((C, 1), full2),                                      # beta
    ]

    scratch_shapes = [
        pltpu.VMEM((NH, S, Dp), act_dtype),     # K heads
        pltpu.VMEM((NH, S, Dp), act_dtype),     # V heads
        pltpu.VMEM((NH, S, 1), jnp.float32),    # running max
        pltpu.VMEM((NH, S, 1), jnp.float32),    # running denominator
        pltpu.VMEM((NH, S, Dp), jnp.float32),   # attention accumulator
    ]

    # generation-aware scoped-VMEM limit (v7x: 64 MiB physical; v5e/v6e: 128 MiB)
    try:
        vmem_cap = pltpu.get_tpu_info().vmem_capacity_bytes
    except Exception:
        vmem_cap = 128 * 1024 * 1024
    vmem_limit = (40 * 1024 * 1024 if vmem_cap <= 64 * 1024 * 1024
                  else 100 * 1024 * 1024)

    flops = B * (2 * S * C * 3 * NH * Dp       # fused QKV projection
                 + 2 * NH * S * S * Dp         # scores
                 + 2 * NH * S * S * Dp         # PV
                 + 2 * S * NH * Dp * C)        # output projection
    transcendentals = B * NH * S * S
    w_item = 2 if use_bf16_matmul else 4
    bytes_accessed = (4 * (L + 1) * B * C * S
                      + w_item * (C * 3 * NH * Dp + C * NH * Dp)
                      + 4 * (3 * NH * Dp + 3 * C + L))

    out = pl.pallas_call(
        kernel,
        out_shape=jax.ShapeDtypeStruct((B, C, S), jnp.float32),
        grid=(B,),
        in_specs=in_specs,
        out_specs=pl.BlockSpec((1, C, S), lambda b: (b, 0, 0)),
        scratch_shapes=scratch_shapes,
        compiler_params=pltpu.CompilerParams(
            dimension_semantics=("parallel",),
            vmem_limit_bytes=vmem_limit),
        cost_estimate=pl.CostEstimate(flops=flops,
                                      transcendentals=transcendentals,
                                      bytes_accessed=bytes_accessed),
    )(norm_w, *xs, wqkv, bqkv, wo_t, bo, gamma, beta)

    # (B, C, S) -> NCHW is a pure reshape.
    return out.reshape(B, C, Himg, Wimg)


def reference_jax(x_list, params, num_heads):
    """Pure-JAX reference mirroring the PyTorch forward, for correctness check."""
    L = len(x_list)
    B, C, Himg, Wimg = x_list[0].shape
    S = Himg * Wimg
    w = params["fuse_weight"]
    norm_w = w / (jnp.sum(jax.nn.silu(w)) + 1e-4)
    fused = sum(norm_w[i] * x_list[i] for i in range(L))               # (B,C,H,W)
    x = fused.reshape(B, C, S).transpose(0, 2, 1)                      # (B,S,C)

    Dh = C // num_heads
    q = x @ params["wq"] + params["bq"]
    k = x @ params["wk"] + params["bk"]
    v = x @ params["wv"] + params["bv"]
    q = q.reshape(B, S, num_heads, Dh).transpose(0, 2, 1, 3)
    k = k.reshape(B, S, num_heads, Dh).transpose(0, 2, 1, 3)
    v = v.reshape(B, S, num_heads, Dh).transpose(0, 2, 1, 3)
    s = jnp.einsum("bhqd,bhkd->bhqk", q, k) / math.sqrt(Dh)
    p = jax.nn.softmax(s, axis=-1)
    o = jnp.einsum("bhqk,bhkd->bhqd", p, v)
    o = o.transpose(0, 2, 1, 3).reshape(B, S, C)
    o = o @ params["wo"] + params["bo"]
    y = o + x
    mu = jnp.mean(y, axis=-1, keepdims=True)
    var = jnp.mean((y - mu) ** 2, axis=-1, keepdims=True)
    yn = (y - mu) / jnp.sqrt(var + 1e-5)
    yn = yn * params["ln_gamma"] + params["ln_beta"]
    return yn.transpose(0, 2, 1).reshape(B, C, Himg, Wimg)


if __name__ == "__main__":
    # Small, module-consistent shapes: length=3 feature maps, B=2, embed_dim=32,
    # num_heads=4, spatial 8x8 (so seq = 64 tokens).
    L, B, C, NH, Himg, Wimg = 3, 2, 32, 4, 8, 8

    key = jax.random.PRNGKey(0)
    ks = jax.random.split(key, 12)

    params = {
        "fuse_weight": jnp.ones((L,), jnp.float32),  # nn.Parameter(torch.ones(length))
        "wq": jax.random.normal(ks[0], (C, C), jnp.float32) / math.sqrt(C),
        "bq": jax.random.normal(ks[1], (C,), jnp.float32) * 0.02,
        "wk": jax.random.normal(ks[2], (C, C), jnp.float32) / math.sqrt(C),
        "bk": jax.random.normal(ks[3], (C,), jnp.float32) * 0.02,
        "wv": jax.random.normal(ks[4], (C, C), jnp.float32) / math.sqrt(C),
        "bv": jax.random.normal(ks[5], (C,), jnp.float32) * 0.02,
        "wo": jax.random.normal(ks[6], (C, C), jnp.float32) / math.sqrt(C),
        "bo": jax.random.normal(ks[7], (C,), jnp.float32) * 0.02,
        "ln_gamma": jnp.ones((C,), jnp.float32),
        "ln_beta": jnp.zeros((C,), jnp.float32),
    }

    x_list = [jax.random.normal(ks[8 + i], (B, C, Himg, Wimg), jnp.float32)
              for i in range(L)]

    ref = jax.block_until_ready(reference_jax(x_list, params, NH))

    # f32 MXU path (default). Tolerance relaxed to 2e-3 because the softmax
    # denominator uses the EUP approximate reciprocal (intentional).
    out = jax.block_until_ready(bifpn_transformer(x_list, params, NH))
    assert out.shape == (B, C, Himg, Wimg)
    assert jnp.allclose(out, ref, rtol=2e-3, atol=2e-3), (
        f"f32 max abs err {float(jnp.max(jnp.abs(out - ref)))}")

    # bf16-MXU path (weights host-cast to bf16, f32 accumulation): looser tolerance.
    out_bf16 = jax.block_until_ready(
        bifpn_transformer(x_list, params, NH, use_bf16_matmul=True))
    assert jnp.allclose(out_bf16, ref, rtol=5e-2, atol=5e-2), (
        f"bf16 max abs err {float(jnp.max(jnp.abs(out_bf16 - ref)))}")

    print("KERNEL_OK")
</pallas_src>

<mosaic_0001>
module attributes {stable_mosaic.version = 11 : i64} {
  func.func @_bifpn_transformer_kernel(%arg0: i32, %arg1: memref<3xf32, #tpu.memory_space<smem>>, %arg2: memref<1x32x64xf32, #tpu.memory_space<vmem>>, %arg3: memref<1x32x64xf32, #tpu.memory_space<vmem>>, %arg4: memref<1x32x64xf32, #tpu.memory_space<vmem>>, %arg5: memref<32x1536xf32, #tpu.memory_space<vmem>>, %arg6: memref<1x1536xf32, #tpu.memory_space<vmem>>, %arg7: memref<32x512xf32, #tpu.memory_space<vmem>>, %arg8: memref<32x1xf32, #tpu.memory_space<vmem>>, %arg9: memref<32x1xf32, #tpu.memory_space<vmem>>, %arg10: memref<32x1xf32, #tpu.memory_space<vmem>>, %arg11: memref<1x32x64xf32, #tpu.memory_space<vmem>>, %arg12: memref<4x64x128xf32, #tpu.memory_space<vmem>>, %arg13: memref<4x64x128xf32, #tpu.memory_space<vmem>>, %arg14: memref<4x64x1xf32, #tpu.memory_space<vmem>>, %arg15: memref<4x64x1xf32, #tpu.memory_space<vmem>>, %arg16: memref<4x64x128xf32, #tpu.memory_space<vmem>>) attributes {dimension_semantics = [#tpu.dimension_semantics<parallel>], iteration_bounds = array<i64: 2>, scalar_prefetch = 0 : i64, scratch_operands = 5 : i64, tpu.core_type = #tpu.core_type<tc>, window_params = [{transform_indices = @transform_0, window_bounds = array<i64: 3>}, {transform_indices = @transform_1, window_bounds = array<i64: 1, 32, 64>}, {transform_indices = @transform_2, window_bounds = array<i64: 1, 32, 64>}, {transform_indices = @transform_3, window_bounds = array<i64: 1, 32, 64>}, {pipeline_mode = #tpu.pipeline_mode<synchronous>, transform_indices = @transform_4, window_bounds = array<i64: 32, 1536>}, {pipeline_mode = #tpu.pipeline_mode<synchronous>, transform_indices = @transform_5, window_bounds = array<i64: 1, 1536>}, {pipeline_mode = #tpu.pipeline_mode<synchronous>, transform_indices = @transform_6, window_bounds = array<i64: 32, 512>}, {pipeline_mode = #tpu.pipeline_mode<synchronous>, transform_indices = @transform_7, window_bounds = array<i64: 32, 1>}, {pipeline_mode = #tpu.pipeline_mode<synchronous>, transform_indices = @transform_8, window_bounds = array<i64: 32, 1>}, {pipeline_mode = #tpu.pipeline_mode<synchronous>, transform_indices = @transform_9, window_bounds = array<i64: 32, 1>}, {transform_indices = @transform_10, window_bounds = array<i64: 1, 32, 64>}]} {
    %c0 = arith.constant 0 : index
    %0 = memref.load %arg1[%c0] : memref<3xf32, #tpu.memory_space<smem>>
    %c0_0 = arith.constant 0 : index
    %c0_1 = arith.constant 0 : index
    %c0_2 = arith.constant 0 : index
    %1 = vector.load %arg2[%c0_0, %c0_1, %c0_2] : memref<1x32x64xf32, #tpu.memory_space<vmem>>, vector<1x32x64xf32>
    %2 = vector.shape_cast %1 : vector<1x32x64xf32> to vector<32x64xf32>
    %3 = vector.broadcast %0 : f32 to vector<32x64xf32>
    %4 = arith.mulf %3, %2 : vector<32x64xf32>
    %c1 = arith.constant 1 : index
    %5 = memref.load %arg1[%c1] : memref<3xf32, #tpu.memory_space<smem>>
    %c0_3 = arith.constant 0 : index
    %c0_4 = arith.constant 0 : index
    %c0_5 = arith.constant 0 : index
    %6 = vector.load %arg3[%c0_3, %c0_4, %c0_5] : memref<1x32x64xf32, #tpu.memory_space<vmem>>, vector<1x32x64xf32>
    %7 = vector.shape_cast %6 : vector<1x32x64xf32> to vector<32x64xf32>
    %8 = vector.broadcast %5 : f32 to vector<32x64xf32>
    %9 = arith.mulf %8, %7 : vector<32x64xf32>
    %10 = arith.addf %4, %9 : vector<32x64xf32>
    %c2 = arith.constant 2 : index
    %11 = memref.load %arg1[%c2] : memref<3xf32, #tpu.memory_space<smem>>
    %c0_6 = arith.constant 0 : index
    %c0_7 = arith.constant 0 : index
    %c0_8 = arith.constant 0 : index
    %12 = vector.load %arg4[%c0_6, %c0_7, %c0_8] : memref<1x32x64xf32, #tpu.memory_space<vmem>>, vector<1x32x64xf32>
    %13 = vector.shape_cast %12 : vector<1x32x64xf32> to vector<32x64xf32>
    %14 = vector.broadcast %11 : f32 to vector<32x64xf32>
    %15 = arith.mulf %14, %13 : vector<32x64xf32>
    %16 = arith.addf %10, %15 : vector<32x64xf32>
    %17 = tpu.transpose %16, [1, 0] : vector<32x64xf32> -> vector<64x32xf32>
    %c0_9 = arith.constant 0 : index
    %c0_10 = arith.constant 0 : index
    %18 = vector.load %arg5[%c0_9, %c0_10] : memref<32x1536xf32, #tpu.memory_space<vmem>>, vector<32x1536xf32>
    %cst = arith.constant dense<0.000000e+00> : vector<64x1536xf32>
    %19 = tpu.matmul %17, %18, %cst {dimension_numbers = #tpu.dot_dimension_numbers<[1], [0], [0], [1], [0, 0, 1, 1], [], []>} : vector<64x32xf32>, vector<32x1536xf32>, vector<64x1536xf32> -> vector<64x1536xf32>
    %c0_11 = arith.constant 0 : index
    %c0_12 = arith.constant 0 : index
    %20 = vector.load %arg6[%c0_11, %c0_12] : memref<1x1536xf32, #tpu.memory_space<vmem>>, vector<1x1536xf32>
    %21 = vector.broadcast %20 : vector<1x1536xf32> to vector<64x1536xf32>
    %22 = arith.addf %19, %21 : vector<64x1536xf32>
    %23 = vector.extract_strided_slice %22 {offsets = [0, 0], sizes = [64, 128], strides = [1, 1]} : vector<64x1536xf32> to vector<64x128xf32>
    %24 = vector.extract_strided_slice %22 {offsets = [0, 128], sizes = [64, 128], strides = [1, 1]} : vector<64x1536xf32> to vector<64x128xf32>
    %25 = vector.extract_strided_slice %22 {offsets = [0, 256], sizes = [64, 128], strides = [1, 1]} : vector<64x1536xf32> to vector<64x128xf32>
    %26 = vector.extract_strided_slice %22 {offsets = [0, 384], sizes = [64, 128], strides = [1, 1]} : vector<64x1536xf32> to vector<64x128xf32>
    %27 = vector.shape_cast %23 : vector<64x128xf32> to vector<1x64x128xf32>
    %28 = vector.shape_cast %24 : vector<64x128xf32> to vector<1x64x128xf32>
    %29 = vector.shape_cast %25 : vector<64x128xf32> to vector<1x64x128xf32>
    %30 = vector.shape_cast %26 : vector<64x128xf32> to vector<1x64x128xf32>
    %31 = tpu.concatenate %27, %28, %29, %30 in 0 : vector<1x64x128xf32>, vector<1x64x128xf32>, vector<1x64x128xf32>, vector<1x64x128xf32> -> vector<4x64x128xf32>
    %32 = vector.extract_strided_slice %22 {offsets = [0, 512], sizes = [64, 128], strides = [1, 1]} : vector<64x1536xf32> to vector<64x128xf32>
    %33 = vector.extract_strided_slice %22 {offsets = [0, 640], sizes = [64, 128], strides = [1, 1]} : vector<64x1536xf32> to vector<64x128xf32>
    %34 = vector.extract_strided_slice %22 {offsets = [0, 768], sizes = [64, 128], strides = [1, 1]} : vector<64x1536xf32> to vector<64x128xf32>
    %35 = vector.extract_strided_slice %22 {offsets = [0, 896], sizes = [64, 128], strides = [1, 1]} : vector<64x1536xf32> to vector<64x128xf32>
    %36 = vector.shape_cast %32 : vector<64x128xf32> to vector<1x64x128xf32>
    %37 = vector.shape_cast %33 : vector<64x128xf32> to vector<1x64x128xf32>
    %38 = vector.shape_cast %34 : vector<64x128xf32> to vector<1x64x128xf32>
    %39 = vector.shape_cast %35 : vector<64x128xf32> to vector<1x64x128xf32>
    %40 = tpu.concatenate %36, %37, %38, %39 in 0 : vector<1x64x128xf32>, vector<1x64x128xf32>, vector<1x64x128xf32>, vector<1x64x128xf32> -> vector<4x64x128xf32>
    %41 = vector.extract_strided_slice %22 {offsets = [0, 1024], sizes = [64, 128], strides = [1, 1]} : vector<64x1536xf32> to vector<64x128xf32>
    %42 = vector.extract_strided_slice %22 {offsets = [0, 1152], sizes = [64, 128], strides = [1, 1]} : vector<64x1536xf32> to vector<64x128xf32>
    %43 = vector.extract_strided_slice %22 {offsets = [0, 1280], sizes = [64, 128], strides = [1, 1]} : vector<64x1536xf32> to vector<64x128xf32>
    %44 = vector.extract_strided_slice %22 {offsets = [0, 1408], sizes = [64, 128], strides = [1, 1]} : vector<64x1536xf32> to vector<64x128xf32>
    %45 = vector.shape_cast %41 : vector<64x128xf32> to vector<1x64x128xf32>
    %46 = vector.shape_cast %42 : vector<64x128xf32> to vector<1x64x128xf32>
    %47 = vector.shape_cast %43 : vector<64x128xf32> to vector<1x64x128xf32>
    %48 = vector.shape_cast %44 : vector<64x128xf32> to vector<1x64x128xf32>
    %49 = tpu.concatenate %45, %46, %47, %48 in 0 : vector<1x64x128xf32>, vector<1x64x128xf32>, vector<1x64x128xf32>, vector<1x64x128xf32> -> vector<4x64x128xf32>
    %c0_13 = arith.constant 0 : index
    %c0_14 = arith.constant 0 : index
    %c0_15 = arith.constant 0 : index
    %50 = vector.load %arg12[%c0_13, %c0_14, %c0_15] : memref<4x64x128xf32, #tpu.memory_space<vmem>>, vector<4x64x128xf32>
    tpu.vector_store %arg12[%c0_13, %c0_14, %c0_15], %40 {strides = array<i32>} : memref<4x64x128xf32, #tpu.memory_space<vmem>>, vector<4x64x128xf32>,
    %c0_16 = arith.constant 0 : index
    %c0_17 = arith.constant 0 : index
    %c0_18 = arith.constant 0 : index
    %51 = vector.load %arg13[%c0_16, %c0_17, %c0_18] : memref<4x64x128xf32, #tpu.memory_space<vmem>>, vector<4x64x128xf32>
    tpu.vector_store %arg13[%c0_16, %c0_17, %c0_18], %49 {strides = array<i32>} : memref<4x64x128xf32, #tpu.memory_space<vmem>>, vector<4x64x128xf32>,
    %cst_19 = arith.constant 0xFF800000 : f32
    %52 = vector.broadcast %cst_19 : f32 to vector<4x64x1xf32>
    %c0_20 = arith.constant 0 : index
    %c0_21 = arith.constant 0 : index
    %c0_22 = arith.constant 0 : index
    %53 = vector.load %arg14[%c0_20, %c0_21, %c0_22] : memref<4x64x1xf32, #tpu.memory_space<vmem>>, vector<4x64x1xf32>
    tpu.vector_store %arg14[%c0_20, %c0_21, %c0_22], %52 {strides = array<i32>} : memref<4x64x1xf32, #tpu.memory_space<vmem>>, vector<4x64x1xf32>,
    %cst_23 = arith.constant 0.000000e+00 : f32
    %54 = vector.broadcast %cst_23 : f32 to vector<4x64x1xf32>
    %c0_24 = arith.constant 0 : index
    %c0_25 = arith.constant 0 : index
    %c0_26 = arith.constant 0 : index
    %55 = vector.load %arg15[%c0_24, %c0_25, %c0_26] : memref<4x64x1xf32, #tpu.memory_space<vmem>>, vector<4x64x1xf32>
    tpu.vector_store %arg15[%c0_24, %c0_25, %c0_26], %54 {strides = array<i32>} : memref<4x64x1xf32, #tpu.memory_space<vmem>>, vector<4x64x1xf32>,
    %cst_27 = arith.constant 0.000000e+00 : f32
    %56 = vector.broadcast %cst_27 : f32 to vector<4x64x128xf32>
    %c0_28 = arith.constant 0 : index
    %c0_29 = arith.constant 0 : index
    %c0_30 = arith.constant 0 : index
    %57 = vector.load %arg16[%c0_28, %c0_29, %c0_30] : memref<4x64x128xf32, #tpu.memory_space<vmem>>, vector<4x64x128xf32>
    tpu.vector_store %arg16[%c0_28, %c0_29, %c0_30], %56 {strides = array<i32>} : memref<4x64x128xf32, #tpu.memory_space<vmem>>, vector<4x64x128xf32>,
    %c0_i32 = arith.constant 0 : i32
    %c64_i32 = arith.constant 64 : i32
    %58 = arith.muli %c0_i32, %c64_i32 : i32
    %59 = tpu.assume_multiple %58, 64 : i32
    %c0_31 = arith.constant 0 : index
    %60 = arith.index_cast %59 : i32 to index
    %c0_32 = arith.constant 0 : index
    %61 = vector.load %arg12[%c0_31, %60, %c0_32] : memref<4x64x128xf32, #tpu.memory_space<vmem>>, vector<4x64x128xf32>
    %c0_33 = arith.constant 0 : index
    %62 = arith.index_cast %59 : i32 to index
    %c0_34 = arith.constant 0 : index
    %63 = vector.load %arg13[%c0_33, %62, %c0_34] : memref<4x64x128xf32, #tpu.memory_space<vmem>>, vector<4x64x128xf32>
    "tpu.trace_start"() <{level = 10 : i32, message = "hqd,hkd->hqk"}> : () -> ()
    %cst_35 = arith.constant dense<0.000000e+00> : vector<4x64x64xf32>
    %64 = tpu.matmul %31, %61, %cst_35 {dimension_numbers = #tpu.dot_dimension_numbers<[2], [2], [1], [1], [0, 0, 0, 1, 1, 1], [0], [0]>} : vector<4x64x128xf32>, vector<4x64x128xf32>, vector<4x64x64xf32> -> vector<4x64x64xf32>
    "tpu.trace_stop"() : () -> ()
    %cst_36 = arith.constant 0.353553385 : f32
    %65 = vector.broadcast %cst_36 : f32 to vector<4x64x64xf32>
    %66 = arith.mulf %64, %65 : vector<4x64x64xf32>
    %c0_37 = arith.constant 0 : index
    %c0_38 = arith.constant 0 : index
    %c0_39 = arith.constant 0 : index
    %67 = vector.load %arg14[%c0_37, %c0_38, %c0_39] : memref<4x64x1xf32, #tpu.memory_space<vmem>>, vector<4x64x1xf32>
    %cst_40 = arith.constant dense<0xFF800000> : vector<4x64xf32>
    %68 = vector.multi_reduction <maximumf>, %66, %cst_40 [2] : vector<4x64x64xf32> to vector<4x64xf32>
    %69 = vector.shape_cast %68 : vector<4x64xf32> to vector<4x64x1xf32>
    %70 = arith.maximumf %67, %69 : vector<4x64x1xf32>
    %71 = arith.subf %67, %70 : vector<4x64x1xf32>
    %72 = math.exp %71 : vector<4x64x1xf32>
    %73 = vector.broadcast %70 : vector<4x64x1xf32> to vector<4x64x64xf32>
    %74 = arith.subf %66, %73 : vector<4x64x64xf32>
    %75 = math.exp %74 : vector<4x64x64xf32>
    %c0_41 = arith.constant 0 : index
    %c0_42 = arith.constant 0 : index
    %c0_43 = arith.constant 0 : index
    %76 = vector.load %arg15[%c0_41, %c0_42, %c0_43] : memref<4x64x1xf32, #tpu.memory_space<vmem>>, vector<4x64x1xf32>
    %77 = arith.mulf %72, %76 : vector<4x64x1xf32>
    %cst_44 = arith.constant dense<0.000000e+00> : vector<4x64xf32>
    %78 = vector.multi_reduction <add>, %75, %cst_44 [2] : vector<4x64x64xf32> to vector<4x64xf32>
    %79 = vector.shape_cast %78 : vector<4x64xf32> to vector<4x64x1xf32>
    %80 = arith.addf %77, %79 : vector<4x64x1xf32>
    %c0_45 = arith.constant 0 : index
    %c0_46 = arith.constant 0 : index
    %c0_47 = arith.constant 0 : index
    %81 = vector.load %arg15[%c0_45, %c0_46, %c0_47] : memref<4x64x1xf32, #tpu.memory_space<vmem>>, vector<4x64x1xf32>
    tpu.vector_store %arg15[%c0_45, %c0_46, %c0_47], %80 {strides = array<i32>} : memref<4x64x1xf32, #tpu.memory_space<vmem>>, vector<4x64x1xf32>,
    %c0_48 = arith.constant 0 : index
    %c0_49 = arith.constant 0 : index
    %c0_50 = arith.constant 0 : index
    %82 = vector.load %arg16[%c0_48, %c0_49, %c0_50] : memref<4x64x128xf32, #tpu.memory_space<vmem>>, vector<4x64x128xf32>
    %83 = vector.broadcast %72 : vector<4x64x1xf32> to vector<4x64x128xf32>
    %84 = arith.mulf %83, %82 : vector<4x64x128xf32>
    "tpu.trace_start"() <{level = 10 : i32, message = "hqk,hkd->hqd"}> : () -> ()
    %cst_51 = arith.constant dense<0.000000e+00> : vector<4x64x128xf32>
    %85 = tpu.matmul %75, %63, %cst_51 {dimension_numbers = #tpu.dot_dimension_numbers<[2], [1], [1], [2], [0, 0, 0, 1, 1, 2], [0], [0]>} : vector<4x64x64xf32>, vector<4x64x128xf32>, vector<4x64x128xf32> -> vector<4x64x128xf32>
    "tpu.trace_stop"() : () -> ()
    %86 = arith.addf %84, %85 : vector<4x64x128xf32>
    %c0_52 = arith.constant 0 : index
    %c0_53 = arith.constant 0 : index
    %c0_54 = arith.constant 0 : index
    %87 = vector.load %arg16[%c0_52, %c0_53, %c0_54] : memref<4x64x128xf32, #tpu.memory_space<vmem>>, vector<4x64x128xf32>
    tpu.vector_store %arg16[%c0_52, %c0_53, %c0_54], %86 {strides = array<i32>} : memref<4x64x128xf32, #tpu.memory_space<vmem>>, vector<4x64x128xf32>,
    %c0_55 = arith.constant 0 : index
    %c0_56 = arith.constant 0 : index
    %c0_57 = arith.constant 0 : index
    %88 = vector.load %arg14[%c0_55, %c0_56, %c0_57] : memref<4x64x1xf32, #tpu.memory_space<vmem>>, vector<4x64x1xf32>
    tpu.vector_store %arg14[%c0_55, %c0_56, %c0_57], %70 {strides = array<i32>} : memref<4x64x1xf32, #tpu.memory_space<vmem>>, vector<4x64x1xf32>,
    %c1_i32 = arith.constant 1 : i32
    %c0_58 = arith.constant 0 : index
    %c0_59 = arith.constant 0 : index
    %c0_60 = arith.constant 0 : index
    %89 = vector.load %arg16[%c0_58, %c0_59, %c0_60] : memref<4x64x128xf32, #tpu.memory_space<vmem>>, vector<4x64x128xf32>
    %c0_61 = arith.constant 0 : index
    %c0_62 = arith.constant 0 : index
    %c0_63 = arith.constant 0 : index
    %90 = vector.load %arg15[%c0_61, %c0_62, %c0_63] : memref<4x64x1xf32, #tpu.memory_space<vmem>>, vector<4x64x1xf32>
    %91 = tpu.reciprocal %90 {approx = true} : vector<4x64x1xf32> -> vector<4x64x1xf32>
    %92 = vector.broadcast %91 : vector<4x64x1xf32> to vector<4x64x128xf32>
    %93 = arith.mulf %89, %92 : vector<4x64x128xf32>
    %94 = vector.extract_strided_slice %93 {offsets = [0, 0, 0], sizes = [1, 64, 128], strides = [1, 1, 1]} : vector<4x64x128xf32> to vector<1x64x128xf32>
    %95 = vector.shape_cast %94 : vector<1x64x128xf32> to vector<64x128xf32>
    %96 = vector.extract_strided_slice %93 {offsets = [1, 0, 0], sizes = [1, 64, 128], strides = [1, 1, 1]} : vector<4x64x128xf32> to vector<1x64x128xf32>
    %97 = vector.shape_cast %96 : vector<1x64x128xf32> to vector<64x128xf32>
    %98 = vector.extract_strided_slice %93 {offsets = [2, 0, 0], sizes = [1, 64, 128], strides = [1, 1, 1]} : vector<4x64x128xf32> to vector<1x64x128xf32>
    %99 = vector.shape_cast %98 : vector<1x64x128xf32> to vector<64x128xf32>
    %100 = vector.extract_strided_slice %93 {offsets = [3, 0, 0], sizes = [1, 64, 128], strides = [1, 1, 1]} : vector<4x64x128xf32> to vector<1x64x128xf32>
    %101 = vector.shape_cast %100 : vector<1x64x128xf32> to vector<64x128xf32>
    %102 = tpu.concatenate %95, %97, %99, %101 in 1 : vector<64x128xf32>, vector<64x128xf32>, vector<64x128xf32>, vector<64x128xf32> -> vector<64x512xf32>
    %c0_64 = arith.constant 0 : index
    %c0_65 = arith.constant 0 : index
    %103 = vector.load %arg7[%c0_64, %c0_65] : memref<32x512xf32, #tpu.memory_space<vmem>>, vector<32x512xf32>
    "tpu.trace_start"() <{level = 10 : i32, message = "ck,sk->cs"}> : () -> ()
    %cst_66 = arith.constant dense<0.000000e+00> : vector<32x64xf32>
    %104 = tpu.matmul %103, %102, %cst_66 {dimension_numbers = #tpu.dot_dimension_numbers<[1], [1], [0], [0], [0, 0, 1, 0], [], []>} : vector<32x512xf32>, vector<64x512xf32>, vector<32x64xf32> -> vector<32x64xf32>
    "tpu.trace_stop"() : () -> ()
    %c0_67 = arith.constant 0 : index
    %c0_68 = arith.constant 0 : index
    %105 = vector.load %arg8[%c0_67, %c0_68] : memref<32x1xf32, #tpu.memory_space<vmem>>, vector<32x1xf32>
    %106 = vector.broadcast %105 : vector<32x1xf32> to vector<32x64xf32>
    %107 = arith.addf %104, %106 : vector<32x64xf32>
    %108 = arith.addf %107, %16 : vector<32x64xf32>
    %cst_69 = arith.constant dense<0.000000e+00> : vector<64xf32>
    %109 = vector.multi_reduction <add>, %108, %cst_69 [0] : vector<32x64xf32> to vector<64xf32>
    %110 = vector.shape_cast %109 : vector<64xf32> to vector<1x64xf32>
    %cst_70 = arith.constant 3.200000e+01 : f32
    %111 = vector.broadcast %cst_70 : f32 to vector<1x64xf32>
    %112 = arith.divf %110, %111 : vector<1x64xf32>
    %113 = vector.broadcast %112 : vector<1x64xf32> to vector<32x64xf32>
    %114 = arith.subf %108, %113 : vector<32x64xf32>
    %115 = arith.mulf %114, %114 : vector<32x64xf32>
    %cst_71 = arith.constant dense<0.000000e+00> : vector<64xf32>
    %116 = vector.multi_reduction <add>, %115, %cst_71 [0] : vector<32x64xf32> to vector<64xf32>
    %117 = vector.shape_cast %116 : vector<64xf32> to vector<1x64xf32>
    %cst_72 = arith.constant 3.200000e+01 : f32
    %118 = vector.broadcast %cst_72 : f32 to vector<1x64xf32>
    %119 = arith.divf %117, %118 : vector<1x64xf32>
    %cst_73 = arith.constant 9.99999974E-6 : f32
    %120 = vector.broadcast %cst_73 : f32 to vector<1x64xf32>
    %121 = arith.addf %119, %120 : vector<1x64xf32>
    %122 = math.rsqrt %121 : vector<1x64xf32>
    %123 = vector.broadcast %122 : vector<1x64xf32> to vector<32x64xf32>
    %124 = arith.mulf %114, %123 : vector<32x64xf32>
    %c0_74 = arith.constant 0 : index
    %c0_75 = arith.constant 0 : index
    %125 = vector.load %arg9[%c0_74, %c0_75] : memref<32x1xf32, #tpu.memory_space<vmem>>, vector<32x1xf32>
    %126 = vector.broadcast %125 : vector<32x1xf32> to vector<32x64xf32>
    %127 = arith.mulf %124, %126 : vector<32x64xf32>
    %c0_76 = arith.constant 0 : index
    %c0_77 = arith.constant 0 : index
    %128 = vector.load %arg10[%c0_76, %c0_77] : memref<32x1xf32, #tpu.memory_space<vmem>>, vector<32x1xf32>
    %129 = vector.broadcast %128 : vector<32x1xf32> to vector<32x64xf32>
    %130 = arith.addf %127, %129 : vector<32x64xf32>
    %c0_78 = arith.constant 0 : index
    %c0_79 = arith.constant 0 : index
    %c0_80 = arith.constant 0 : index
    %131 = vector.load %arg11[%c0_78, %c0_79, %c0_80] : memref<1x32x64xf32, #tpu.memory_space<vmem>>, vector<1x32x64xf32>
    %132 = vector.shape_cast %131 : vector<1x32x64xf32> to vector<32x64xf32>
    %133 = vector.shape_cast %130 : vector<32x64xf32> to vector<1x32x64xf32>
    tpu.vector_store %arg11[%c0_78, %c0_79, %c0_80], %133 {strides = array<i32>} : memref<1x32x64xf32, #tpu.memory_space<vmem>>, vector<1x32x64xf32>,
    return
  }
  func.func @transform_0(%arg0: i32) -> i32 {
    %c0_i32 = arith.constant 0 : i32
    %c0_i32_0 = arith.constant 0 : i32
    return %c0_i32 : i32
  }
  func.func @transform_1(%arg0: i32) -> (i32, i32, i32) {
    %c0_i32 = arith.constant 0 : i32
    %c0_i32_0 = arith.constant 0 : i32
    %c0_i32_1 = arith.constant 0 : i32
    return %arg0, %c0_i32, %c0_i32_0 : i32, i32, i32
  }
  func.func @transform_2(%arg0: i32) -> (i32, i32, i32) {
    %c0_i32 = arith.constant 0 : i32
    %c0_i32_0 = arith.constant 0 : i32
    %c0_i32_1 = arith.constant 0 : i32
    return %arg0, %c0_i32, %c0_i32_0 : i32, i32, i32
  }
  func.func @transform_3(%arg0: i32) -> (i32, i32, i32) {
    %c0_i32 = arith.constant 0 : i32
    %c0_i32_0 = arith.constant 0 : i32
    %c0_i32_1 = arith.constant 0 : i32
    return %arg0, %c0_i32, %c0_i32_0 : i32, i32, i32
  }
  func.func @transform_4(%arg0: i32) -> (i32, i32) {
    %c0_i32 = arith.constant 0 : i32
    %c0_i32_0 = arith.constant 0 : i32
    %c0_i32_1 = arith.constant 0 : i32
    return %c0_i32, %c0_i32_0 : i32, i32
  }
  func.func @transform_5(%arg0: i32) -> (i32, i32) {
    %c0_i32 = arith.constant 0 : i32
    %c0_i32_0 = arith.constant 0 : i32
    %c0_i32_1 = arith.constant 0 : i32
    return %c0_i32, %c0_i32_0 : i32, i32
  }
  func.func @transform_6(%arg0: i32) -> (i32, i32) {
    %c0_i32 = arith.constant 0 : i32
    %c0_i32_0 = arith.constant 0 : i32
    %c0_i32_1 = arith.constant 0 : i32
    return %c0_i32, %c0_i32_0 : i32, i32
  }
  func.func @transform_7(%arg0: i32) -> (i32, i32) {
    %c0_i32 = arith.constant 0 : i32
    %c0_i32_0 = arith.constant 0 : i32
    %c0_i32_1 = arith.constant 0 : i32
    return %c0_i32, %c0_i32_0 : i32, i32
  }
  func.func @transform_8(%arg0: i32) -> (i32, i32) {
    %c0_i32 = arith.constant 0 : i32
    %c0_i32_0 = arith.constant 0 : i32
    %c0_i32_1 = arith.constant 0 : i32
    return %c0_i32, %c0_i32_0 : i32, i32
  }
  func.func @transform_9(%arg0: i32) -> (i32, i32) {
    %c0_i32 = arith.constant 0 : i32
    %c0_i32_0 = arith.constant 0 : i32
    %c0_i32_1 = arith.constant 0 : i32
    return %c0_i32, %c0_i32_0 : i32, i32
  }
  func.func @transform_10(%arg0: i32) -> (i32, i32, i32) {
    %c0_i32 = arith.constant 0 : i32
    %c0_i32_0 = arith.constant 0 : i32
    %c0_i32_1 = arith.constant 0 : i32
    return %arg0, %c0_i32, %c0_i32_0 : i32, i32, i32
  }
}

</mosaic_0001>

<bundles_post_ra>
// kernel: tpu_custom_call.1
= control target key start
LH: loop header
LB: loop body
LE: loop exit
PB: predicated region body
PF: predicated region fallthrough
CT: control target
= control target key end

     0   :  { %s7286_s0 = inlined_call_operand.vmem [shape: f32[3], index: 0, kind: input, shape index: {}]   ;;  %s7287_s1 = inlined_call_operand.vmem [shape: f32[2,32,64], index: 1, kind: input, shape index: {}]   ;;  %s7288_s2 = inlined_call_operand.hbm [shape: f32[2,32,64], index: 2, kind: input, shape index: {}]   ;;  %s7289_s3 = inlined_call_operand.hbm [shape: f32[2,32,64], index: 3, kind: input, shape index: {}]   ;;  %s7290_s4 = inlined_call_operand.hbm [shape: f32[32,1536], index: 4, kind: input, shape index: {}]   ;;  %s7291_s5 = inlined_call_operand.vmem [shape: f32[1,1536], index: 5, kind: input, shape index: {}]   ;;  %s7292_s6 = inlined_call_operand.hbm [shape: f32[32,512], index: 6, kind: input, shape index: {}]   ;;  %s7293_s7 = inlined_call_operand.vmem [shape: f32[32,1], index: 7, kind: input, shape index: {}]   ;;  %s7294_s8 = inlined_call_operand.vmem [shape: f32[32,1], index: 8, kind: input, shape index: {}]   ;;  %s7295_s9 = inlined_call_operand.vmem [shape: f32[32,1], index: 9, kind: input, shape index: {}]   ;;  %s7296_s10 = inlined_call_operand.hbm [shape: f32[2,32,64], index: 10, kind: output, shape index: {}]  }
   0x1   :  { %7363 = sst [smem:[#allocation80_spill]] %s7286_s0 }
   0x2   :  { %7364 = sst [smem:[#allocation81_spill]] %s7288_s2 }
   0x3   :  { %7365 = sst [smem:[#allocation82_spill]] %s7290_s4 }
   0x4   :  { %7366 = sst [smem:[#allocation83_spill]] %s7292_s6 }
   0x5   :  { %15 = vsyncpa [#allocation10], 0 }
   0x6   :  { %16 = vsyncpa [#allocation8], 0 }
   0x7   :  { %18 = vsyncpa [#allocation8 + $0x1], 0 }
   0x8   :  { %19 = vsyncpa [#allocation13], 0 }
   0x9   :  { %21 = vsyncpa [#allocation13 + $0x1], 0 }
   0xa   :  { %22 = vsyncpa [#allocation16], 0 }
   0xb   :  { %23 = vsyncpa [#allocation9], 0 }
   0xc   :  { %25 = vsyncpa [#allocation9 + $0x1], 0  ;;  %s5404_s13 = smov 0   ;;  %s5406_s14 = smov 0  }
   0xd   :  { %s5408_s15 = smov 0   ;;  %s5410_s16 = smov 0  }
   0xe LB: > { %7367 = sst [smem:[#allocation24_spill]] %s5326_s15  ;;  %s5425_s17 = sadd.s32 4294967295, %s5330_s16   ;;  %s5330_s16 = sphi %s5410_s16, %s7552_s16   ;;  %s5326_s15 = sphi %s5408_s15, %s7554_s15   ;;  %s5322_s14 = sphi %s5406_s14, %s7556_s14   ;;  %s5318_s13 = sphi %s5404_s13, %s7555_s13  }
   0xf   : > { %s4374_s18 = sadd.s32 4294967294, %s5330_s16   ;;  %p98_p0 = scmp.ne.s32.totalorder %s5322_s14, %s5318_s13 }
  0x10   : > { %p7297_p1 = scmp.eq.s32.totalorder %s5425_s17, 0  ;;  %p280_p3 = scmp.eq.s32.totalorder %s4374_s18, 1 }
  0x11   : > { %p4375_p5 = scmp.ge.s32.totalorder %s5330_s16, 1  ;;  %p287_p7 = scmp.lt.s32.totalorder %s5330_s16, 3 }
  0x12   : > { %p5434_p4 = por %p7297_p1, %p98_p0  ;;  %p5439_p6 = por %p280_p3, %p98_p0 }
  0x13   : > { %p5444_p8 = pnand %p4375_p5, %p287_p7  ;;  %s5332_s22 = smov [#allocation14]  }
  0x14   : > { %s7368_s19 = scalar_select %p5434_p4, 1, 0 }
  0x15   : > { %s7369_s20 = scalar_select %p5439_p6, 1, 0 }
  0x16   : > { %s7370_s21 = scalar_select %p5444_p8, 1, 0 }
  0x17   : > { %s310_s23 = sshll.u32 %s5332_s22, 4  ;;  %p4856_p9 = pneg %p5444_p8  ;;  %s311_s23 = int_to_ptr.vmem [resolvable:$true] %s310_s23 }
  0x18   : > { %s7371_s0 = sld [smem:[#allocation80_spill]]  ;;  %s5333_s28 = smov [#allocation15]  }
  0x19   : > { %p5456_p11 = pnand %p4856_p9, %p7297_p1  ;;  %s326_s29 = sshll.u32 %s5333_s28, 4  ;;  %s327_s29 = int_to_ptr.vmem [resolvable:$true] %s326_s29 }
  0x1a   : > { %s5138_s30 = scalar_lea.vmem %s311_s23, 6144  ;;  %p5146_p5 = scmp.lt.s32.totalorder %s311_s23, %s311_s23 }
  0x1b   : > { %p5129_p12 = pneg %p5456_p11  ;;  %p5139_p13 = scmp.ne.s32.totalorder %s311_s23, %s5138_s30 }
  0x1c   : > { %p5147_p7 = scmp.lt.s32.totalorder %s5138_s30, %s5138_s30 }
  0x1d   : > { %p5141_p0 = pnand %p5139_p13, %p5129_p12 }
  0x1e   : > { %s300_s26 = sshll.u32 %s7371_s0, 4  ;;  %p5148_p10 = por %p5147_p7, %p5146_p5  ;;  %s301_s26 = int_to_ptr.vmem [resolvable:$true] %s300_s26 }
  0x1f   : > { %p5142_p3 = pneg %p5141_p0 }
  0x21   : > { %p5149_p9 = pnand %p5148_p10, %p5142_p3 }
  0x23   : > { %5152 = shalt.err (!%p5149_p9)
}
  0x24   : > { %s5334_s11 = smov 1536   ;;  %s5335_s12 = smov 96  }
  0x25   : > { %s7373_s4 = sld [smem:[#allocation82_spill]]  ;;  %s5153_s24 = scalar_lea.vmem %s301_s26, 16 }
  0x26   : > { %p5154_p1 = scmp.ne.s32.totalorder %s301_s26, %s5153_s24  ;;  %p5161_p2 = scmp.lt.s32.totalorder %s301_s26, %s301_s26 }
  0x27   : > { %p5162_p6 = scmp.lt.s32.totalorder %s5153_s24, %s5153_s24 }
  0x28   : > { %p5156_p13 = pnand %p5154_p1, %p5129_p12 }
  0x29   : > { %p5163_p5 = por %p5162_p6, %p5161_p2 }
  0x2a   : > { %p5157_p0 = pneg %p5156_p13 }
  0x2b   : > { %4862 = dma.hbm_to_vmem [thread:$0]  (!%p5456_p11), %s7373_s4, 6144, %s311_s23, [#allocation13], %s5334_s11, %s5334_s11, %s5335_s12  }
  0x2c   : > { %p5164_p10 = pnand %p5163_p5, %p5157_p0 }
  0x2e   : > { %5167 = shalt.err (!%p5164_p10)
}
  0x2f   : > { %s5336_s25 = smov [#allocation7]   ;;  %s5179_s28 = scalar_lea.vmem %s327_s29, 2048 }
  0x30   : > { %4859 = dma.vmem_to_smem (!%p5456_p11), %s301_s26, 16, %s5336_s25, [#allocation10]  }
  0x31   : > { %p5180_p3 = scmp.ne.s32.totalorder %s327_s29, %s5179_s28  ;;  %p5187_p4 = scmp.lt.s32.totalorder %s327_s29, %s327_s29 }
  0x32   : > { %p5188_p1 = scmp.lt.s32.totalorder %s5179_s28, %s5179_s28 }
  0x33   : > { %p5182_p7 = pnand %p5180_p3, %p5129_p12 }
  0x34   : > { %p5189_p13 = por %p5188_p1, %p5187_p4 }
  0x35   : > { %p5183_p9 = pneg %p5182_p7 }
  0x37   : > { %p5190_p8 = pnand %p5189_p13, %p5183_p9 }
  0x39   : > { %5193 = shalt.err (!%p5190_p8)
}
  0x3a   : > { %s5337_s23 = smov 512   ;;  %s5338_s26 = smov 32  }
  0x3b   : > { %s7374_s6 = sld [smem:[#allocation83_spill]]  ;;  %s5484_s12 = sadd.s32 1, %s5330_s16  }
  0x3c   : > { %7375 = sst [smem:[#allocation25_spill]] %s5484_s12  ;;  %s82_s18 = ssub.s32 %s5330_s16, %s5484_s12 }
  0x3d   : > { %s85_s22 = sadd.s32 1, %s5326_s15  ;;  %p83_p2 = scmp.eq.s32.totalorder %s82_s18, 0 }
  0x3e   : > { %p92_p4 = scmp.ne.s32.totalorder %s5326_s15, %s5322_s14  ;;  %p93_p6 = scmp.eq.s32.totalorder %s5330_s16, 0 }
  0x3f   : > { %p4880_p8 = scmp.lt.s32.totalorder %s5330_s16, 2  ;;  %p7377_p0 = scmp.eq.s32.totalorder %s5425_s17, 1 }
  0x40   : > { %s5494_s24 = scalar_select %p83_p2, %s5326_s15, %s85_s22  }
  0x41   : > { %4865 = dma.hbm_to_vmem [thread:$0]  (!%p5456_p11), %s7374_s6, 2048, %s327_s29, [#allocation16], %s5337_s23, %s5337_s23, %s5338_s26  }
  0x42   : > { %7376 = sst [smem:[#allocation26_spill]] %s5494_s24  ;;  %p94_p12 = por %p93_p6, %p92_p4 }
  0x43   : > { %p5498_p5 = por %p7377_p0, %p92_p4  ;;  %s357_s27 = sand.u32 1, %s5326_s15  }
  0x44   : > { %s7300_s28 = sshll.u32 %s5330_s16, 9  ;;  %s5504_s29 = sshll.u32 %s357_s27, 5 }
  0x45   : > { %s7379_s2 = sld [smem:[#allocation81_spill]]  ;;  %s361_s11 = scalar_lea.vmem [#allocation11], %s5504_s29 }
  0x46   : > { %s368_s18 = sshll.u32 %s361_s11, 4  ;;  %p5514_p11 = pnand %p4880_p8, %p94_p12  ;;  %s5518_s18 = int_to_ptr.vmem [resolvable:$true] %s368_s18 }
  0x47   : > { %s5520_s0 = scalar_lea.sflag [#allocation8], %s357_s27 }
  0x48   : > { %p5196_p3 = pneg %p5514_p11 }
  0x4b   : > { %s5511_s30 = scalar_lea.hbm %s7379_s2, %s7300_s28  ;;  %s5199_s11 = scalar_lea.hbm %s7379_s2, 1024 }
  0x4c   : > { %s5194_s4 = scalar_lea.hbm %s5511_s30, 512  ;;  %p5200_p1 = scmp.lt.s32.totalorder %s5511_s30, %s7379_s2 }
  0x4d   : > { %p5195_p10 = scmp.ne.s32.totalorder %s5511_s30, %s5194_s4  ;;  %p5201_p13 = scmp.lt.s32.totalorder %s5199_s11, %s5194_s4 }
  0x4f   : > { %p5197_p7 = pnand %p5196_p3, %p5195_p10  ;;  %p5202_p2 = por %p5201_p13, %p5200_p1 }
  0x51   : > { %p5198_p9 = pneg %p5197_p7 }
  0x53   : > { %p5203_p4 = pnand %p5202_p2, %p5198_p9 }
  0x55   : > { %5206 = shalt.err (!%p5203_p4)
}
  0x56   : > { %s5207_s27 = scalar_lea.vmem %s5518_s18, 512  ;;  %s5339_s23 = smov [#allocation11]  }
  0x57   : > { %p5208_p6 = scmp.ne.s32.totalorder %s5518_s18, %s5207_s27  ;;  %s5212_s26 = sshll.u32 %s5339_s23, 4  ;;  %s5213_s26 = int_to_ptr.vmem [resolvable:$false] %s5212_s26 }
  0x58   : > { %s5214_s24 = scalar_lea.vmem %s5213_s26, 1024  ;;  %p5215_p0 = scmp.lt.s32.totalorder %s5518_s18, %s5213_s26 }
  0x59   : > { %p5210_p8 = pnand %p5208_p6, %p5196_p3  ;;  %p5216_p10 = scmp.lt.s32.totalorder %s5214_s24, %s5207_s27 }
  0x5b   : > { %p5211_p12 = pneg %p5210_p8  ;;  %p5217_p7 = por %p5216_p10, %p5215_p0 }
  0x5d   : > { %p5218_p1 = pnand %p5217_p7, %p5211_p12 }
  0x5f   : > { %5221 = shalt.err (!%p5218_p1)
}
  0x60   : > { %s5340_s4 = smov 128   ;;  %s5341_s6 = smov 8  }
  0x61   : > { %4869 = dma.hbm_to_vmem [thread:$0]  (!%p5514_p11), %s5511_s30, 512, %s5518_s18, %s5520_s0, %s5340_s4, %s5340_s4, %s5341_s6  }
  0x62   : > { %s7381_s28 = sshll.u32 %s5330_s16, 9  ;;  %s382_s23 = scalar_lea.vmem [#allocation12], %s5504_s29 }
  0x63   : > { %s5555_s27 = scalar_lea.hbm %s7289_s3, %s7381_s28  ;;  %s389_s26 = sshll.u32 %s382_s23, 4  ;;  %s5559_s26 = int_to_ptr.vmem [resolvable:$true] %s389_s26 }
  0x64   : > { %s378_s2 = sand.u32 1, %s5330_s16   ;;  %s5222_s12 = scalar_lea.hbm %s5555_s27, 512 }
  0x65   : > { %s379_s15 = scalar_lea.sflag [#allocation13], %s378_s2  ;;  %p5223_p9 = scmp.ne.s32.totalorder %s5555_s27, %s5222_s12 }
  0x66   : > { %s5227_s18 = scalar_lea.hbm %s7289_s3, 1024  ;;  %p5228_p4 = scmp.lt.s32.totalorder %s5555_s27, %s7289_s3 }
  0x67   : > { %p5225_p13 = pnand %p5223_p9, %p5196_p3  ;;  %p5229_p6 = scmp.lt.s32.totalorder %s5227_s18, %s5222_s12 }
  0x69   : > { %p5226_p2 = pneg %p5225_p13  ;;  %p5230_p8 = por %p5229_p6, %p5228_p4 }
  0x6b   : > { %p5231_p12 = pnand %p5230_p8, %p5226_p2 }
  0x6d   : > { %5234 = shalt.err (!%p5231_p12)
}
  0x6e   : > { %s5235_s2 = scalar_lea.vmem %s5559_s26, 512  ;;  %s5342_s29 = smov [#allocation12]  }
  0x6f   : > { %p5236_p0 = scmp.ne.s32.totalorder %s5559_s26, %s5235_s2  ;;  %s5240_s11 = sshll.u32 %s5342_s29, 4  ;;  %s5241_s11 = int_to_ptr.vmem [resolvable:$false] %s5240_s11 }
  0x70   : > { %s5242_s23 = scalar_lea.vmem %s5241_s11, 1024  ;;  %p5243_p1 = scmp.lt.s32.totalorder %s5559_s26, %s5241_s11 }
  0x71   : > { %p5238_p10 = pnand %p5236_p0, %p5196_p3  ;;  %p5244_p9 = scmp.lt.s32.totalorder %s5242_s23, %s5235_s2 }
  0x73   : > { %p5239_p7 = pneg %p5238_p10  ;;  %p5245_p13 = por %p5244_p9, %p5243_p1 }
  0x75   : > { %p5246_p4 = pnand %p5245_p13, %p5239_p7 }
  0x77   : > { %5249 = shalt.err (!%p5246_p4)
}
  0x78   : > { %4872 = dma.hbm_to_vmem [thread:$0]  (!%p5514_p11), %s5555_s27, 512, %s5559_s26, %s379_s15, %s5340_s4, %s5340_s4, %s5341_s6  }
  0x79   : > { %p7382_p3 = scmp.ne.s32.totalorder %s7370_s21, 0 }
  0x7b   : > { %401 = sbr.rel (%p7382_p3) target bundleno = 1788 (0x6fc), region = 60 }
  0x80   : > { %p7383_p2 = scmp.eq.s32.totalorder %s5425_s17, 0 }
  0x82   : > { %5293 = dma.done.wait (%p7383_p2), [#allocation10], 16   ;;  %p7384_p6 = pmov %p7383_p2 }
  0x83   : > { %s5593_s12 = sand.u32 1, %s5322_s14   ;;  %p7385_p11 = scmp.ne.s32.totalorder %s7368_s19, 0 }
  0x84   : > { %5295 = vsyncadd (%p7384_p6), [#allocation10], 4294967280  ;;  %s5596_s22 = sshll.u32 %s5593_s12, 5  ;;  %s408_s0 = scalar_lea.sflag [#allocation8], %s5593_s12 }
  0x85   : > { %s5600_s15 = scalar_lea.vmem [#allocation11], %s5596_s22 }
  0x86   : > { %5297 = dma.done.wait (%p7385_p11), %s408_s0, 512  }
  0x87   : > { %5299 = vsyncadd (%p7385_p11), %s408_s0, 4294966784  ;;  %s416_s21 = sand.u32 1, %s5425_s17   ;;  %s5608_s6 = scalar_lea.vmem [#allocation12], %s5596_s22 }
  0x88   : > { %s417_s4 = scalar_lea.sflag [#allocation13], %s416_s21 }
  0x89   : > { %5301 = dma.done.wait (%p7385_p11), %s417_s4, 512  }
  0x8a   : > { %5303 = vsyncadd (%p7385_p11), %s417_s4, 4294966784  ;;  %p7386_p8 = pmov %p7383_p2 }
  0x8b   : > { %p7387_p12 = pmov %p7383_p2 }
  0x8c   : > { %5305 = dma.done.wait (%p7386_p8), [#allocation13], 6144  }
  0x8d   : > { %5307 = vsyncadd (%p7387_p12), [#allocation13], 4294961152  ;;  %p7388_p0 = pmov %p7383_p2 }
  0x8f   : > { %5309 = dma.done.wait (%p7388_p0), [#allocation16], 2048   ;;  %p7389_p10 = pmov %p7388_p0 }
  0x91   : > { %5311 = vsyncadd (%p7389_p10), [#allocation16], 4294965248 }
  0x92   : > { %433 = sfence }
  0x93   : > { %p476_p7 = scmp.lt.s32.totalorder %s5425_s17, 1  ;;  %s481_s19 = sld [smem:[#allocation7]]  ;;  %v588_v0 = vld [vmem:[#allocation14 + $0x128] sm:$0xff]  ;;  %v7304_v1 = vmov 0.0   ;;  %v492_v2 = vld [vmem:[%s5600_s15] sm:$0xff]  ;;  %v590_v4 = vld [vmem:[#allocation14 + $0x138] sm:$0xff] }
  0x94   : > { %s5623_s27 = sld [smem:[#allocation7 + $0x1]]  ;;  %752 = vmatprep.mubr.f32.mxu0 %v7304_v1  ;;  %865 = vmatprep.mubr.f32.mxu1 %v7304_v1  ;;  %v493_v3 = vld [vmem:[%s5600_s15 + $0x8] sm:$0xff]  ;;  %v587_v5 = vld [vmem:[#allocation14 + $0x120] sm:$0xff]  ;;  %v589_v6 = vld [vmem:[#allocation14 + $0x130] sm:$0xff]  ;;  %vm663_vm0 = vcmask 261120   ;;  %vm1430_vm1 = vcmask 7168  }
  0x95   : > { %s477_s26 = scalar_select %p476_p7, %s5425_s17, 1  ;;  %712 = vmatprep.subr.mxu0 %v588_v0  ;;  %v494_v7 = vld [vmem:[%s5600_s15 + $0x10] sm:$0xff]  ;;  %825 = vmatprep.subr.mxu1 %v590_v4  ;;  %v576_v8 = vld [vmem:[#allocation14 + $0xc8] sm:$0xff]  ;;  %v578_v9 = vld [vmem:[#allocation14 + $0xd8] sm:$0xff]  ;;  %vm2075_vm2 = vcmask 523264  }
  0x96   : > { %s5629_s30 = sld [smem:[#allocation7 + $0x2]]  ;;  %713 = vmatpush1.msra.mxu0 %v587_v5  ;;  %v575_v10 = vld [vmem:[#allocation14 + $0xc0] sm:$0xff]  ;;  %826 = vmatpush1.msra.mxu1 %v589_v6  ;;  %v577_v12 = vld [vmem:[#allocation14 + $0xd0] sm:$0xff]  ;;  %v564_v13 = vld [vmem:[#allocation14 + $0x68] sm:$0xff]  ;;  %s475_s28 = scalar_lea.vmem [#allocation17], %s5596_s22 }
  0x97   : > { %s4484_s18 = sshll.u32 %s477_s26, 5  ;;  %v506_v11 = vld [vmem:[%s5608_s6] sm:$0xff]  ;;  %714 = vmatprep.subr.mxu0 %v576_v8  ;;  %v566_v14 = vld [vmem:[#allocation14 + $0x78] sm:$0xff]  ;;  %827 = vmatprep.subr.mxu1 %v578_v9  ;;  %v507_v22 = vld [vmem:[%s5608_s6 + $0x8] sm:$0xff]  ;;  %s4235_s24 = sshll.u32 %s475_s28, 4  ;;  %s7239_s24 = int_to_ptr.vmem [resolvable:$true] %s4235_s24 }
  0x98   : > { %s5636_s2 = scalar_lea.vmem %s7287_s1, %s4484_s18  ;;  %715 = vmatpush1.msra.mxu0 %v575_v10  ;;  %828 = vmatpush1.msra.mxu1 %v577_v12  ;;  %v563_v23 = vld [vmem:[#allocation14 + $0x60] sm:$0xff]  ;;  %v565_v24 = vld [vmem:[#allocation14 + $0x70] sm:$0xff]  ;;  %v552_v27 = vld [vmem:[#allocation14 + $0x8] sm:$0xff]  ;;  %s4485_s18 = sshll.u32 %s5425_s17, 9 }
  0x99   : > { %v482_v15 = vld [vmem:[%s5636_s2] sm:$0xff]  ;;  %v486_v16 = vstv %s481_s19  ;;  %v483_v17 = vld [vmem:[%s5636_s2 + $0x8] sm:$0xff]  ;;  %v484_v18 = vld [vmem:[%s5636_s2 + $0x10] sm:$0xff]  ;;  %716 = vmatprep.subr.mxu0 %v564_v13  ;;  %829 = vmatprep.subr.mxu1 %v566_v14  ;;  %s7237_s11 = scalar_lea.hbm %s7296_s10, %s4485_s18  ;;  %s4222_s17 = scalar_lea.sflag [#allocation9], %s5593_s12 }
  0x9a   : > { %v487_v19 = vmul.f32 %v486_v16, %v482_v15  ;;  %v496_v20 = vstv %s5623_s27  ;;  %v488_v21 = vmul.f32 %v486_v16, %v483_v17  ;;  %v554_v28 = vld [vmem:[#allocation14 + $0x18] sm:$0xff]  ;;  %v489_v30 = vmul.f32 %v486_v16, %v484_v18  ;;  %717 = vmatpush1.msra.mxu0 %v563_v23  ;;  %830 = vmatpush1.msra.mxu1 %v565_v24  ;;  %v551_v32 = vld [vmem:[#allocation14] sm:$0xff]  ;;  %v553_v33 = vld [vmem:[#allocation14 + $0x10] sm:$0xff]  ;;  %s5250_s22 = scalar_lea.vmem %s7239_s24, 512  ;;  %s5346_s23 = smov [#allocation17]  }
  0x9b   : > { %v497_v25 = vmul.f32 %v496_v20, %v492_v2  ;;  %v498_v26 = vmul.f32 %v496_v20, %v493_v3  ;;  %v499_v31 = vmul.f32 %v496_v20, %v494_v7  ;;  %v485_v38 = vld [vmem:[%s5636_s2 + $0x18] sm:$0xff]  ;;  %718 = vmatprep.subr.mxu0 %v552_v27  ;;  %v508_v39 = vld [vmem:[%s5608_s6 + $0x10] sm:$0xff]  ;;  %831 = vmatprep.subr.mxu1 %v554_v28  ;;  %v592_v41 = vld [vmem:[#allocation14 + $0x148] sm:$0xff]  ;;  %p5251_p1 = scmp.ne.s32.totalorder %s7239_s24, %s5250_s22  ;;  %s5254_s0 = sshll.u32 %s5346_s23, 4  ;;  %s5255_s0 = int_to_ptr.vmem [resolvable:$false] %s5254_s0 }
  0x9c   : > { %v510_v29 = vstv %s5629_s30  ;;  %v495_v40 = vld [vmem:[%s5600_s15 + $0x18] sm:$0xff]  ;;  %719 = vmatpush1.msra.mxu0 %v551_v32  ;;  %832 = vmatpush1.msra.mxu1 %v553_v33  ;;  %v490_v43 = vmul.f32 %v486_v16, %v485_v38  ;;  %v591_v54 = vld [vmem:[#allocation14 + $0x140] sm:$0xff]  ;;  %v580_v56 = vld [vmem:[#allocation14 + $0xe8] sm:$0xff]  ;;  %s5256_s15 = scalar_lea.vmem %s5255_s0, 1024  ;;  %p5257_p4 = scmp.lt.s32.totalorder %s7239_s24, %s5255_s0 }
  0x9d   : > { %v501_v34 = vadd.f32 %v497_v25, %v487_v19  ;;  %v511_v35 = vmul.f32 %v510_v29, %v506_v11  ;;  %v502_v36 = vadd.f32 %v498_v26, %v488_v21  ;;  %v512_v37 = vmul.f32 %v510_v29, %v507_v22  ;;  %938 = vmatprep.subr.mxu0 %v592_v41  ;;  %v509_v48 = vld [vmem:[%s5608_s6 + $0x18] sm:$0xff]  ;;  %v579_v57 = vld [vmem:[#allocation14 + $0xe0] sm:$0xff]  ;;  %v593_v58 = vld [vmem:[#allocation14 + $0x150] sm:$0xff]  ;;  %p5252_p9 = pnand %p5251_p1, %p5498_p5  ;;  %p5258_p3 = scmp.lt.s32.totalorder %s5256_s15, %s5250_s22 }
  0x9e   : > { %v503_v45 = vadd.f32 %v499_v31, %v489_v30  ;;  %v513_v46 = vmul.f32 %v510_v29, %v508_v39  ;;  %v500_v47 = vmul.f32 %v496_v20, %v495_v40  ;;  %v514_v51 = vmul.f32 %v510_v29, %v509_v48  ;;  %v594_v53 = vld [vmem:[#allocation14 + $0x158] sm:$0xff]  ;;  %v568_v60 = vld [vmem:[#allocation14 + $0x88] sm:$0xff]  ;;  %v567_v62 = vld [vmem:[#allocation14 + $0x80] sm:$0xff] }
  0x9f   : > { %v5648_v42 = vadd.f32 %v511_v35, %v501_v34  ;;  %v5651_v44 = vadd.f32 %v512_v37, %v502_v36  ;;  %1051 = vmatprep.subr.mxu1 %v594_v53  ;;  %v582_v61 = vld [vmem:[#allocation14 + $0xf8] sm:$0xff]  ;;  %v581_v63 = vld [vmem:[#allocation14 + $0xf0] sm:$0xff]  ;;  %v556_v2 = vld [vmem:[#allocation14 + $0x28] sm:$0xff]  ;;  %v603_v29 = vlaneseq  ;;  %p5253_p13 = pneg %p5252_p9  ;;  %p5259_p2 = por %p5258_p3, %p5257_p4 }
  0xa0   : > { %v5655_v49 = vadd.f32 %v513_v46, %v503_v45  ;;  %v504_v50 = vadd.f32 %v500_v47, %v490_v43  ;;  %v570_v3 = vld [vmem:[#allocation14 + $0x98] sm:$0xff]  ;;  %v555_v4 = vld [vmem:[#allocation14 + $0x20] sm:$0xff]  ;;  %v569_v5 = vld [vmem:[#allocation14 + $0x90] sm:$0xff] }
  0xa1   : > { %7390 = vst [vmem:[#allocation27_spill] sm:$0xff] %v5648_v42  ;;  %519 = vxpose.xlu0.b32.start [1/4] (short) (narrow) %v5648_v42, 64  ;;  %7391 = vst [vmem:[#allocation28_spill] sm:$0xff] %v5651_v44  ;;  %v558_v7 = vld [vmem:[#allocation14 + $0x38] sm:$0xff]  ;;  %v596_v8 = vld [vmem:[#allocation14 + $0x168] sm:$0xff]  ;;  %v5819_v30 = vshrl.u32 %v603_v29, 7  ;;  %p5260_p6 = pnand %p5259_p2, %p5253_p13 }
  0xa2   : > { %7392 = vst [vmem:[#allocation29_spill] sm:$0xff] %v5655_v49  ;;  %v5658_v52 = vadd.f32 %v514_v51, %v504_v50  ;;  %v557_v9 = vld [vmem:[#allocation14 + $0x30] sm:$0xff]  ;;  %v598_v11 = vld [vmem:[#allocation14 + $0x178] sm:$0xff]  ;;  %v595_v15 = vld [vmem:[#allocation14 + $0x160] sm:$0xff] }
  0xa3   : > { %v597_v16 = vld [vmem:[#allocation14 + $0x170] sm:$0xff]  ;;  %v584_v17 = vld [vmem:[#allocation14 + $0x108] sm:$0xff]  ;;  %v586_v18 = vld [vmem:[#allocation14 + $0x118] sm:$0xff]  ;;  %v7307_v31 = vsub.s32 0, %v5819_v30  ;;  %v7306_v33 = vsub.s32 1, %v5819_v30 }
  0xa4   : > { %7393 = vst [vmem:[#allocation30_spill] sm:$0xff] %v5658_v52  ;;  %v583_v19 = vld [vmem:[#allocation14 + $0x100] sm:$0xff]  ;;  %v585_v20 = vld [vmem:[#allocation14 + $0x110] sm:$0xff]  ;;  %v572_v21 = vld [vmem:[#allocation14 + $0xa8] sm:$0xff] }
  0xa5   : > { %520 = vxpose.xlu0.b32.cont [2/4] (short) (narrow) %v5651_v44, 64  ;;  %v574_v22 = vld [vmem:[#allocation14 + $0xb8] sm:$0xff]  ;;  %v571_v23 = vld [vmem:[#allocation14 + $0xa0] sm:$0xff]  ;;  %v573_v24 = vld [vmem:[#allocation14 + $0xb0] sm:$0xff]  ;;  %v7312_v44 = vsub.s32 2, %v5819_v30 }
  0xa6   : > { %v560_v25 = vld [vmem:[#allocation14 + $0x48] sm:$0xff]  ;;  %v562_v26 = vld [vmem:[#allocation14 + $0x58] sm:$0xff]  ;;  %v559_v27 = vld [vmem:[#allocation14 + $0x40] sm:$0xff] }
  0xa7   : > { %v561_v28 = vld [vmem:[#allocation14 + $0x50] sm:$0xff]  ;;  %v5825_v32 = vld [vmem:[%s7291_s5] sm:$0xff]  ;;  %v5943_v42 = vld [vmem:[%s7291_s5 + $0x8] sm:$0xf] }
  0xa8   : > { %v606_v34 = vrot.slane %v5825_v32, %v7307_v31  ;;  %v610_v35 = vrot.slane %v5825_v32, %v7306_v33  ;;  %v625_v31 = vsub.s32 5, %v5819_v30 }
  0xa9   : > { %521 = vxpose.xlu0.b32.cont [3/4] (short) (narrow) %v5655_v49, 64 }
  0xad   : > { %522 = vxpose.xlu0.b32.end [4/4] (short) (narrow) %v5658_v52, 64 }
 0x11d   : > { %v5661_v55 = vpop.trf.xlu0 }
 0x11e   : > { %4397 = vmatmul.mubr.msk.f32.vlgmr.msra.gmra.mxu0 %vm663_vm0, %v5661_v55  ;;  %4405 = vmatmul.mubr.msk.f32.vlgmr.msra.gmra.mxu1 %vm663_vm0, %v5661_v55 }
 0x11f   : > { %939 = vmatpush1.msra.mxu0 %v591_v54  ;;  %758 = vmatprep.mubr.f32.mxu0 %v7304_v1 }
 0x120   : > { %871 = vmatprep.mubr.f32.mxu1 %v7304_v1  ;;  %940 = vmatprep.subr.mxu0 %v580_v56 }
 0x121   : > { %v5669_v59 = vpop.trf.xlu0  ;;  %941 = vmatpush1.msra.mxu0 %v579_v57  ;;  %1052 = vmatpush1.msra.mxu1 %v593_v58 }
 0x122   : > { %4398 = vmatmul.mubr.msk.f32.gmra.mxu0 %vm663_vm0, %v5669_v59  ;;  %4406 = vmatmul.mubr.msk.f32.gmra.mxu1 %vm663_vm0, %v5669_v59 }
 0x123   : > { %764 = vmatprep.mubr.f32.mxu0 %v7304_v1  ;;  %877 = vmatprep.mubr.f32.mxu1 %v7304_v1 }
 0x124   : > { %942 = vmatprep.subr.mxu0 %v568_v60  ;;  %1053 = vmatprep.subr.mxu1 %v582_v61 }
 0x125   : > { %v5677_v0 = vpop.trf.xlu0  ;;  %943 = vmatpush1.msra.mxu0 %v567_v62  ;;  %1054 = vmatpush1.msra.mxu1 %v581_v63 }
 0x126   : > { %4399 = vmatmul.mubr.msk.f32.gmra.mxu0 %vm663_vm0, %v5677_v0  ;;  %4407 = vmatmul.mubr.msk.f32.gmra.mxu1 %vm663_vm0, %v5677_v0 }
 0x127   : > { %770 = vmatprep.mubr.f32.mxu0 %v7304_v1  ;;  %883 = vmatprep.mubr.f32.mxu1 %v7304_v1 }
 0x128   : > { %944 = vmatprep.subr.mxu0 %v556_v2  ;;  %1055 = vmatprep.subr.mxu1 %v570_v3 }
 0x129   : > { %v5685_v6 = vpop.trf.xlu0  ;;  %945 = vmatpush1.msra.mxu0 %v555_v4  ;;  %1056 = vmatpush1.msra.mxu1 %v569_v5 }
 0x12a   : > { %4400 = vmatmul.mubr.msk.f32.gmra.mxu0 %vm663_vm0, %v5685_v6  ;;  %4408 = vmatmul.mubr.msk.f32.gmra.mxu1 %vm663_vm0, %v5685_v6 }
 0x12b   : > { %776 = vmatprep.mubr.f32.mxu0 %v7304_v1  ;;  %889 = vmatprep.mubr.f32.mxu1 %v7304_v1 }
 0x12c   : > { %1057 = vmatprep.subr.mxu1 %v558_v7  ;;  %1164 = vmatprep.subr.mxu0 %v596_v8 }
 0x12d   : > { %v5693_v10 = vpop.trf.xlu0  ;;  %1058 = vmatpush1.msra.mxu1 %v557_v9 }
 0x12e   : > { %4401 = vmatmul.mubr.msk.f32.gmra.mxu0 %vm663_vm0, %v5693_v10  ;;  %4409 = vmatmul.mubr.msk.f32.gmra.mxu1 %vm663_vm0, %v5693_v10 }
 0x12f   : > { %782 = vmatprep.mubr.f32.mxu0 %v7304_v1  ;;  %895 = vmatprep.mubr.f32.mxu1 %v7304_v1 }
 0x130   : > { %1277 = vmatprep.subr.mxu1 %v598_v11 }
 0x131   : > { %v5701_v12 = vpop.trf.xlu0 }
 0x132   : > { %4402 = vmatmul.mubr.msk.f32.gmra.mxu0 %vm663_vm0, %v5701_v12  ;;  %4410 = vmatmul.mubr.msk.f32.gmra.mxu1 %vm663_vm0, %v5701_v12 }
 0x133   : > { %788 = vmatprep.mubr.f32.mxu0 %v7304_v1  ;;  %901 = vmatprep.mubr.f32.mxu1 %v7304_v1 }
 0x135   : > { %v5709_v13 = vpop.trf.xlu0 }
 0x136   : > { %4403 = vmatmul.mubr.msk.f32.gmra.mxu0 %vm663_vm0, %v5709_v13  ;;  %4411 = vmatmul.mubr.msk.f32.gmra.mxu1 %vm663_vm0, %v5709_v13 }
 0x137   : > { %794 = vmatprep.mubr.f32.mxu0 %v7304_v1  ;;  %907 = vmatprep.mubr.f32.mxu1 %v7304_v1 }
 0x139   : > { %v5717_v14 = vpop.trf.xlu0 }
 0x13a   : > { %4404 = vmatmul.mubr.msk.f32.gmra.mxu0 %vm663_vm0, %v5717_v14  ;;  %4412 = vmatmul.mubr.msk.f32.gmra.mxu1 %vm663_vm0, %v5717_v14 }
 0x13b   : > { %978 = vmatprep.mubr.f32.mxu0 %v7304_v1  ;;  %1091 = vmatprep.mubr.f32.mxu1 %v7304_v1 }
 0x13e   : > { %4413 = vmatmul.mubr.msk.f32.vlgmr.msra.gmra.mxu0 %vm663_vm0, %v5661_v55  ;;  %4421 = vmatmul.mubr.msk.f32.vlgmr.msra.gmra.mxu1 %vm663_vm0, %v5661_v55 }
 0x13f   : > { %984 = vmatprep.mubr.f32.mxu0 %v7304_v1  ;;  %1097 = vmatprep.mubr.f32.mxu1 %v7304_v1 }
 0x140   : > { %1165 = vmatpush1.msra.mxu0 %v595_v15  ;;  %1278 = vmatpush1.msra.mxu1 %v597_v16 }
 0x141   : > { %1166 = vmatprep.subr.mxu0 %v584_v17  ;;  %1279 = vmatprep.subr.mxu1 %v586_v18 }
 0x142   : > { %4414 = vmatmul.mubr.msk.f32.gmra.mxu0 %vm663_vm0, %v5669_v59  ;;  %4422 = vmatmul.mubr.msk.f32.gmra.mxu1 %vm663_vm0, %v5669_v59 }
 0x143   : > { %990 = vmatprep.mubr.f32.mxu0 %v7304_v1  ;;  %1103 = vmatprep.mubr.f32.mxu1 %v7304_v1 }
 0x144   : > { %1167 = vmatpush1.msra.mxu0 %v583_v19  ;;  %1280 = vmatpush1.msra.mxu1 %v585_v20 }
 0x145   : > { %1168 = vmatprep.subr.mxu0 %v572_v21  ;;  %1281 = vmatprep.subr.mxu1 %v574_v22 }
 0x146   : > { %4415 = vmatmul.mubr.msk.f32.gmra.mxu0 %vm663_vm0, %v5677_v0  ;;  %4423 = vmatmul.mubr.msk.f32.gmra.mxu1 %vm663_vm0, %v5677_v0 }
 0x147   : > { %996 = vmatprep.mubr.f32.mxu0 %v7304_v1  ;;  %1109 = vmatprep.mubr.f32.mxu1 %v7304_v1 }
 0x148   : > { %1169 = vmatpush1.msra.mxu0 %v571_v23  ;;  %1282 = vmatpush1.msra.mxu1 %v573_v24 }
 0x149   : > { %1170 = vmatprep.subr.mxu0 %v560_v25  ;;  %1283 = vmatprep.subr.mxu1 %v562_v26 }
 0x14a   : > { %4416 = vmatmul.mubr.msk.f32.gmra.mxu0 %vm663_vm0, %v5685_v6  ;;  %4424 = vmatmul.mubr.msk.f32.gmra.mxu1 %vm663_vm0, %v5685_v6 }
 0x14b   : > { %1002 = vmatprep.mubr.f32.mxu0 %v7304_v1  ;;  %1115 = vmatprep.mubr.f32.mxu1 %v7304_v1 }
 0x14c   : > { %1171 = vmatpush1.msra.mxu0 %v559_v27  ;;  %1284 = vmatpush1.msra.mxu1 %v561_v28 }
 0x14e   : > { %4417 = vmatmul.mubr.msk.f32.gmra.mxu0 %vm663_vm0, %v5693_v10  ;;  %4425 = vmatmul.mubr.msk.f32.gmra.mxu1 %vm663_vm0, %v5693_v10 }
 0x14f   : > { %1008 = vmatprep.mubr.f32.mxu0 %v7304_v1  ;;  %1121 = vmatprep.mubr.f32.mxu1 %v7304_v1 }
 0x152   : > { %4418 = vmatmul.mubr.msk.f32.gmra.mxu0 %vm663_vm0, %v5701_v12  ;;  %4426 = vmatmul.mubr.msk.f32.gmra.mxu1 %vm663_vm0, %v5701_v12 }
 0x153   : > { %1014 = vmatprep.mubr.f32.mxu0 %v7304_v1  ;;  %1127 = vmatprep.mubr.f32.mxu1 %v7304_v1 }
 0x156   : > { %4419 = vmatmul.mubr.msk.f32.gmra.mxu0 %vm663_vm0, %v5709_v13  ;;  %4427 = vmatmul.mubr.msk.f32.gmra.mxu1 %vm663_vm0, %v5709_v13 }
 0x157   : > { %1020 = vmatprep.mubr.f32.mxu0 %v7304_v1  ;;  %1133 = vmatprep.mubr.f32.mxu1 %v7304_v1 }
 0x15a   : > { %4420 = vmatmul.mubr.msk.f32.gmra.mxu0 %vm663_vm0, %v5717_v14  ;;  %4428 = vmatmul.mubr.msk.f32.gmra.mxu1 %vm663_vm0, %v5717_v14 }
 0x15b   : > { %1204 = vmatprep.mubr.f32.mxu0 %v7304_v1  ;;  %1317 = vmatprep.mubr.f32.mxu1 %v7304_v1 }
 0x15e   : > { %4429 = vmatmul.mubr.msk.f32.vlgmr.msra.gmra.mxu0 %vm663_vm0, %v5661_v55  ;;  %4437 = vmatmul.mubr.msk.f32.vlgmr.msra.gmra.mxu1 %vm663_vm0, %v5661_v55 }
 0x15f   : > { %1210 = vmatprep.mubr.f32.mxu0 %v7304_v1  ;;  %1323 = vmatprep.mubr.f32.mxu1 %v7304_v1 }
 0x162   : > { %4430 = vmatmul.mubr.msk.f32.gmra.mxu0 %vm663_vm0, %v5669_v59  ;;  %4438 = vmatmul.mubr.msk.f32.gmra.mxu1 %vm663_vm0, %v5669_v59 }
 0x163   : > { %1216 = vmatprep.mubr.f32.mxu0 %v7304_v1  ;;  %1329 = vmatprep.mubr.f32.mxu1 %v7304_v1 }
 0x166   : > { %4431 = vmatmul.mubr.msk.f32.gmra.mxu0 %vm663_vm0, %v5677_v0  ;;  %4439 = vmatmul.mubr.msk.f32.gmra.mxu1 %vm663_vm0, %v5677_v0 }
 0x167   : > { %1222 = vmatprep.mubr.f32.mxu0 %v7304_v1  ;;  %1335 = vmatprep.mubr.f32.mxu1 %v7304_v1 }
 0x16a   : > { %4432 = vmatmul.mubr.msk.f32.gmra.mxu0 %vm663_vm0, %v5685_v6  ;;  %4440 = vmatmul.mubr.msk.f32.gmra.mxu1 %vm663_vm0, %v5685_v6 }
 0x16b   : > { %1228 = vmatprep.mubr.f32.mxu0 %v7304_v1  ;;  %1341 = vmatprep.mubr.f32.mxu1 %v7304_v1 }
 0x16e   : > { %4433 = vmatmul.mubr.msk.f32.gmra.mxu0 %vm663_vm0, %v5693_v10  ;;  %4441 = vmatmul.mubr.msk.f32.gmra.mxu1 %vm663_vm0, %v5693_v10 }
 0x16f   : > { %1234 = vmatprep.mubr.f32.mxu0 %v7304_v1  ;;  %1347 = vmatprep.mubr.f32.mxu1 %v7304_v1 }
 0x172   : > { %4434 = vmatmul.mubr.msk.f32.gmra.mxu0 %vm663_vm0, %v5701_v12  ;;  %4442 = vmatmul.mubr.msk.f32.gmra.mxu1 %vm663_vm0, %v5701_v12 }
 0x173   : > { %1240 = vmatprep.mubr.f32.mxu0 %v7304_v1  ;;  %1353 = vmatprep.mubr.f32.mxu1 %v7304_v1 }
 0x176   : > { %4435 = vmatmul.mubr.msk.f32.gmra.mxu0 %vm663_vm0, %v5709_v13  ;;  %4443 = vmatmul.mubr.msk.f32.gmra.mxu1 %vm663_vm0, %v5709_v13 }
 0x177   : > { %1246 = vmatprep.mubr.f32.mxu0 %v7304_v1  ;;  %1359 = vmatprep.mubr.f32.mxu1 %v7304_v1 }
 0x17a   : > { %4436 = vmatmul.mubr.msk.f32.gmra.mxu0 %vm663_vm0, %v5717_v14  ;;  %4444 = vmatmul.mubr.msk.f32.gmra.mxu1 %vm663_vm0, %v5717_v14 }
 0x1de   : > { %v754_v36 = vpop.f32.mrf.mxu0  ;;  %v5834_v37 = vpop.f32.mrf.mxu1 }
 0x1df   : > { %v755_v38 = vadd.f32 %v754_v36, %v606_v34 }
 0x1e0   : > { %v756_v39 = vpop.f32.mrf.mxu0  ;;  %v5836_v40 = vpop.f32.mrf.mxu1 }
 0x1e1   : > { %v757_v41 = vadd.f32 %v756_v39, %v610_v35  ;;  %4630 = vmatprep.mubr.f32.mxu0 %v755_v38 }
 0x1e2   : > { %v760_v43 = vpop.f32.mrf.mxu0  ;;  %v5838_v45 = vpop.f32.mrf.mxu1 }
 0x1e3   : > { %v5840_v46 = vadd.f32 %v760_v43, %v606_v34  ;;  %4658 = vmatprep.mubr.f32.mxu1 %v757_v41 }
 0x1e4   : > { %v762_v47 = vpop.f32.mrf.mxu0  ;;  %v5842_v48 = vpop.f32.mrf.mxu1 }
 0x1e5   : > { %7394 = vst [vmem:[#allocation31_spill] sm:$0xff] %v5842_v48  ;;  %v5844_v50 = vadd.f32 %v762_v47, %v610_v35 }
 0x1e6   : > { %v766_v51 = vpop.f32.mrf.mxu0  ;;  %v5846_v53 = vpop.f32.mrf.mxu1 }
 0x1e7   : > { %7395 = vst [vmem:[#allocation32_spill] sm:$0xff] %v5846_v53  ;;  %v5848_v54 = vadd.f32 %v766_v51, %v606_v34 }
 0x1e8   : > { %v768_v55 = vpop.f32.mrf.mxu0  ;;  %v5850_v56 = vpop.f32.mrf.mxu1 }
 0x1e9   : > { %7396 = vst [vmem:[#allocation33_spill] sm:$0xff] %v5850_v56  ;;  %v5852_v57 = vadd.f32 %v768_v55, %v610_v35 }
 0x1ea   : > { %v772_v58 = vpop.f32.mrf.mxu0  ;;  %v5854_v59 = vpop.f32.mrf.mxu1 }
 0x1eb   : > { %7397 = vst [vmem:[#allocation34_spill] sm:$0xff] %v5854_v59  ;;  %v5856_v60 = vadd.f32 %v772_v58, %v606_v34 }
 0x1ec   : > { %v774_v61 = vpop.f32.mrf.mxu0  ;;  %v5858_v62 = vpop.f32.mrf.mxu1 }
 0x1ed   : > { %7398 = vst [vmem:[#allocation35_spill] sm:$0xff] %v5858_v62  ;;  %v5860_v63 = vadd.f32 %v774_v61, %v610_v35 }
 0x1ee   : > { %v778_v0 = vpop.f32.mrf.mxu0  ;;  %v5862_v2 = vpop.f32.mrf.mxu1 }
 0x1ef   : > { %7399 = vst [vmem:[#allocation36_spill] sm:$0xff] %v5862_v2  ;;  %v5864_v3 = vadd.f32 %v778_v0, %v606_v34 }
 0x1f0   : > { %v780_v4 = vpop.f32.mrf.mxu0  ;;  %v5866_v5 = vpop.f32.mrf.mxu1 }
 0x1f1   : > { %7400 = vst [vmem:[#allocation37_spill] sm:$0xff] %v5866_v5  ;;  %v5868_v6 = vadd.f32 %v780_v4, %v610_v35  ;;  %v5959_v5 = vrot.slane %v5943_v42, %v7312_v44 }
 0x1f2   : > { %v784_v7 = vpop.f32.mrf.mxu0  ;;  %v5870_v8 = vpop.f32.mrf.mxu1 }
 0x1f3   : > { %7401 = vst [vmem:[#allocation38_spill] sm:$0xff] %v5870_v8  ;;  %v5872_v9 = vadd.f32 %v784_v7, %v606_v34 }
 0x1f4   : > { %v786_v10 = vpop.f32.mrf.mxu0  ;;  %v5874_v11 = vpop.f32.mrf.mxu1 }
 0x1f5   : > { %7402 = vst [vmem:[#allocation39_spill] sm:$0xff] %v5874_v11  ;;  %v5876_v12 = vadd.f32 %v786_v10, %v610_v35  ;;  %v7313_v11 = vsub.s32 3, %v5819_v30 }
 0x1f6   : > { %v790_v13 = vpop.f32.mrf.mxu0  ;;  %v5878_v14 = vpop.f32.mrf.mxu1 }
 0x1f7   : > { %7403 = vst [vmem:[#allocation40_spill] sm:$0xff] %v5878_v14  ;;  %v5880_v15 = vadd.f32 %v790_v13, %v606_v34  ;;  %v5953_v14 = vrot.slane %v5825_v32, %v625_v31  ;;  %v5968_v31 = vrot.slane %v5943_v42, %v7313_v11 }
 0x1f8   : > { %v792_v16 = vpop.f32.mrf.mxu0  ;;  %v5882_v17 = vpop.f32.mrf.mxu1 }
 0x1f9   : > { %7404 = vst [vmem:[#allocation41_spill] sm:$0xff] %v5882_v17  ;;  %v5884_v18 = vadd.f32 %v792_v16, %v610_v35 }
 0x1fa   : > { %v796_v19 = vpop.f32.mrf.mxu0  ;;  %v5886_v20 = vpop.f32.mrf.mxu1 }
 0x1fb   : > { %7405 = vst [vmem:[#allocation42_spill] sm:$0xff] %v5886_v20  ;;  %v5888_v21 = vadd.f32 %v796_v19, %v606_v34 }
 0x1fc   : > { %v798_v22 = vpop.f32.mrf.mxu0  ;;  %v5890_v23 = vpop.f32.mrf.mxu1 }
 0x1fd   : > { %7406 = vst [vmem:[#allocation43_spill] sm:$0xff] %v5890_v23  ;;  %v5892_v24 = vadd.f32 %v798_v22, %v610_v35  ;;  %v621_v22 = vsub.s32 4, %v5819_v30 }
 0x1fe   : > { %v5894_v25 = vpop.f32.mrf.mxu0  ;;  %v5896_v26 = vpop.f32.mrf.mxu1 }
 0x1ff   : > { %v5947_v23 = vrot.slane %v5825_v32, %v621_v22 }
 0x200   : > { %v5898_v27 = vpop.f32.mrf.mxu0  ;;  %v5900_v28 = vpop.f32.mrf.mxu1 }
 0x202   : > { %v5902_v29 = vpop.f32.mrf.mxu0  ;;  %v5904_v36 = vpop.f32.mrf.mxu1 }
 0x204   : > { %v5906_v38 = vpop.f32.mrf.mxu0  ;;  %v5908_v34 = vpop.f32.mrf.mxu1 }
 0x206   : > { %v5910_v39 = vpop.f32.mrf.mxu0  ;;  %v5912_v35 = vpop.f32.mrf.mxu1 }
 0x208   : > { %v5914_v41 = vpop.f32.mrf.mxu0  ;;  %v5916_v43 = vpop.f32.mrf.mxu1 }
 0x20a   : > { %v5918_v47 = vpop.f32.mrf.mxu0  ;;  %v5920_v51 = vpop.f32.mrf.mxu1 }
 0x20c   : > { %v5922_v55 = vpop.f32.mrf.mxu0  ;;  %v5924_v58 = vpop.f32.mrf.mxu1 }
 0x20e   : > { %v1004_v61 = vpop.f32.mrf.mxu0  ;;  %v5926_v0 = vpop.f32.mrf.mxu1 }
 0x210   : > { %v1006_v4 = vpop.f32.mrf.mxu0  ;;  %v5928_v7 = vpop.f32.mrf.mxu1 }
 0x212   : > { %v1010_v10 = vpop.f32.mrf.mxu0  ;;  %v5930_v13 = vpop.f32.mrf.mxu1 }
 0x213   : > { %v1011_v53 = vadd.f32 %v1010_v10, %v5947_v23 }
 0x214   : > { %v1012_v16 = vpop.f32.mrf.mxu0  ;;  %v5932_v19 = vpop.f32.mrf.mxu1 }
 0x216   : > { %v1016_v1 = vpop.f32.mrf.mxu0  ;;  %v5935_v33 = vpop.f32.mrf.mxu1 }
 0x217   : > { %v1017_v22 = vadd.f32 %v1016_v1, %v5947_v23 }
 0x218   : > { %v1018_v52 = vpop.f32.mrf.mxu0  ;;  %v5938_v49 = vpop.f32.mrf.mxu1 }
 0x219   : > { %v1019_v44 = vadd.f32 %v1018_v52, %v5953_v14 }
 0x21a   : > { %v1022_v20 = vpop.f32.mrf.mxu0  ;;  %v5949_v17 = vpop.f32.mrf.mxu1 }
 0x21b   : > { %v1023_v8 = vadd.f32 %v1022_v20, %v5947_v23 }
 0x21c   : > { %v1024_v62 = vpop.f32.mrf.mxu0  ;;  %v5961_v2 = vpop.f32.mrf.mxu1 }
 0x21d   : > { %v1025_v59 = vadd.f32 %v1024_v62, %v5953_v14  ;;  %4614 = vmatprep.subr.mxu0 %v1023_v8 }
 0x21e   : > { %v5970_v56 = vpop.f32.mrf.mxu0  ;;  %v1319_v20 = vpop.f32.mrf.mxu1  ;;  %4615 = vmatpush3.xpose.msra.mxu0 %v1023_v8  ;;  %v1013_v8 = vadd.f32 %v1012_v16, %v5953_v14 }
 0x21f   : > { %7407 = vst [vmem:[#allocation44_spill] sm:$0xff] %v5970_v56  ;;  %v5974_v48 = vadd.f32 %v1319_v20, %v5959_v5  ;;  %4616 = vmatprep.subr.mxu0 %v1017_v22  ;;  %4642 = vmatprep.subr.mxu1 %v1025_v59 }
 0x220   : > { %v5976_v1 = vpop.f32.mrf.mxu0  ;;  %v1321_v62 = vpop.f32.mrf.mxu1  ;;  %4643 = vmatpush3.xpose.msra.mxu1 %v1025_v59  ;;  %v1005_v59 = vadd.f32 %v1004_v61, %v5947_v23 }
 0x221   : > { %7408 = vst [vmem:[#allocation45_spill] sm:$0xff] %v5974_v48  ;;  %v5980_v11 = vadd.f32 %v1321_v62, %v5968_v31  ;;  %4644 = vmatprep.subr.mxu1 %v1019_v44 }
 0x222   : > { %v1325_v56 = vpop.f32.mrf.mxu1  ;;  %4617 = vmatpush3.xpose.msra.mxu0 %v1017_v22  ;;  %v5986_v20 = vpop.f32.mrf.mxu0  ;;  %v1007_v22 = vadd.f32 %v1006_v4, %v5953_v14 }
 0x223   : > { %7409 = vst [vmem:[#allocation46_spill] sm:$0xff] %v5980_v11  ;;  %v5984_v52 = vadd.f32 %v1325_v56, %v5959_v5  ;;  %4618 = vmatprep.subr.mxu0 %v1011_v53 }
 0x224   : > { %v1327_v48 = vpop.f32.mrf.mxu1  ;;  %4645 = vmatpush3.xpose.msra.mxu1 %v1019_v44  ;;  %v5996_v56 = vpop.f32.mrf.mxu0  ;;  %v999_v44 = vadd.f32 %v5918_v47, %v5947_v23  ;;  %v993_v47 = vadd.f32 %v5910_v39, %v5947_v23  ;;  %v987_v39 = vadd.f32 %v5902_v29, %v5947_v23  ;;  %v981_v29 = vadd.f32 %v5894_v25, %v5947_v23 }
 0x225   : > { %7410 = vst [vmem:[#allocation47_spill] sm:$0xff] %v5984_v52  ;;  %v5990_v10 = vadd.f32 %v1327_v48, %v5968_v31  ;;  %4646 = vmatprep.subr.mxu1 %v1013_v8 }
 0x226   : > { %v1331_v62 = vpop.f32.mrf.mxu1  ;;  %4619 = vmatpush3.xpose.msra.mxu0 %v1011_v53  ;;  %v1001_v53 = vadd.f32 %v5922_v55, %v5953_v14  ;;  %v995_v55 = vadd.f32 %v5914_v41, %v5953_v14  ;;  %v989_v41 = vadd.f32 %v5906_v38, %v5953_v14 }
 0x227   : > { %7411 = vst [vmem:[#allocation48_spill] sm:$0xff] %v5990_v10  ;;  %v5994_v16 = vadd.f32 %v1331_v62, %v5959_v5  ;;  %4620 = vmatprep.subr.mxu0 %v1005_v59  ;;  %v6008_v62 = vpop.f32.mrf.mxu0 }
 0x228   : > { %v1333_v11 = vpop.f32.mrf.mxu1  ;;  %4647 = vmatpush3.xpose.msra.mxu1 %v1013_v8 }
 0x229   : > { %v6001_v61 = vadd.f32 %v1333_v11, %v5968_v31  ;;  %4648 = vmatprep.subr.mxu1 %v1007_v22 }
 0x22a   : > { %v1337_v48 = vpop.f32.mrf.mxu1  ;;  %4621 = vmatpush3.xpose.msra.mxu0 %v1005_v59 }
 0x22b   : > { %7412 = vst [vmem:[#allocation49_spill] sm:$0xff] %v6001_v61  ;;  %v6006_v4 = vadd.f32 %v1337_v48, %v5959_v5  ;;  %4622 = vmatprep.subr.mxu0 %v999_v44  ;;  %v6020_v48 = vpop.f32.mrf.mxu0 }
 0x22c   : > { %v1339_v10 = vpop.f32.mrf.mxu1  ;;  %4649 = vmatpush3.xpose.msra.mxu1 %v1007_v22 }
 0x22d   : > { %v6013_v11 = vadd.f32 %v1339_v10, %v5968_v31  ;;  %4650 = vmatprep.subr.mxu1 %v1001_v53 }
 0x22e   : > { %v1343_v8 = vpop.f32.mrf.mxu1  ;;  %4623 = vmatpush3.xpose.msra.mxu0 %v999_v44  ;;  %v629_v44 = vsub.s32 6, %v5819_v30 }
 0x22f   : > { %7413 = vst [vmem:[#allocation50_spill] sm:$0xff] %v6013_v11  ;;  %v6018_v59 = vadd.f32 %v1343_v8, %v5959_v5  ;;  %4624 = vmatprep.subr.mxu0 %v993_v47  ;;  %v6033_v11 = vpop.f32.mrf.mxu0 }
 0x230   : > { %v1345_v61 = vpop.f32.mrf.mxu1  ;;  %4651 = vmatpush3.xpose.msra.mxu1 %v1001_v53  ;;  %v6042_v38 = vrot.slane %v5825_v32, %v629_v44 }
 0x231   : > { %v6025_v10 = vadd.f32 %v1345_v61, %v5968_v31  ;;  %4652 = vmatprep.subr.mxu1 %v995_v55  ;;  %v633_v61 = vsub.s32 7, %v5819_v30 }
 0x232   : > { %v1349_v22 = vpop.f32.mrf.mxu1  ;;  %4625 = vmatpush3.xpose.msra.mxu0 %v993_v47 }
 0x233   : > { %7414 = vst [vmem:[#allocation51_spill] sm:$0xff] %v6025_v10  ;;  %v6031_v8 = vadd.f32 %v1349_v22, %v5959_v5  ;;  %4626 = vmatprep.subr.mxu0 %v987_v39  ;;  %v983_v22 = vadd.f32 %v5898_v27, %v5953_v14  ;;  %v6052_v25 = vrot.slane %v5825_v32, %v633_v61  ;;  %v7421_v61 = vld [vmem:[#allocation33_spill] sm:$0xff] }
 0x234   : > { %v1351_v53 = vpop.f32.mrf.mxu1  ;;  %4653 = vmatpush3.xpose.msra.mxu1 %v995_v55  ;;  %v6049_v55 = vpop.f32.mrf.mxu0 }
 0x235   : > { %v6039_v47 = vadd.f32 %v1351_v53, %v5968_v31  ;;  %4654 = vmatprep.subr.mxu1 %v989_v41  ;;  %v1138_v14 = vadd.f32 %v5961_v2, %v6052_v25 }
 0x236   : > { %v1355_v10 = vpop.f32.mrf.mxu1  ;;  %4627 = vmatpush3.xpose.msra.mxu0 %v987_v39  ;;  %v1136_v39 = vadd.f32 %v5949_v17, %v6042_v38  ;;  %v6061_v27 = vpop.f32.mrf.mxu0  ;;  %v1132_v17 = vadd.f32 %v5938_v49, %v6052_v25  ;;  %v1126_v49 = vadd.f32 %v5932_v19, %v6052_v25 }
 0x237   : > { %v6047_v52 = vadd.f32 %v1355_v10, %v5959_v5  ;;  %4628 = vmatprep.subr.mxu0 %v981_v29  ;;  %v1130_v10 = vadd.f32 %v5935_v33, %v6042_v38  ;;  %v1124_v33 = vadd.f32 %v5930_v13, %v6042_v38 }
 0x238   : > { %v1357_v23 = vpop.f32.mrf.mxu1  ;;  %4655 = vmatpush3.xpose.msra.mxu1 %v989_v41  ;;  %v6070_v2 = vpop.f32.mrf.mxu0  ;;  %v7419_v41 = vld [vmem:[#allocation32_spill] sm:$0xff] }
 0x239   : > { %v6057_v44 = vadd.f32 %v1357_v23, %v5968_v31  ;;  %4656 = vmatprep.subr.mxu1 %v983_v22 }
 0x23a   : > { %4629 = vmatpush3.xpose.msra.mxu0 %v981_v29  ;;  %v7420_v29 = vld [vmem:[#allocation31_spill] sm:$0xff] }
 0x23b   : > { %4670 = vmatprep.subr.mxu0 %v1136_v39 }
 0x23c   : > { %4657 = vmatpush3.xpose.msra.mxu1 %v983_v22 }
 0x23d   : > { %4631 = vmatmul.mubr.f32.vlgmr.msra.gmra.mxu0 %v5840_v46  ;;  %4698 = vmatprep.subr.mxu1 %v1138_v14  ;;  %v7415_v46 = vsub.s32 2, %v5819_v30 }
 0x23e   : > { %4633 = vmatprep.mubr.f32.mxu0 %v5848_v54  ;;  %4671 = vmatpush3.xpose.msra.mxu0 %v1136_v39  ;;  %v6085_v54 = vpop.f32.mrf.mxu0  ;;  %v7423_v39 = vld [vmem:[#allocation36_spill] sm:$0xff] }
 0x23f   : > { %4659 = vmatmul.mubr.f32.vlgmr.msra.gmra.mxu1 %v5844_v50  ;;  %4672 = vmatprep.subr.mxu0 %v1130_v10  ;;  %v6083_v50 = vrot.slane %v5825_v32, %v7415_v46  ;;  %v7425_v46 = vld [vmem:[#allocation37_spill] sm:$0xff] }
 0x240   : > { %4661 = vmatprep.mubr.f32.mxu1 %v5852_v57  ;;  %4699 = vmatpush3.xpose.msra.mxu1 %v1138_v14  ;;  %v1118_v57 = vadd.f32 %v5926_v0, %v6042_v38  ;;  %v6102_v0 = vpop.f32.mrf.mxu0 }
 0x241   : > { %4634 = vmatmul.mubr.f32.gmra.mxu0 %v5856_v60  ;;  %4700 = vmatprep.subr.mxu1 %v1132_v17  ;;  %v7416_v60 = vsub.s32 3, %v5819_v30  ;;  %v880_v53 = vadd.f32 %v7419_v41, %v6083_v50  ;;  %v892_v14 = vadd.f32 %v7423_v39, %v6083_v50 }
 0x242   : > { %4636 = vmatprep.mubr.f32.mxu0 %v5864_v3  ;;  %4673 = vmatpush3.xpose.msra.mxu0 %v1130_v10  ;;  %v1120_v3 = vadd.f32 %v5928_v7, %v6052_v25 }
 0x243   : > { %4662 = vmatmul.mubr.f32.gmra.mxu1 %v5860_v63  ;;  %4674 = vmatprep.subr.mxu0 %v1124_v33  ;;  %v6094_v63 = vrot.slane %v5825_v32, %v7416_v60  ;;  %v1112_v32 = vadd.f32 %v5920_v51, %v6042_v38 }
 0x244   : > { %4664 = vmatprep.mubr.f32.mxu1 %v5868_v6  ;;  %4701 = vmatpush3.xpose.msra.mxu1 %v1132_v17  ;;  %v868_v6 = vadd.f32 %v5834_v37, %v6083_v50  ;;  %v1242_v37 = vpop.f32.mrf.mxu0  ;;  %v7424_v17 = vld [vmem:[#allocation35_spill] sm:$0xff] }
 0x245   : > { %4637 = vmatmul.mubr.f32.gmra.mxu0 %v5872_v9  ;;  %4702 = vmatprep.subr.mxu1 %v1126_v49  ;;  %v870_v9 = vadd.f32 %v5836_v40, %v6094_v63 }
 0x246   : > { %4639 = vmatprep.mubr.f32.mxu0 %v5880_v15  ;;  %4675 = vmatpush3.xpose.msra.mxu0 %v1124_v33  ;;  %v1106_v15 = vadd.f32 %v5912_v35, %v6042_v38  ;;  %v1244_v40 = vpop.f32.mrf.mxu0  ;;  %v1094_v35 = vadd.f32 %v5896_v26, %v6042_v38  ;;  %v888_v33 = vadd.f32 %v7424_v17, %v6094_v63 }
 0x247   : > { %4665 = vmatmul.mubr.f32.gmra.mxu1 %v5876_v12  ;;  %4676 = vmatprep.subr.mxu0 %v1118_v57  ;;  %v1114_v12 = vadd.f32 %v5924_v58, %v6052_v25  ;;  %v7417_v58 = vsub.s32 0, %v5819_v30 }
 0x248   : > { %4667 = vmatprep.mubr.f32.mxu1 %v5884_v18  ;;  %4703 = vmatpush3.xpose.msra.mxu1 %v1126_v49  ;;  %v1108_v18 = vadd.f32 %v5916_v43, %v6052_v25  ;;  %v1248_v51 = vpop.f32.mrf.mxu0  ;;  %v1096_v43 = vadd.f32 %v5900_v28, %v6052_v25  ;;  %v874_v28 = vadd.f32 %v5838_v45, %v6083_v50  ;;  %v7422_v45 = vld [vmem:[#allocation34_spill] sm:$0xff] }
 0x249   : > { %4640 = vmatmul.mubr.f32.gmra.mxu0 %v5888_v21  ;;  %4704 = vmatprep.subr.mxu1 %v1120_v3  ;;  %v1100_v21 = vadd.f32 %v5904_v36, %v6042_v38  ;;  %v6128_v36 = vrot.slane %v5943_v42, %v7417_v58  ;;  %v882_v38 = vadd.f32 %v7421_v61, %v6094_v63 }
 0x24a   : > { %4677 = vmatpush3.xpose.msra.mxu0 %v1118_v57  ;;  %4686 = vmatprep.mubr.f32.mxu0 %v868_v6  ;;  %v1250_v7 = vpop.f32.mrf.mxu0  ;;  %v886_v22 = vadd.f32 %v7422_v45, %v6083_v50  ;;  %v7426_v57 = vld [vmem:[#allocation38_spill] sm:$0xff]  ;;  %v7427_v6 = vld [vmem:[#allocation40_spill] sm:$0xff] }
 0x24b   : > { %4668 = vmatmul.mubr.f32.gmra.mxu1 %v5892_v24  ;;  %4678 = vmatprep.subr.mxu0 %v1112_v32  ;;  %v1102_v24 = vadd.f32 %v5908_v34, %v6052_v25  ;;  %v7418_v34 = vsub.s32 1, %v5819_v30  ;;  %v1249_v26 = vadd.f32 %v1248_v51, %v6128_v36  ;;  %v876_v30 = vadd.f32 %v7420_v29, %v6094_v63  ;;  %v7432_v51 = vld [vmem:[#allocation44_spill] sm:$0xff] }
 0x24c   : > { %4705 = vmatpush3.xpose.msra.mxu1 %v1120_v3  ;;  %4714 = vmatprep.mubr.f32.mxu1 %v870_v9  ;;  %v1237_v23 = vadd.f32 %v6085_v54, %v6128_v36  ;;  %v1231_v10 = vadd.f32 %v6061_v27, %v6128_v36  ;;  %v894_v54 = vadd.f32 %v7425_v46, %v6094_v63  ;;  %v7428_v9 = vld [vmem:[#allocation39_spill] sm:$0xff] }
 0x24d   : > { %4706 = vmatprep.subr.mxu1 %v1114_v12  ;;  %v6133_v13 = vrot.slane %v5943_v42, %v7418_v34  ;;  %v1243_v42 = vadd.f32 %v1242_v37, %v6128_v36  ;;  %v898_v60 = vadd.f32 %v7426_v57, %v6083_v50  ;;  %v1225_v27 = vadd.f32 %v6033_v11, %v6128_v36 }
 0x24e   : > { %4679 = vmatpush3.xpose.msra.mxu0 %v1112_v32  ;;  %v1219_v32 = vadd.f32 %v6008_v62, %v6128_v36  ;;  %v1213_v62 = vadd.f32 %v5986_v20, %v6128_v36 }
 0x24f   : > { %4680 = vmatprep.subr.mxu0 %v1106_v15  ;;  %v1251_v19 = vadd.f32 %v1250_v7, %v6133_v13  ;;  %v1245_v25 = vadd.f32 %v1244_v40, %v6133_v13  ;;  %v1239_v49 = vadd.f32 %v6102_v0, %v6133_v13  ;;  %v1233_v3 = vadd.f32 %v6070_v2, %v6133_v13  ;;  %v7429_v2 = vld [vmem:[#allocation41_spill] sm:$0xff] }
 0x250   : > { %4707 = vmatpush3.xpose.msra.mxu1 %v1114_v12  ;;  %v904_v0 = vadd.f32 %v7427_v6, %v6083_v50  ;;  %v900_v12 = vadd.f32 %v7428_v9, %v6094_v63  ;;  %v1227_v11 = vadd.f32 %v6049_v55, %v6133_v13  ;;  %v906_v37 = vadd.f32 %v7429_v2, %v6094_v63  ;;  %v7431_v55 = vld [vmem:[#allocation43_spill] sm:$0xff] }
 0x251   : > { %4708 = vmatprep.subr.mxu1 %v1108_v18  ;;  %v1221_v40 = vadd.f32 %v6020_v48, %v6133_v13 }
 0x252   : > { %4681 = vmatpush3.xpose.msra.mxu0 %v1106_v15  ;;  %v7430_v15 = vld [vmem:[#allocation42_spill] sm:$0xff] }
 0x253   : > { %4682 = vmatprep.subr.mxu0 %v1100_v21 }
 0x254   : > { %4709 = vmatpush3.xpose.msra.mxu1 %v1108_v18  ;;  %v910_v18 = vadd.f32 %v7430_v15, %v6083_v50  ;;  %v1215_v50 = vadd.f32 %v5996_v56, %v6133_v13 }
 0x255   : > { %4710 = vmatprep.subr.mxu1 %v1102_v24 }
 0x256   : > { %4683 = vmatpush3.xpose.msra.mxu0 %v1100_v21  ;;  %v1361_v21 = vpop.f32.mrf.mxu1 }
 0x257   : > { %4684 = vmatprep.subr.mxu0 %v1094_v35  ;;  %v6190_v20 = vadd.f32 %v1361_v21, %v5959_v5  ;;  %v5344_v5 = vmov -inf  }
 0x258   : > { %4711 = vmatpush3.xpose.msra.mxu1 %v1102_v24  ;;  %v912_v24 = vadd.f32 %v7431_v55, %v6094_v63  ;;  %v1363_v48 = vpop.f32.mrf.mxu1  ;;  %1432 = vst.msk [vmem:[#allocation4 + $0x8] sm:$0xff] %vm1430_vm1, %v5344_v5  ;;  %1431 = vst.msk [vmem:[#allocation4] sm:$0xff] %vm1430_vm1, %v5344_v5 }
 0x259   : > { %4712 = vmatprep.subr.mxu1 %v1096_v43  ;;  %v6196_v63 = vadd.f32 %v1363_v48, %v5968_v31  ;;  %1433 = vst.msk [vmem:[#allocation4 + $0x10] sm:$0xff] %vm1430_vm1, %v5344_v5  ;;  %1434 = vst.msk [vmem:[#allocation4 + $0x18] sm:$0xff] %vm1430_vm1, %v5344_v5  ;;  %v7433_v31 = vmov 0.0  }
 0x25a   : > { %4685 = vmatpush3.xpose.msra.mxu0 %v1094_v35  ;;  %v1207_v35 = vadd.f32 %v7432_v51, %v6128_v36  ;;  %1435 = vst.msk [vmem:[#allocation4 + $0x20] sm:$0xff] %vm1430_vm1, %v5344_v5  ;;  %1436 = vst.msk [vmem:[#allocation4 + $0x28] sm:$0xff] %vm1430_vm1, %v5344_v5 }
 0x25b   : > { %4726 = vmatprep.subr.mxu0 %v1249_v26  ;;  %1437 = vst.msk [vmem:[#allocation4 + $0x30] sm:$0xff] %vm1430_vm1, %v5344_v5  ;;  %1438 = vst.msk [vmem:[#allocation4 + $0x38] sm:$0xff] %vm1430_vm1, %v5344_v5 }
 0x25c   : > { %4713 = vmatpush3.xpose.msra.mxu1 %v1096_v43  ;;  %v1209_v43 = vadd.f32 %v5976_v1, %v6133_v13  ;;  %1439 = vst.msk [vmem:[#allocation4 + $0x40] sm:$0xff] %vm1430_vm1, %v5344_v5  ;;  %1440 = vst.msk [vmem:[#allocation4 + $0x48] sm:$0xff] %vm1430_vm1, %v5344_v5 }
 0x25d   : > { %4687 = vmatmul.mubr.f32.vlgmr.msra.gmra.mxu0 %v874_v28  ;;  %4754 = vmatprep.subr.mxu1 %v1251_v19  ;;  %1441 = vst.msk [vmem:[#allocation4 + $0x50] sm:$0xff] %vm1430_vm1, %v5344_v5  ;;  %1442 = vst.msk [vmem:[#allocation4 + $0x58] sm:$0xff] %vm1430_vm1, %v5344_v5 }
 0x25e   : > { %4689 = vmatprep.mubr.f32.mxu0 %v880_v53  ;;  %4727 = vmatpush3.msra.mxu0 %v1249_v26  ;;  %1443 = vst.msk [vmem:[#allocation4 + $0x60] sm:$0xff] %vm1430_vm1, %v5344_v5  ;;  %1444 = vst.msk [vmem:[#allocation4 + $0x68] sm:$0xff] %vm1430_vm1, %v5344_v5 }
 0x25f   : > { %4715 = vmatmul.mubr.f32.vlgmr.msra.gmra.mxu1 %v876_v30  ;;  %4728 = vmatprep.subr.mxu0 %v1243_v42  ;;  %1445 = vst.msk [vmem:[#allocation4 + $0x70] sm:$0xff] %vm1430_vm1, %v5344_v5  ;;  %1446 = vst.msk [vmem:[#allocation4 + $0x78] sm:$0xff] %vm1430_vm1, %v5344_v5 }
 0x260   : > { %4717 = vmatprep.mubr.f32.mxu1 %v882_v38  ;;  %4729 = vmatpush3.msra.mxu0 %v1243_v42  ;;  %1447 = vst.msk [vmem:[#allocation4 + $0x80] sm:$0xff] %vm1430_vm1, %v5344_v5  ;;  %1448 = vst.msk [vmem:[#allocation4 + $0x88] sm:$0xff] %vm1430_vm1, %v5344_v5 }
 0x261   : > { %4755 = vmatpush3.msra.mxu1 %v1251_v19  ;;  %4690 = vmatmul.mubr.f32.gmra.mxu0 %v886_v22  ;;  %1449 = vst.msk [vmem:[#allocation4 + $0x90] sm:$0xff] %vm1430_vm1, %v5344_v5  ;;  %1450 = vst.msk [vmem:[#allocation4 + $0x98] sm:$0xff] %vm1430_vm1, %v5344_v5 }
 0x262   : > { %4730 = vmatprep.subr.mxu0 %v1237_v23  ;;  %4756 = vmatprep.subr.mxu1 %v1245_v25  ;;  %1451 = vst.msk [vmem:[#allocation4 + $0xa0] sm:$0xff] %vm1430_vm1, %v5344_v5  ;;  %1452 = vst.msk [vmem:[#allocation4 + $0xa8] sm:$0xff] %vm1430_vm1, %v5344_v5 }
 0x263   : > { %4692 = vmatprep.mubr.f32.mxu0 %v892_v14  ;;  %4731 = vmatpush3.msra.mxu0 %v1237_v23  ;;  %1453 = vst.msk [vmem:[#allocation4 + $0xb0] sm:$0xff] %vm1430_vm1, %v5344_v5  ;;  %1454 = vst.msk [vmem:[#allocation4 + $0xb8] sm:$0xff] %vm1430_vm1, %v5344_v5  ;;  %v5345_v14 = vmov 0  }
 0x264   : > { %4757 = vmatpush3.msra.mxu1 %v1245_v25  ;;  %4732 = vmatprep.subr.mxu0 %v1231_v10  ;;  %1455 = vst.msk [vmem:[#allocation4 + $0xc0] sm:$0xff] %vm1430_vm1, %v5344_v5  ;;  %1456 = vst.msk [vmem:[#allocation4 + $0xc8] sm:$0xff] %vm1430_vm1, %v5344_v5 }
 0x265   : > { %4718 = vmatmul.mubr.f32.gmra.mxu1 %v888_v33  ;;  %4758 = vmatprep.subr.mxu1 %v1239_v49  ;;  %1457 = vst.msk [vmem:[#allocation4 + $0xd0] sm:$0xff] %vm1430_vm1, %v5344_v5  ;;  %1458 = vst.msk [vmem:[#allocation4 + $0xd8] sm:$0xff] %vm1430_vm1, %v5344_v5 }
 0x266   : > { %4720 = vmatprep.mubr.f32.mxu1 %v894_v54  ;;  %4733 = vmatpush3.msra.mxu0 %v1231_v10  ;;  %1459 = vst.msk [vmem:[#allocation4 + $0xe0] sm:$0xff] %vm1430_vm1, %v5344_v5  ;;  %1460 = vst.msk [vmem:[#allocation4 + $0xe8] sm:$0xff] %vm1430_vm1, %v5344_v5 }
 0x267   : > { %4759 = vmatpush3.msra.mxu1 %v1239_v49  ;;  %4693 = vmatmul.mubr.f32.gmra.mxu0 %v898_v60  ;;  %1461 = vst.msk [vmem:[#allocation4 + $0xf0] sm:$0xff] %vm1430_vm1, %v5344_v5  ;;  %1462 = vst.msk [vmem:[#allocation4 + $0xf8] sm:$0xff] %vm1430_vm1, %v5344_v5 }
 0x268   : > { %4734 = vmatprep.subr.mxu0 %v1225_v27  ;;  %4760 = vmatprep.subr.mxu1 %v1233_v3  ;;  %1463 = vst.msk [vmem:[#allocation5] sm:$0xff] %vm1430_vm1, %v7433_v31  ;;  %1464 = vst.msk [vmem:[#allocation5 + $0x8] sm:$0xff] %vm1430_vm1, %v7433_v31 }
 0x269   : > { %4695 = vmatprep.mubr.f32.mxu0 %v904_v0  ;;  %4735 = vmatpush3.msra.mxu0 %v1225_v27  ;;  %1465 = vst.msk [vmem:[#allocation5 + $0x10] sm:$0xff] %vm1430_vm1, %v7433_v31  ;;  %1466 = vst.msk [vmem:[#allocation5 + $0x18] sm:$0xff] %vm1430_vm1, %v7433_v31 }
 0x26a   : > { %4761 = vmatpush3.msra.mxu1 %v1233_v3  ;;  %4736 = vmatprep.subr.mxu0 %v1219_v32  ;;  %1467 = vst.msk [vmem:[#allocation5 + $0x20] sm:$0xff] %vm1430_vm1, %v7433_v31  ;;  %1468 = vst.msk [vmem:[#allocation5 + $0x28] sm:$0xff] %vm1430_vm1, %v7433_v31 }
 0x26b   : > { %4721 = vmatmul.mubr.f32.gmra.mxu1 %v900_v12  ;;  %4762 = vmatprep.subr.mxu1 %v1227_v11  ;;  %1469 = vst.msk [vmem:[#allocation5 + $0x30] sm:$0xff] %vm1430_vm1, %v7433_v31  ;;  %1470 = vst.msk [vmem:[#allocation5 + $0x38] sm:$0xff] %vm1430_vm1, %v7433_v31 }
 0x26c   : > { %4723 = vmatprep.mubr.f32.mxu1 %v906_v37  ;;  %4737 = vmatpush3.msra.mxu0 %v1219_v32  ;;  %1471 = vst.msk [vmem:[#allocation5 + $0x40] sm:$0xff] %vm1430_vm1, %v7433_v31  ;;  %1472 = vst.msk [vmem:[#allocation5 + $0x48] sm:$0xff] %vm1430_vm1, %v7433_v31 }
 0x26d   : > { %4763 = vmatpush3.msra.mxu1 %v1227_v11  ;;  %4696 = vmatmul.mubr.f32.gmra.mxu0 %v910_v18  ;;  %1473 = vst.msk [vmem:[#allocation5 + $0x50] sm:$0xff] %vm1430_vm1, %v7433_v31  ;;  %1474 = vst.msk [vmem:[#allocation5 + $0x58] sm:$0xff] %vm1430_vm1, %v7433_v31 }
 0x26e   : > { %4738 = vmatprep.subr.mxu0 %v1213_v62  ;;  %4764 = vmatprep.subr.mxu1 %v1221_v40  ;;  %1475 = vst.msk [vmem:[#allocation5 + $0x60] sm:$0xff] %vm1430_vm1, %v7433_v31  ;;  %1476 = vst.msk [vmem:[#allocation5 + $0x68] sm:$0xff] %vm1430_vm1, %v7433_v31 }
 0x26f   : > { %4739 = vmatpush3.msra.mxu0 %v1213_v62  ;;  %4765 = vmatpush3.msra.mxu1 %v1221_v40  ;;  %1477 = vst.msk [vmem:[#allocation5 + $0x70] sm:$0xff] %vm1430_vm1, %v7433_v31  ;;  %1478 = vst.msk [vmem:[#allocation5 + $0x78] sm:$0xff] %vm1430_vm1, %v7433_v31 }
 0x270   : > { %4724 = vmatmul.mubr.f32.gmra.mxu1 %v912_v24  ;;  %4740 = vmatprep.subr.mxu0 %v1207_v35  ;;  %1479 = vst.msk [vmem:[#allocation5 + $0x80] sm:$0xff] %vm1430_vm1, %v7433_v31  ;;  %1480 = vst.msk [vmem:[#allocation5 + $0x88] sm:$0xff] %vm1430_vm1, %v7433_v31 }
 0x271   : > { %4766 = vmatprep.subr.mxu1 %v1215_v50  ;;  %4741 = vmatpush3.msra.mxu0 %v1207_v35  ;;  %1481 = vst.msk [vmem:[#allocation5 + $0x90] sm:$0xff] %vm1430_vm1, %v7433_v31  ;;  %1482 = vst.msk [vmem:[#allocation5 + $0x98] sm:$0xff] %vm1430_vm1, %v7433_v31 }
 0x272   : > { %4767 = vmatpush3.msra.mxu1 %v1215_v50  ;;  %4782 = vmatprep.subr.mxu0 %v6190_v20  ;;  %1483 = vst.msk [vmem:[#allocation5 + $0xa0] sm:$0xff] %vm1430_vm1, %v7433_v31  ;;  %1484 = vst.msk [vmem:[#allocation5 + $0xa8] sm:$0xff] %vm1430_vm1, %v7433_v31 }
 0x273   : > { %4768 = vmatprep.subr.mxu1 %v1209_v43  ;;  %1485 = vst.msk [vmem:[#allocation5 + $0xb0] sm:$0xff] %vm1430_vm1, %v7433_v31  ;;  %1486 = vst.msk [vmem:[#allocation5 + $0xb8] sm:$0xff] %vm1430_vm1, %v7433_v31  ;;  %4931 = vset.pattern.permute.xlu1 %v5345_v14 }
 0x274   : > { %4769 = vmatpush3.msra.mxu1 %v1209_v43  ;;  %1487 = vst.msk [vmem:[#allocation5 + $0xc0] sm:$0xff] %vm1430_vm1, %v7433_v31  ;;  %1488 = vst.msk [vmem:[#allocation5 + $0xc8] sm:$0xff] %vm1430_vm1, %v7433_v31  ;;  %4932 = vset.pattern.permute.xlu0 %v5345_v14 }
 0x275   : > { %4810 = vmatprep.subr.mxu1 %v6196_v63  ;;  %1489 = vst.msk [vmem:[#allocation5 + $0xd0] sm:$0xff] %vm1430_vm1, %v7433_v31  ;;  %1490 = vst.msk [vmem:[#allocation5 + $0xd8] sm:$0xff] %vm1430_vm1, %v7433_v31 }
 0x276   : > { %1491 = vst.msk [vmem:[#allocation5 + $0xe0] sm:$0xff] %vm1430_vm1, %v7433_v31  ;;  %1492 = vst.msk [vmem:[#allocation5 + $0xe8] sm:$0xff] %vm1430_vm1, %v7433_v31 }
 0x277   : > { %1493 = vst.msk [vmem:[#allocation5 + $0xf0] sm:$0xff] %vm1430_vm1, %v7433_v31  ;;  %1494 = vst.msk [vmem:[#allocation5 + $0xf8] sm:$0xff] %vm1430_vm1, %v7433_v31 }
 0x2fd   : > { %v4632_v1 = vpop.f32.mrf.mxu0 }
 0x2fe   : > { %v6295_v56 = vmul.f32 0.35355338, %v4632_v1 }
 0x2ff   : > { %v1657_v58 = vpop.f32.mrf.mxu0  ;;  %v4660_v36 = vpop.f32.mrf.mxu1 }
 0x300   : > { %v6297_v7 = vmul.f32 0.35355338, %v1657_v58  ;;  %v2079_v34 = vsel %vm2075_vm2, %v6295_v56, -inf  ;;  %v6301_v28 = vmul.f32 0.35355338, %v4660_v36 }
 0x301   : > { %v1762_v13 = vpop.f32.mrf.mxu1  ;;  %2080 = vmax.xlane.f32.xlu1 %v2079_v34  ;;  %v4635_v29 = vpop.f32.mrf.mxu0 }
 0x302   : > { %v2076_v19 = vsel %vm2075_vm2, %v6297_v7, -inf  ;;  %v6307_v30 = vmul.f32 0.35355338, %v1762_v13  ;;  %v2103_v61 = vsel %vm2075_vm2, %v6301_v28, -inf  ;;  %v6313_v45 = vmul.f32 0.35355338, %v4635_v29 }
 0x303   : > { %v4663_v26 = vpop.f32.mrf.mxu1  ;;  %v1667_v38 = vpop.f32.mrf.mxu0 }
 0x304   : > { %v2100_v22 = vsel %vm2075_vm2, %v6307_v30, -inf  ;;  %v6317_v25 = vmul.f32 0.35355338, %v1667_v38  ;;  %v2085_v39 = vsel %vm2075_vm2, %v6313_v45, -inf  ;;  %v6321_v17 = vmul.f32 0.35355338, %v4663_v26 }
 0x305   : > { %v1772_v41 = vpop.f32.mrf.mxu1  ;;  %2077 = vmax.xlane.f32.xlu1 %v2076_v19  ;;  %v4638_v23 = vpop.f32.mrf.mxu0 }
 0x306   : > { %v6305_v53 = vmul.f32 0.35355338, %v1772_v41  ;;  %v2082_v33 = vsel %vm2075_vm2, %v6317_v25, -inf  ;;  %v6325_v46 = vmul.f32 0.35355338, %v4638_v23  ;;  %v2109_v54 = vsel %vm2075_vm2, %v6321_v17, -inf }
 0x307   : > { %v1677_v10 = vpop.f32.mrf.mxu0  ;;  %v4666_v3 = vpop.f32.mrf.mxu1 }
 0x308   : > { %v2106_v42 = vsel %vm2075_vm2, %v6305_v53, -inf  ;;  %v6329_v60 = vmul.f32 0.35355338, %v1677_v10  ;;  %v2091_v27 = vsel %vm2075_vm2, %v6325_v46, -inf  ;;  %v6333_v32 = vmul.f32 0.35355338, %v4666_v3 }
 0x309   : > { %2107 = vmax.xlane.f32.xlu0 %v2106_v42  ;;  %2104 = vmax.xlane.f32.xlu1 %v2103_v61  ;;  %v4641_v49 = vpop.f32.mrf.mxu0  ;;  %v1782_v12 = vpop.f32.mrf.mxu1 }
 0x30a   : > { %v2088_v9 = vsel %vm2075_vm2, %v6329_v60, -inf  ;;  %v6339_v15 = vmul.f32 0.35355338, %v1782_v12  ;;  %v2115_v62 = vsel %vm2075_vm2, %v6333_v32, -inf  ;;  %v6347_v55 = vmul.f32 0.35355338, %v4641_v49 }
 0x30b   : > { %v1687_v57 = vpop.f32.mrf.mxu0  ;;  %v4669_v1 = vpop.f32.mrf.mxu1 }
 0x30c   : > { %v2112_v51 = vsel %vm2075_vm2, %v6339_v15, -inf  ;;  %v6355_v48 = vmul.f32 0.35355338, %v1687_v57  ;;  %v2097_v5 = vsel %vm2075_vm2, %v6347_v55, -inf  ;;  %v6363_v36 = vmul.f32 0.35355338, %v4669_v1 }
 0x30d   : > { %2101 = vmax.xlane.f32.xlu1 %v2100_v22  ;;  %v1792_v19 = vpop.f32.mrf.mxu1 }
 0x30e   : > { %v2094_v13 = vsel %vm2075_vm2, %v6355_v48, -inf  ;;  %v6371_v29 = vmul.f32 0.35355338, %v1792_v19  ;;  %v2121_v61 = vsel %vm2075_vm2, %v6363_v36, -inf }
 0x310   : > { %v2118_v23 = vsel %vm2075_vm2, %v6371_v29, -inf }
 0x311   : > { %2086 = vmax.xlane.f32.xlu1 %v2085_v39 }
 0x315   : > { %2083 = vmax.xlane.f32.xlu1 %v2082_v33 }
 0x319   : > { %2110 = vmax.xlane.f32.xlu1 %v2109_v54 }
 0x31d   : > { %2092 = vmax.xlane.f32.xlu1 %v2091_v27  ;;  %v4688_v6 = vpop.f32.mrf.mxu0 }
 0x31e   : > { %v6379_v22 = vmul.f32 0.35355338, %v4688_v6 }
 0x31f   : > { %v1867_v0 = vpop.f32.mrf.mxu0  ;;  %v4716_v33 = vpop.f32.mrf.mxu1 }
 0x320   : > { %v6385_v14 = vmul.f32 0.35355338, %v1867_v0  ;;  %v2127_v10 = vsel %vm2075_vm2, %v6379_v22, -inf  ;;  %v6389_v49 = vmul.f32 0.35355338, %v4716_v33 }
 0x321   : > { %2089 = vmax.xlane.f32.xlu1 %v2088_v9  ;;  %v4691_v11 = vpop.f32.mrf.mxu0  ;;  %v1972_v57 = vpop.f32.mrf.mxu1 }
 0x322   : > { %v6337_v2 = vmul.f32 0.35355338, %v4691_v11  ;;  %v2124_v54 = vsel %vm2075_vm2, %v6385_v14, -inf  ;;  %v6393_v27 = vmul.f32 0.35355338, %v1972_v57  ;;  %v2151_v3 = vsel %vm2075_vm2, %v6389_v49, -inf }
 0x323   : > { %v1877_v37 = vpop.f32.mrf.mxu0  ;;  %v6440_v57 = vld [vmem:[#allocation4 + $0x48] sm:$0xff] }
 0x324   : > { %v6341_v18 = vmul.f32 0.35355338, %v1877_v37  ;;  %v2133_v40 = vsel %vm2075_vm2, %v6337_v2, -inf  ;;  %v2148_v9 = vsel %vm2075_vm2, %v6393_v27, -inf  ;;  %7446 = vst [vmem:[#allocation43_spill] sm:$0xff] %v6440_v57 }
 0x325   : > { %2116 = vmax.xlane.f32.xlu1 %v2115_v62  ;;  %2134 = vmax.xlane.f32.xlu0 %v2133_v40  ;;  %v4719_v6 = vpop.f32.mrf.mxu1 }
 0x326   : > { %v2130_v35 = vsel %vm2075_vm2, %v6341_v18, -inf  ;;  %v6397_v0 = vmul.f32 0.35355338, %v4719_v6 }
 0x327   : > { %v4694_v21 = vpop.f32.mrf.mxu0  ;;  %v1982_v12 = vpop.f32.mrf.mxu1 }
 0x328   : > { %v6349_v24 = vmul.f32 0.35355338, %v4694_v21  ;;  %v6401_v11 = vmul.f32 0.35355338, %v1982_v12  ;;  %v2157_v37 = vsel %vm2075_vm2, %v6397_v0, -inf }
 0x329   : > { %v1887_v50 = vpop.f32.mrf.mxu0  ;;  %2113 = vmax.xlane.f32.xlu1 %v2112_v51  ;;  %2131 = vmax.xlane.f32.xlu0 %v2130_v35 }
 0x32a   : > { %v6357_v43 = vmul.f32 0.35355338, %v1887_v50  ;;  %v2139_v31 = vsel %vm2075_vm2, %v6349_v24, -inf  ;;  %v2154_v21 = vsel %vm2075_vm2, %v6401_v11, -inf }
 0x32b   : > { %v4722_v62 = vpop.f32.mrf.mxu1 }
 0x32c   : > { %7434 = vst [vmem:[#allocation32_spill] sm:$0xff] %v6357_v43  ;;  %v2136_v26 = vsel %vm2075_vm2, %v6357_v43, -inf  ;;  %v6405_v40 = vmul.f32 0.35355338, %v4722_v62  ;;  %v6453_v62 = vld [vmem:[#allocation4 + $0x40] sm:$0xff] }
 0x32d   : > { %v4697_v58 = vpop.f32.mrf.mxu0  ;;  %2098 = vmax.xlane.f32.xlu1 %v2097_v5  ;;  %2140 = vmax.xlane.f32.xlu0 %v2139_v31  ;;  %v1992_v51 = vpop.f32.mrf.mxu1  ;;  %7449 = vst [vmem:[#allocation53_spill] sm:$0xff] %v6453_v62  ;;  %v6636_v43 = vld [vmem:[#allocation4 + $0xc0] sm:$0xff] }
 0x32e   : > { %v6365_v34 = vmul.f32 0.35355338, %v4697_v58  ;;  %7437 = vst [vmem:[#allocation34_spill] sm:$0xff] %v6405_v40  ;;  %v6409_v35 = vmul.f32 0.35355338, %v1992_v51  ;;  %v2163_v50 = vsel %vm2075_vm2, %v6405_v40, -inf }
 0x32f   : > { %v1897_v41 = vpop.f32.mrf.mxu0  ;;  %v6507_v51 = vld [vmem:[#allocation4 + $0x20] sm:$0xff]  ;;  %v6626_v40 = vld [vmem:[#allocation4 + $0xc8] sm:$0xff]  ;;  %7472 = vst [vmem:[#allocation76_spill] sm:$0xff] %v6636_v43 }
 0x330   : > { %7435 = vst [vmem:[#allocation31_spill] sm:$0xff] %v6365_v34  ;;  %v6373_v42 = vmul.f32 0.35355338, %v1897_v41  ;;  %v2145_v38 = vsel %vm2075_vm2, %v6365_v34, -inf  ;;  %7438 = vst [vmem:[#allocation36_spill] sm:$0xff] %v6409_v35  ;;  %v4725_v5 = vpop.f32.mrf.mxu1  ;;  %v2160_v1 = vsel %vm2075_vm2, %v6409_v35, -inf }
 0x331   : > { %2095 = vmax.xlane.f32.xlu1 %v2094_v13  ;;  %2137 = vmax.xlane.f32.xlu0 %v2136_v26  ;;  %v6413_v31 = vmul.f32 0.35355338, %v4725_v5  ;;  %v6423_v41 = vld [vmem:[#allocation4 + $0x8] sm:$0xff]  ;;  %7457 = vst [vmem:[#allocation61_spill] sm:$0xff] %v6507_v51  ;;  %v6616_v35 = vld [vmem:[#allocation4 + $0x80] sm:$0xff]  ;;  %7470 = vst [vmem:[#allocation74_spill] sm:$0xff] %v6626_v40 }
 0x332   : > { %7436 = vst [vmem:[#allocation33_spill] sm:$0xff] %v6373_v42  ;;  %v2142_v39 = vsel %vm2075_vm2, %v6373_v42, -inf  ;;  %v2002_v58 = vpop.f32.mrf.mxu1  ;;  %7441 = vst [vmem:[#allocation38_spill] sm:$0xff] %v6423_v41 }
 0x333   : > { %7439 = vst [vmem:[#allocation35_spill] sm:$0xff] %v6413_v31  ;;  %v6417_v13 = vmul.f32 0.35355338, %v2002_v58  ;;  %v2169_v26 = vsel %vm2075_vm2, %v6413_v31, -inf  ;;  %v6497_v58 = vld [vmem:[#allocation4 + $0x28] sm:$0xff]  ;;  %7468 = vst [vmem:[#allocation72_spill] sm:$0xff] %v6616_v35 }
 0x335   : > { %2122 = vmax.xlane.f32.xlu1 %v2121_v61  ;;  %2146 = vmax.xlane.f32.xlu0 %v2145_v38  ;;  %7440 = vst [vmem:[#allocation37_spill] sm:$0xff] %v6417_v13  ;;  %v2166_v19 = vsel %vm2075_vm2, %v6417_v13, -inf }
 0x339   : > { %2119 = vmax.xlane.f32.xlu1 %v2118_v23  ;;  %2143 = vmax.xlane.f32.xlu0 %v2142_v39  ;;  %v6428_v23 = vld [vmem:[#allocation4] sm:$0xff] }
 0x33a   : > { %7443 = vst [vmem:[#allocation39_spill] sm:$0xff] %v6428_v23 }
 0x33d   : > { %2128 = vmax.xlane.f32.xlu1 %v2127_v10 }
 0x341   : > { %2125 = vmax.xlane.f32.xlu1 %v2124_v54  ;;  %v6438_v54 = vld [vmem:[#allocation4 + $0x50] sm:$0xff] }
 0x342   : > { %7445 = vst [vmem:[#allocation42_spill] sm:$0xff] %v6438_v54 }
 0x345   : > { %2152 = vmax.xlane.f32.xlu1 %v2151_v3 }
 0x349   : > { %2149 = vmax.xlane.f32.xlu1 %v2148_v9 }
 0x34d   : > { %2158 = vmax.xlane.f32.xlu1 %v2157_v37 }
 0x351   : > { %2155 = vmax.xlane.f32.xlu1 %v2154_v21 }
 0x355   : > { %2164 = vmax.xlane.f32.xlu1 %v2163_v50 }
 0x359   : > { %2161 = vmax.xlane.f32.xlu1 %v2160_v1  ;;  %v6467_v1 = vld [vmem:[#allocation4 + $0x18] sm:$0xff] }
 0x35a   : > { %7451 = vst [vmem:[#allocation55_spill] sm:$0xff] %v6467_v1 }
 0x35d   : > { %2170 = vmax.xlane.f32.xlu1 %v2169_v26 }
 0x361   : > { %2167 = vmax.xlane.f32.xlu1 %v2166_v19 }
 0x38a   : > { %v2081_v61 = vpop.xlane.xlu1 %2080 }
 0x38b   : > { %v6426_v38 = vmax.f32 %v6423_v41, %v2081_v61  ;;  %v6477_v61 = vld [vmem:[#allocation4 + $0x10] sm:$0xff] }
 0x38c   : > { %7453 = vst [vmem:[#allocation57_spill] sm:$0xff] %v6477_v61 }
 0x38d   : > { %7442 = vst [vmem:[#allocation40_spill] sm:$0xff] %v6426_v38  ;;  %3585 = vst.msk [vmem:[#allocation4 + $0x8] sm:$0xff] %vm1430_vm1, %v6426_v38  ;;  %2307 = vperm.xlu1 %4931, %v6426_v38  }
 0x38e   : > { %v2078_v10 = vpop.xlane.xlu1 %2077 }
 0x38f   : > { %v6436_v33 = vmax.f32 %v6428_v23, %v2078_v10  ;;  %v6569_v23 = vld [vmem:[#allocation4 + $0x30] sm:$0xff] }
 0x391   : > { %7444 = vst [vmem:[#allocation41_spill] sm:$0xff] %v6436_v33  ;;  %3584 = vst.msk [vmem:[#allocation4] sm:$0xff] %vm1430_vm1, %v6436_v33  ;;  %2302 = vperm.xlu0 %4932, %v6436_v33   ;;  %v6518_v33 = vld [vmem:[#allocation4 + $0x68] sm:$0xff] }
 0x392   : > { %v2108_v6 = vpop.xlane.xlu0 %2107  ;;  %v2105_v9 = vpop.xlane.xlu1 %2104 }
 0x393   : > { %v6448_v12 = vmax.f32 %v6438_v54, %v2108_v6  ;;  %v6451_v37 = vmax.f32 %v6440_v57, %v2105_v9  ;;  %v6552_v54 = vld [vmem:[#allocation4 + $0xa8] sm:$0xff] }
 0x395   : > { %7447 = vst [vmem:[#allocation44_spill] sm:$0xff] %v6448_v12  ;;  %7448 = vst [vmem:[#allocation52_spill] sm:$0xff] %v6451_v37  ;;  %2347 = vperm.xlu1 %4931, %v6451_v37  }
 0x396   : > { %3594 = vst.msk [vmem:[#allocation4 + $0x50] sm:$0xff] %vm1430_vm1, %v6448_v12  ;;  %3593 = vst.msk [vmem:[#allocation4 + $0x48] sm:$0xff] %vm1430_vm1, %v6451_v37  ;;  %v2102_v50 = vpop.xlane.xlu1 %2101 }
 0x397   : > { %v6465_v5 = vmax.f32 %v6453_v62, %v2102_v50  ;;  %v6487_v50 = vld [vmem:[#allocation4 + $0x58] sm:$0xff] }
 0x398   : > { %7455 = vst [vmem:[#allocation59_spill] sm:$0xff] %v6487_v50 }
 0x399   : > { %7450 = vst [vmem:[#allocation54_spill] sm:$0xff] %v6465_v5  ;;  %3592 = vst.msk [vmem:[#allocation4 + $0x40] sm:$0xff] %vm1430_vm1, %v6465_v5  ;;  %2342 = vperm.xlu1 %4931, %v6465_v5  }
 0x39a   : > { %v2087_v26 = vpop.xlane.xlu1 %2086 }
 0x39b   : > { %v6475_v19 = vmax.f32 %v6467_v1, %v2087_v26  ;;  %v2058_v1 = vld [vmem:[#allocation4 + $0x78] sm:$0xff] }
 0x39d   : > { %7452 = vst [vmem:[#allocation56_spill] sm:$0xff] %v6475_v19  ;;  %3587 = vst.msk [vmem:[#allocation4 + $0x18] sm:$0xff] %vm1430_vm1, %v6475_v19  ;;  %2317 = vperm.xlu1 %4931, %v6475_v19   ;;  %v6571_v19 = vld [vmem:[#allocation4 + $0xa0] sm:$0xff] }
 0x39e   : > { %v2084_v6 = vpop.xlane.xlu1 %2083  ;;  %7465 = vst [vmem:[#allocation69_spill] sm:$0xff] %v6571_v19 }
 0x39f   : > { %v6485_v9 = vmax.f32 %v6477_v61, %v2084_v6  ;;  %v6535_v61 = vld [vmem:[#allocation4 + $0x90] sm:$0xff] }
 0x3a0   : > { %7462 = vst [vmem:[#allocation66_spill] sm:$0xff] %v6535_v61 }
 0x3a1   : > { %7454 = vst [vmem:[#allocation58_spill] sm:$0xff] %v6485_v9  ;;  %3586 = vst.msk [vmem:[#allocation4 + $0x10] sm:$0xff] %vm1430_vm1, %v6485_v9  ;;  %2312 = vperm.xlu1 %4931, %v6485_v9   ;;  %v6533_v9 = vld [vmem:[#allocation4 + $0x60] sm:$0xff] }
 0x3a2   : > { %v2111_v3 = vpop.xlane.xlu1 %2110  ;;  %7461 = vst [vmem:[#allocation65_spill] sm:$0xff] %v6533_v9 }
 0x3a3   : > { %v6495_v39 = vmax.f32 %v6487_v50, %v2111_v3 }
 0x3a5   : > { %7456 = vst [vmem:[#allocation60_spill] sm:$0xff] %v6495_v39  ;;  %3595 = vst.msk [vmem:[#allocation4 + $0x58] sm:$0xff] %vm1430_vm1, %v6495_v39  ;;  %2357 = vperm.xlu1 %4931, %v6495_v39   ;;  %v2066_v39 = vld [vmem:[#allocation4 + $0xb8] sm:$0xff] }
 0x3a6   : > { %v2093_v26 = vpop.xlane.xlu1 %2092 }
 0x3a7   : > { %v6505_v21 = vmax.f32 %v6497_v58, %v2093_v26  ;;  %v6520_v26 = vld [vmem:[#allocation4 + $0x98] sm:$0xff] }
 0x3a8   : > { %7459 = vst [vmem:[#allocation63_spill] sm:$0xff] %v6520_v26 }
 0x3a9   : > { %3589 = vst.msk [vmem:[#allocation4 + $0x28] sm:$0xff] %vm1430_vm1, %v6505_v21  ;;  %2352 = vperm.xlu1 %4931, %v6448_v12   ;;  %2327 = vperm.xlu0 %4932, %v6505_v21   ;;  %v6550_v12 = vld [vmem:[#allocation4 + $0x38] sm:$0xff] }
 0x3aa   : > { %v2090_v10 = vpop.xlane.xlu1 %2089 }
 0x3ab   : > { %v6516_v6 = vmax.f32 %v6507_v51, %v2090_v10 }
 0x3ad   : > { %7458 = vst [vmem:[#allocation62_spill] sm:$0xff] %v6516_v6  ;;  %3588 = vst.msk [vmem:[#allocation4 + $0x20] sm:$0xff] %vm1430_vm1, %v6516_v6  ;;  %2322 = vperm.xlu0 %4932, %v6516_v6  }
 0x3ae   : > { %v2117_v3 = vpop.xlane.xlu1 %2116  ;;  %v2135_v38 = vpop.xlane.xlu0 %2134 }
 0x3af   : > { %v6528_v41 = vmax.f32 %v6518_v33, %v2117_v3  ;;  %v6531_v10 = vmax.f32 %v6520_v26, %v2135_v38 }
 0x3b1   : > { %7460 = vst [vmem:[#allocation64_spill] sm:$0xff] %v6531_v10  ;;  %3597 = vst.msk [vmem:[#allocation4 + $0x68] sm:$0xff] %vm1430_vm1, %v6528_v41  ;;  %2367 = vperm.xlu1 %4931, %v6528_v41  }
 0x3b2   : > { %3603 = vst.msk [vmem:[#allocation4 + $0x98] sm:$0xff] %vm1430_vm1, %v6531_v10  ;;  %v2114_v3 = vpop.xlane.xlu1 %2113  ;;  %v2132_v5 = vpop.xlane.xlu0 %2131 }
 0x3b3   : > { %v6545_v38 = vmax.f32 %v6533_v9, %v2114_v3  ;;  %v6548_v62 = vmax.f32 %v6535_v61, %v2132_v5  ;;  %v6595_v9 = vld [vmem:[#allocation4 + $0xb0] sm:$0xff] }
 0x3b5   : > { %7463 = vst [vmem:[#allocation67_spill] sm:$0xff] %v6545_v38  ;;  %7464 = vst [vmem:[#allocation68_spill] sm:$0xff] %v6548_v62  ;;  %2362 = vperm.xlu1 %4931, %v6545_v38  }
 0x3b6   : > { %3596 = vst.msk [vmem:[#allocation4 + $0x60] sm:$0xff] %vm1430_vm1, %v6545_v38  ;;  %3602 = vst.msk [vmem:[#allocation4 + $0x90] sm:$0xff] %vm1430_vm1, %v6548_v62  ;;  %v2099_v5 = vpop.xlane.xlu1 %2098  ;;  %v2141_v3 = vpop.xlane.xlu0 %2140 }
 0x3b7   : > { %v6564_v57 = vmax.f32 %v6550_v12, %v2099_v5  ;;  %v6567_v26 = vmax.f32 %v6552_v54, %v2141_v3 }
 0x3b9   : > { %3591 = vst.msk [vmem:[#allocation4 + $0x38] sm:$0xff] %vm1430_vm1, %v6564_v57  ;;  %3605 = vst.msk [vmem:[#allocation4 + $0xa8] sm:$0xff] %vm1430_vm1, %v6567_v26  ;;  %2337 = vperm.xlu0 %4932, %v6564_v57  }
 0x3ba   : > { %v2096_v37 = vpop.xlane.xlu1 %2095  ;;  %v2138_v61 = vpop.xlane.xlu0 %2137 }
 0x3bb   : > { %v6579_v5 = vmax.f32 %v6569_v23, %v2096_v37  ;;  %v6582_v3 = vmax.f32 %v6571_v19, %v2138_v61  ;;  %v6593_v61 = vld [vmem:[#allocation4 + $0x70] sm:$0xff] }
 0x3bd   : > { %3590 = vst.msk [vmem:[#allocation4 + $0x30] sm:$0xff] %vm1430_vm1, %v6579_v5  ;;  %3604 = vst.msk [vmem:[#allocation4 + $0xa0] sm:$0xff] %vm1430_vm1, %v6582_v3  ;;  %2332 = vperm.xlu0 %4932, %v6579_v5  }
 0x3be   : > { %v2123_v6 = vpop.xlane.xlu1 %2122  ;;  %v2147_v51 = vpop.xlane.xlu0 %2146 }
 0x3bf   : > { %v2187_v37 = vmax.f32 %v2058_v1, %v2123_v6  ;;  %v6591_v38 = vmax.f32 %v2066_v39, %v2147_v51  ;;  %v6606_v51 = vld [vmem:[#allocation4 + $0x88] sm:$0xff] }
 0x3c0   : > { %7466 = vst [vmem:[#allocation70_spill] sm:$0xff] %v6606_v51 }
 0x3c1   : > { %3599 = vst.msk [vmem:[#allocation4 + $0x78] sm:$0xff] %vm1430_vm1, %v2187_v37  ;;  %3607 = vst.msk [vmem:[#allocation4 + $0xb8] sm:$0xff] %vm1430_vm1, %v6591_v38  ;;  %2377 = vperm.xlu1 %4931, %v2187_v37  }
 0x3c2   : > { %v2120_v50 = vpop.xlane.xlu1 %2119  ;;  %v2144_v19 = vpop.xlane.xlu0 %2143 }
 0x3c3   : > { %v6601_v31 = vmax.f32 %v6593_v61, %v2120_v50  ;;  %v6604_v13 = vmax.f32 %v6595_v9, %v2144_v19 }
 0x3c5   : > { %3598 = vst.msk [vmem:[#allocation4 + $0x70] sm:$0xff] %vm1430_vm1, %v6601_v31  ;;  %3606 = vst.msk [vmem:[#allocation4 + $0xb0] sm:$0xff] %vm1430_vm1, %v6604_v13  ;;  %2372 = vperm.xlu1 %4931, %v6601_v31  }
 0x3c6   : > { %v2129_v6 = vpop.xlane.xlu1 %2128 }
 0x3c7   : > { %v6614_v34 = vmax.f32 %v6606_v51, %v2129_v6 }
 0x3c9   : > { %7467 = vst [vmem:[#allocation71_spill] sm:$0xff] %v6614_v34  ;;  %3601 = vst.msk [vmem:[#allocation4 + $0x88] sm:$0xff] %vm1430_vm1, %v6614_v34  ;;  %2387 = vperm.xlu0 %4932, %v6614_v34   ;;  %v6647_v34 = vld [vmem:[#allocation4 + $0xd8] sm:$0xff] }
 0x3ca   : > { %v2126_v50 = vpop.xlane.xlu1 %2125 }
 0x3cb   : > { %v6624_v42 = vmax.f32 %v6616_v35, %v2126_v50  ;;  %v2219_v35 = vsub.f32 %v2058_v1, %v2187_v37  ;;  %v6659_v37 = vld [vmem:[#allocation4 + $0xd0] sm:$0xff] }
 0x3cc   : > { %7474 = vst [vmem:[#allocation78_spill] sm:$0xff] %v6659_v37 }
 0x3cd   : > { %7469 = vst [vmem:[#allocation73_spill] sm:$0xff] %v6624_v42  ;;  %3600 = vst.msk [vmem:[#allocation4 + $0x80] sm:$0xff] %vm1430_vm1, %v6624_v42  ;;  %2382 = vperm.xlu0 %4932, %v6624_v42  }
 0x3ce   : > { %v2153_v19 = vpop.xlane.xlu1 %2152 }
 0x3cf   : > { %v6634_v51 = vmax.f32 %v6626_v40, %v2153_v19  ;;  %v2227_v40 = vsub.f32 %v2066_v39, %v6591_v38 }
 0x3d1   : > { %7471 = vst [vmem:[#allocation75_spill] sm:$0xff] %v6634_v51  ;;  %3609 = vst.msk [vmem:[#allocation4 + $0xc8] sm:$0xff] %vm1430_vm1, %v6634_v51  ;;  %2427 = vperm.xlu1 %4931, %v6634_v51   ;;  %2397 = vperm.xlu0 %4932, %v6531_v10   ;;  %v2266_v51 = vmul.f32 1.442695, %v2219_v35  ;;  %v2282_v35 = vmul.f32 1.442695, %v2227_v40 }
 0x3d2   : > { %v2150_v6 = vpop.xlane.xlu1 %2149 }
 0x3d3   : > { %v6645_v42 = vmax.f32 %v6636_v43, %v2150_v6  ;;  %4933 = vpow2.f32 %v2266_v51  ;;  %v2211_v43 = vsub.f32 %v6550_v12, %v6564_v57  ;;  %v6678_v51 = vld [vmem:[#allocation4 + $0xe0] sm:$0xff]  ;;  %v2217_v57 = vsub.f32 %v6518_v33, %v6528_v41 }
 0x3d4   : > { %4935 = vpow2.f32 %v2282_v35  ;;  %v2073_v35 = vld [vmem:[#allocation4 + $0xf0] sm:$0xff]  ;;  %v2225_v41 = vsub.f32 %v6552_v54, %v6567_v26  ;;  %v2226_v54 = vsub.f32 %v6595_v9, %v6604_v13 }
 0x3d5   : > { %7473 = vst [vmem:[#allocation77_spill] sm:$0xff] %v6645_v42  ;;  %3608 = vst.msk [vmem:[#allocation4 + $0xc0] sm:$0xff] %vm1430_vm1, %v6645_v42  ;;  %2422 = vperm.xlu1 %4931, %v6645_v42   ;;  %2392 = vperm.xlu0 %4932, %v6548_v62   ;;  %v2250_v42 = vmul.f32 1.442695, %v2211_v43  ;;  %v2218_v62 = vsub.f32 %v6593_v61, %v6601_v31  ;;  %v2210_v43 = vsub.f32 %v6569_v23, %v6579_v5 }
 0x3d6   : > { %v2159_v50 = vpop.xlane.xlu1 %2158  ;;  %v2262_v23 = vmul.f32 1.442695, %v2217_v57 }
 0x3d7   : > { %v6657_v1 = vmax.f32 %v6647_v34, %v2159_v50  ;;  %v2072_v50 = vld [vmem:[#allocation4 + $0xe8] sm:$0xff]  ;;  %4937 = vpow2.f32 %v2250_v42  ;;  %v2264_v31 = vmul.f32 1.442695, %v2218_v62  ;;  %v2248_v10 = vmul.f32 1.442695, %v2210_v43 }
 0x3d8   : > { %v7476_v62 = vsub.f32 %v6497_v58, %v6505_v21 }
 0x3d9   : > { %3611 = vst.msk [vmem:[#allocation4 + $0xd8] sm:$0xff] %vm1430_vm1, %v6657_v1  ;;  %2437 = vperm.xlu1 %4931, %v6657_v1   ;;  %2407 = vperm.xlu0 %4932, %v6567_v26   ;;  %4939 = vpow2.f32 %v2264_v31 }
 0x3da   : > { %v2156_v19 = vpop.xlane.xlu1 %2155  ;;  %4941 = vpow2.f32 %v2248_v10  ;;  %v2246_v5 = vmul.f32 1.442695, %v7476_v62 }
 0x3db   : > { %v6668_v39 = vmax.f32 %v6659_v37, %v2156_v19  ;;  %v2074_v37 = vld [vmem:[#allocation4 + $0xf8] sm:$0xff]  ;;  %4943 = vpow2.f32 %v2262_v23 }
 0x3dc   : > { %4945 = vpow2.f32 %v2246_v5 }
 0x3dd   : > { %7475 = vst [vmem:[#allocation79_spill] sm:$0xff] %v6668_v39  ;;  %3610 = vst.msk [vmem:[#allocation4 + $0xd0] sm:$0xff] %vm1430_vm1, %v6668_v39  ;;  %2432 = vperm.xlu1 %4931, %v6668_v39   ;;  %2402 = vperm.xlu0 %4932, %v6582_v3  }
 0x3de   : > { %v2165_v6 = vpop.xlane.xlu1 %2164 }
 0x3df   : > { %v2201_v40 = vmax.f32 %v2072_v50, %v2165_v6 }
 0x3e0   : > { %v6695_v6 = vpop.eup %4933 }
 0x3e1   : > { %3613 = vst.msk [vmem:[#allocation4 + $0xe8] sm:$0xff] %vm1430_vm1, %v2201_v40  ;;  %2447 = vperm.xlu1 %4931, %v2201_v40   ;;  %2412 = vperm.xlu0 %4932, %v6604_v13   ;;  %v6701_v42 = vpop.eup %4935  ;;  %v2233_v43 = vsub.f32 %v2072_v50, %v2201_v40  ;;  %v2280_v50 = vmul.f32 1.442695, %v2226_v54 }
 0x3e2   : > { %v2162_v19 = vpop.xlane.xlu1 %2161 }
 0x3e3   : > { %v6685_v39 = vmax.f32 %v6678_v51, %v2162_v19  ;;  %v2294_v10 = vmul.f32 1.442695, %v2233_v43 }
 0x3e4   : > { %v6710_v33 = vpop.eup %4937 }
 0x3e5   : > { %3612 = vst.msk [vmem:[#allocation4 + $0xe0] sm:$0xff] %vm1430_vm1, %v6685_v39  ;;  %2442 = vperm.xlu1 %4931, %v6685_v39   ;;  %2417 = vperm.xlu0 %4932, %v6591_v38  }
 0x3e6   : > { %v2171_v12 = vpop.xlane.xlu1 %2170  ;;  %v6713_v31 = vpop.eup %4939 }
 0x3e7   : > { %v2203_v61 = vmax.f32 %v2074_v37, %v2171_v12  ;;  %v2278_v12 = vmul.f32 1.442695, %v2225_v41  ;;  %v6716_v21 = vpop.eup %4941 }
 0x3e8   : > { %v6721_v26 = vpop.eup %4943 }
 0x3e9   : > { %3615 = vst.msk [vmem:[#allocation4 + $0xf8] sm:$0xff] %vm1430_vm1, %v2203_v61  ;;  %2889 = vperm.xlu0 %4932, %v6695_v6   ;;  %4947 = vpow2.f32 %v2278_v12  ;;  %v2235_v57 = vsub.f32 %v2074_v37, %v2203_v61 }
 0x3ea   : > { %v2168_v19 = vpop.xlane.xlu1 %2167  ;;  %4949 = vpow2.f32 %v2294_v10 }
 0x3eb   : > { %v2202_v38 = vmax.f32 %v2073_v35, %v2168_v19  ;;  %v2298_v58 = vmul.f32 1.442695, %v2235_v57  ;;  %v6724_v19 = vpop.eup %4945 }
 0x3ed   : > { %3614 = vst.msk [vmem:[#allocation4 + $0xf0] sm:$0xff] %vm1430_vm1, %v2202_v38  ;;  %2452 = vperm.xlu1 %4931, %v2202_v38   ;;  %2929 = vperm.xlu0 %4932, %v6701_v42   ;;  %4951 = vpow2.f32 %v2298_v58  ;;  %v2234_v40 = vsub.f32 %v2073_v35, %v2202_v38 }
 0x3ee   : > { %4953 = vpow2.f32 %v2280_v50 }
 0x3ef   : > { %v2296_v37 = vmul.f32 1.442695, %v2234_v40 }
 0x3f1   : > { %2457 = vperm.xlu1 %4931, %v2203_v61   ;;  %4955 = vpow2.f32 %v2296_v37 }
 0x3f5   : > { %2849 = vperm.xlu1 %4931, %v6710_v33  }
 0x3f6   : > { %v6727_v61 = vpop.eup %4947 }
 0x3f7   : > { %v6731_v9 = vpop.eup %4949 }
 0x3f9   : > { %2884 = vperm.xlu1 %4931, %v6713_v31  }
 0x3fa   : > { %v6735_v41 = vpop.eup %4951 }
 0x3fb   : > { %v6739_v10 = vpop.eup %4953 }
 0x3fd   : > { %2844 = vperm.xlu1 %4931, %v6716_v21  }
 0x3fe   : > { %v6743_v58 = vpop.eup %4955 }
 0x401   : > { %2879 = vperm.xlu1 %4931, %v6721_v26  }
 0x405   : > { %2839 = vperm.xlu1 %4931, %v6724_v19  }
 0x408   : > { %v2308_v23 = vpop.permute.xlu1 %2307 }
 0x409   : > { %2919 = vperm.xlu1 %4931, %v6727_v61   ;;  %v2461_v13 = vsub.f32 %v6295_v56, %v2308_v23 }
 0x40b   : > { %v2494_v35 = vmul.f32 1.442695, %v2461_v13 }
 0x40c   : > { %v2303_v62 = vpop.permute.xlu0 %2302 }
 0x40d   : > { %v2460_v5 = vsub.f32 %v6297_v7, %v2303_v62  ;;  %2959 = vperm.xlu1 %4931, %v6731_v9  }
 0x40f   : > { %v2492_v38 = vmul.f32 1.442695, %v2460_v5 }
 0x410   : > { %v2348_v12 = vpop.permute.xlu1 %2347 }
 0x411   : > { %4957 = vpow2.f32 %v2492_v38  ;;  %v2469_v43 = vsub.f32 %v6301_v28, %v2348_v12  ;;  %2969 = vperm.xlu1 %4931, %v6735_v41  }
 0x412   : > { %4959 = vpow2.f32 %v2494_v35 }
 0x413   : > { %v2510_v56 = vmul.f32 1.442695, %v2469_v43 }
 0x414   : > { %v2343_v57 = vpop.permute.xlu1 %2342 }
 0x415   : > { %4961 = vpow2.f32 %v2510_v56  ;;  %v2468_v7 = vsub.f32 %v6307_v30, %v2343_v57  ;;  %2924 = vperm.xlu1 %4931, %v6739_v10  }
 0x417   : > { %v2508_v54 = vmul.f32 1.442695, %v2468_v7 }
 0x418   : > { %v2318_v50 = vpop.permute.xlu1 %2317 }
 0x419   : > { %4963 = vpow2.f32 %v2508_v54  ;;  %2964 = vperm.xlu1 %4931, %v6743_v58   ;;  %v2463_v28 = vsub.f32 %v6313_v45, %v2318_v50  ;;  %v7478_v54 = vld [vmem:[#allocation51_spill] sm:$0xff]  ;;  %v7479_v50 = vld [vmem:[#allocation45_spill] sm:$0xff] }
 0x41b   : > { %v2498_v62 = vmul.f32 1.442695, %v2463_v28 }
 0x41c   : > { %v2313_v40 = vpop.permute.xlu1 %2312 }
 0x41d   : > { %v2462_v37 = vsub.f32 %v6317_v25, %v2313_v40 }
 0x41e   : > { %v6748_v23 = vpop.eup %4957 }
 0x41f   : > { %v6750_v13 = vpop.eup %4959  ;;  %v2496_v30 = vmul.f32 1.442695, %v2462_v37  ;;  %4742 = vmatprep.mubr.msk.f32.mxu0 %vm2075_vm2, %v6748_v23 }
 0x420   : > { %v2358_v5 = vpop.permute.xlu1 %2357  ;;  %4743 = vmatmul.mubr.msk.f32.vlgmr.msra.gmra.mxu0 %vm2075_vm2, %v6750_v13 }
 0x421   : > { %4965 = vpow2.f32 %v2496_v30  ;;  %v2471_v35 = vsub.f32 %v6321_v17, %v2358_v5  ;;  %4783 = vmatpush3.msra.mxu0 %v6190_v20 }
 0x422   : > { %v4962_v45 = vpop.eup %4961  ;;  %4784 = vmatprep.subr.mxu0 %v6047_v52  ;;  %4967 = vpow2.f32 %v2498_v62  ;;  %v7481_v62 = vld [vmem:[#allocation49_spill] sm:$0xff] }
 0x423   : > { %v2514_v25 = vmul.f32 1.442695, %v2471_v35  ;;  %4785 = vmatpush3.msra.mxu0 %v6047_v52  ;;  %v2647_v38 = vsel %vm2075_vm2, %v4962_v45, 0.0  ;;  %v7482_v35 = vld [vmem:[#allocation48_spill] sm:$0xff] }
 0x424   : > { %4786 = vmatprep.subr.mxu0 %v6031_v8  ;;  %v2353_v12 = vpop.permute.xlu1 %2352  ;;  %2648 = vadd.xlane.f32.xlu0 %v2647_v38  ;;  %v2328_v43 = vpop.permute.xlu0 %2327  ;;  %v7483_v38 = vld [vmem:[#allocation46_spill] sm:$0xff] }
 0x425   : > { %4969 = vpow2.f32 %v2514_v25  ;;  %v2470_v56 = vsub.f32 %v6305_v53, %v2353_v12  ;;  %4787 = vmatpush3.msra.mxu0 %v6031_v8  ;;  %v2465_v17 = vsub.f32 %v6325_v46, %v2328_v43 }
 0x426   : > { %v4964_v20 = vpop.eup %4963  ;;  %4788 = vmatprep.subr.mxu0 %v6018_v59 }
 0x427   : > { %v2512_v57 = vmul.f32 1.442695, %v2470_v56  ;;  %4789 = vmatpush3.msra.mxu0 %v6018_v59  ;;  %4770 = vmatprep.mubr.msk.f32.mxu1 %vm2075_vm2, %v4964_v20  ;;  %v2644_v52 = vsel %vm2075_vm2, %v4964_v20, 0.0  ;;  %v2502_v53 = vmul.f32 1.442695, %v2465_v17 }
 0x428   : > { %4790 = vmatprep.subr.mxu0 %v6006_v4  ;;  %4771 = vmatmul.mubr.msk.f32.vlgmr.msra.gmra.mxu1 %vm2075_vm2, %v4962_v45  ;;  %v2323_v7 = vpop.permute.xlu0 %2322 }
 0x429   : > { %4971 = vpow2.f32 %v2512_v57  ;;  %4811 = vmatpush3.msra.mxu1 %v6196_v63  ;;  %2645 = vadd.xlane.f32.xlu0 %v2644_v52  ;;  %v2464_v8 = vsub.f32 %v6329_v60, %v2323_v7  ;;  %v7477_v63 = vld [vmem:[#allocation47_spill] sm:$0xff]  ;;  %v2623_v52 = vsel %vm2075_vm2, %v6750_v13, 0.0 }
 0x42a   : > { %4791 = vmatpush3.msra.mxu0 %v6006_v4  ;;  %4812 = vmatprep.subr.mxu1 %v6057_v44 }
 0x42b   : > { %v2500_v59 = vmul.f32 1.442695, %v2464_v8  ;;  %4792 = vmatprep.subr.mxu0 %v5994_v16  ;;  %4813 = vmatpush3.msra.mxu1 %v6057_v44 }
 0x42c   : > { %4793 = vmatpush3.msra.mxu0 %v5994_v16  ;;  %4814 = vmatprep.subr.mxu1 %v6039_v47  ;;  %v2368_v46 = vpop.permute.xlu1 %2367 }
 0x42d   : > { %4973 = vpow2.f32 %v2500_v59  ;;  %4794 = vmatprep.subr.mxu0 %v7477_v63  ;;  %4815 = vmatpush3.msra.mxu1 %v6039_v47  ;;  %v2473_v60 = vsub.f32 %v6333_v32, %v2368_v46  ;;  %v7480_v32 = vld [vmem:[#allocation50_spill] sm:$0xff]  ;;  %v2620_v46 = vsel %vm2075_vm2, %v6748_v23, 0.0 }
 0x42e   : > { %v6782_v4 = vpop.eup %4965  ;;  %4975 = vpow2.f32 %v2502_v53  ;;  %4795 = vmatpush3.msra.mxu0 %v7477_v63  ;;  %4816 = vmatprep.subr.mxu1 %v7478_v54 }
 0x42f   : > { %v2518_v44 = vmul.f32 1.442695, %v2473_v60  ;;  %4796 = vmatprep.subr.mxu0 %v7479_v50  ;;  %4817 = vmatpush3.msra.mxu1 %v7478_v54  ;;  %v4968_v16 = vpop.eup %4967 }
 0x430   : > { %4797 = vmatpush3.msra.mxu0 %v7479_v50  ;;  %4745 = vmatprep.mubr.msk.f32.mxu0 %vm2075_vm2, %v6782_v4  ;;  %v2363_v47 = vpop.permute.xlu1 %2362  ;;  %v2629_v13 = vsel %vm2075_vm2, %v4968_v16, 0.0 }
 0x431   : > { %4977 = vpow2.f32 %v2518_v44  ;;  %4818 = vmatprep.subr.mxu1 %v7480_v32  ;;  %v2472_v28 = vsub.f32 %v6339_v15, %v2363_v47  ;;  %4746 = vmatmul.mubr.msk.f32.gmra.mxu0 %vm2075_vm2, %v4968_v16 }
 0x432   : > { %v4970_v40 = vpop.eup %4969  ;;  %4819 = vmatpush3.msra.mxu1 %v7480_v32  ;;  %v2626_v32 = vsel %vm2075_vm2, %v6782_v4, 0.0 }
 0x433   : > { %v2516_v37 = vmul.f32 1.442695, %v2472_v28  ;;  %4820 = vmatprep.subr.mxu1 %v7481_v62  ;;  %v2653_v30 = vsel %vm2075_vm2, %v4970_v40, 0.0 }
 0x434   : > { %4821 = vmatpush3.msra.mxu1 %v7481_v62  ;;  %2654 = vadd.xlane.f32.xlu0 %v2653_v30  ;;  %v2338_v5 = vpop.permute.xlu0 %2337 }
 0x435   : > { %4979 = vpow2.f32 %v2516_v37  ;;  %4822 = vmatprep.subr.mxu1 %v7482_v35  ;;  %v2467_v45 = vsub.f32 %v6347_v55, %v2338_v5 }
 0x436   : > { %v4972_v15 = vpop.eup %4971  ;;  %4823 = vmatpush3.msra.mxu1 %v7482_v35 }
 0x437   : > { %v2506_v25 = vmul.f32 1.442695, %v2467_v45  ;;  %4824 = vmatprep.subr.mxu1 %v7483_v38  ;;  %4773 = vmatprep.mubr.msk.f32.mxu1 %vm2075_vm2, %v4972_v15  ;;  %v2650_v12 = vsel %vm2075_vm2, %v4972_v15, 0.0 }
 0x438   : > { %4825 = vmatpush3.msra.mxu1 %v7483_v38  ;;  %2651 = vadd.xlane.f32.xlu0 %v2650_v12  ;;  %v2333_v43 = vpop.permute.xlu0 %2332 }
 0x439   : > { %4981 = vpow2.f32 %v2506_v25  ;;  %4774 = vmatmul.mubr.msk.f32.gmra.mxu1 %vm2075_vm2, %v4970_v40  ;;  %v2466_v56 = vsub.f32 %v6355_v48, %v2333_v43 }
 0x43a   : > { %v4974_v55 = vpop.eup %4973 }
 0x43b   : > { %v4976_v20 = vpop.eup %4975  ;;  %v2504_v17 = vmul.f32 1.442695, %v2466_v56  ;;  %4748 = vmatprep.mubr.msk.f32.mxu0 %vm2075_vm2, %v4974_v55  ;;  %v2632_v25 = vsel %vm2075_vm2, %v4974_v55, 0.0 }
 0x43c   : > { %v2378_v57 = vpop.permute.xlu1 %2377  ;;  %4749 = vmatmul.mubr.msk.f32.gmra.mxu0 %vm2075_vm2, %v4976_v20  ;;  %v2635_v30 = vsel %vm2075_vm2, %v4976_v20, 0.0 }
 0x43d   : > { %4983 = vpow2.f32 %v2504_v17  ;;  %v2475_v7 = vsub.f32 %v6363_v36, %v2378_v57  ;;  %2624 = vadd.xlane.f32.xlu1 %v2623_v52 }
 0x43e   : > { %v4978_v8 = vpop.eup %4977 }
 0x43f   : > { %v2659_v53 = vsel %vm2075_vm2, %v4978_v8, 0.0  ;;  %v2522_v59 = vmul.f32 1.442695, %v2475_v7 }
 0x440   : > { %v2373_v48 = vpop.permute.xlu1 %2372  ;;  %2660 = vadd.xlane.f32.xlu0 %v2659_v53 }
 0x441   : > { %v2474_v63 = vsub.f32 %v6371_v29, %v2373_v48  ;;  %2621 = vadd.xlane.f32.xlu1 %v2620_v46  ;;  %4985 = vpow2.f32 %v2522_v59 }
 0x442   : > { %v4980_v60 = vpop.eup %4979 }
 0x443   : > { %v2520_v54 = vmul.f32 1.442695, %v2474_v63  ;;  %4776 = vmatprep.mubr.msk.f32.mxu1 %vm2075_vm2, %v4980_v60  ;;  %v2656_v16 = vsel %vm2075_vm2, %v4980_v60, 0.0  ;;  %v7484_v63 = vld [vmem:[#allocation32_spill] sm:$0xff] }
 0x444   : > { %4777 = vmatmul.mubr.msk.f32.gmra.mxu1 %vm2075_vm2, %v4978_v8  ;;  %v2388_v36 = vpop.permute.xlu0 %2387 }
 0x445   : > { %4987 = vpow2.f32 %v2520_v54  ;;  %v2477_v44 = vsub.f32 %v6379_v22, %v2388_v36  ;;  %2630 = vadd.xlane.f32.xlu1 %v2629_v13 }
 0x446   : > { %v4982_v50 = vpop.eup %4981 }
 0x447   : > { %v2641_v23 = vsel %vm2075_vm2, %v4982_v50, 0.0  ;;  %v2526_v47 = vmul.f32 1.442695, %v2477_v44 }
 0x448   : > { %2642 = vadd.xlane.f32.xlu0 %v2641_v23  ;;  %v2383_v29 = vpop.permute.xlu0 %2382 }
 0x449   : > { %v2476_v28 = vsub.f32 %v6385_v14, %v2383_v29  ;;  %2627 = vadd.xlane.f32.xlu1 %v2626_v32  ;;  %4989 = vpow2.f32 %v2526_v47  ;;  %v7486_v47 = vld [vmem:[#allocation33_spill] sm:$0xff] }
 0x44a   : > { %v4984_v40 = vpop.eup %4983 }
 0x44b   : > { %v2524_v37 = vmul.f32 1.442695, %v2476_v28  ;;  %4751 = vmatprep.mubr.msk.f32.mxu0 %vm2075_vm2, %v4984_v40  ;;  %v2638_v59 = vsel %vm2075_vm2, %v4984_v40, 0.0 }
 0x44c   : > { %v2428_v22 = vpop.permute.xlu1 %2427  ;;  %2657 = vadd.xlane.f32.xlu0 %v2656_v16  ;;  %4752 = vmatmul.mubr.msk.f32.gmra.mxu0 %vm2075_vm2, %v4982_v50  ;;  %v2398_v62 = vpop.permute.xlu0 %2397  ;;  %v7485_v50 = vld [vmem:[#allocation34_spill] sm:$0xff] }
 0x44d   : > { %4991 = vpow2.f32 %v2524_v37  ;;  %v2485_v4 = vsub.f32 %v6389_v49, %v2428_v22  ;;  %v2479_v14 = vsub.f32 %v6337_v2, %v2398_v62  ;;  %2636 = vadd.xlane.f32.xlu1 %v2635_v30  ;;  %v7487_v30 = vld [vmem:[#allocation36_spill] sm:$0xff] }
 0x44e   : > { %v4986_v38 = vpop.eup %4985 }
 0x44f   : > { %v2542_v5 = vmul.f32 1.442695, %v2485_v4  ;;  %v2530_v35 = vmul.f32 1.442695, %v2479_v14  ;;  %v2665_v57 = vsel %vm2075_vm2, %v4986_v38, 0.0  ;;  %v7488_v14 = vld [vmem:[#allocation31_spill] sm:$0xff] }
 0x450   : > { %v2423_v45 = vpop.permute.xlu1 %2422  ;;  %v2393_v15 = vpop.permute.xlu0 %2392 }
 0x451   : > { %4993 = vpow2.f32 %v2542_v5  ;;  %v2484_v12 = vsub.f32 %v6393_v27, %v2423_v45  ;;  %v2478_v43 = vsub.f32 %v6341_v18, %v2393_v15  ;;  %2633 = vadd.xlane.f32.xlu1 %v2632_v25 }
 0x452   : > { %v4988_v56 = vpop.eup %4987  ;;  %4995 = vpow2.f32 %v2530_v35 }
 0x453   : > { %v2540_v20 = vmul.f32 1.442695, %v2484_v12  ;;  %v2528_v17 = vmul.f32 1.442695, %v2478_v43  ;;  %4779 = vmatprep.mubr.msk.f32.mxu1 %vm2075_vm2, %v4988_v56  ;;  %v2662_v2 = vsel %vm2075_vm2, %v4988_v56, 0.0 }
 0x454   : > { %4780 = vmatmul.mubr.msk.f32.gmra.mxu1 %vm2075_vm2, %v4986_v38  ;;  %v2438_v49 = vpop.permute.xlu1 %2437  ;;  %2663 = vadd.xlane.f32.xlu0 %v2662_v2  ;;  %v2408_v55 = vpop.permute.xlu0 %2407  ;;  %v7489_v2 = vld [vmem:[#allocation37_spill] sm:$0xff] }
 0x455   : > { %4997 = vpow2.f32 %v2540_v20  ;;  %v2487_v27 = vsub.f32 %v6397_v0, %v2438_v49  ;;  %v2481_v18 = vsub.f32 %v6349_v24, %v2408_v55  ;;  %2666 = vadd.xlane.f32.xlu1 %v2665_v57 }
 0x456   : > { %4999 = vpow2.f32 %v2528_v17  ;;  %v4990_v48 = vpop.eup %4989 }
 0x457   : > { %v2546_v52 = vmul.f32 1.442695, %v2487_v27  ;;  %v2534_v7 = vmul.f32 1.442695, %v2481_v18  ;;  %v2671_v44 = vsel %vm2075_vm2, %v4990_v48, 0.0 }
 0x458   : > { %v2433_v8 = vpop.permute.xlu1 %2432  ;;  %v2403_v53 = vpop.permute.xlu0 %2402 }
 0x459   : > { %5001 = vpow2.f32 %v2546_v52  ;;  %v2486_v46 = vsub.f32 %v6401_v11, %v2433_v8  ;;  %v2480_v60 = vsub.f32 %v7484_v63, %v2403_v53  ;;  %2639 = vadd.xlane.f32.xlu1 %v2638_v59  ;;  %v7490_v8 = vld [vmem:[#allocation35_spill] sm:$0xff] }
 0x45a   : > { %v4992_v54 = vpop.eup %4991  ;;  %5003 = vpow2.f32 %v2534_v7 }
 0x45b   : > { %v2544_v36 = vmul.f32 1.442695, %v2486_v46  ;;  %v2532_v0 = vmul.f32 1.442695, %v2480_v60  ;;  %4798 = vmatprep.mubr.msk.f32.mxu0 %vm2075_vm2, %v4992_v54  ;;  %v2668_v22 = vsel %vm2075_vm2, %v4992_v54, 0.0 }
 0x45c   : > { %v2448_v24 = vpop.permute.xlu1 %2447  ;;  %4799 = vmatmul.mubr.msk.f32.vlgmr.msra.gmra.mxu0 %vm2075_vm2, %v4990_v48  ;;  %v2413_v13 = vpop.permute.xlu0 %2412 }
 0x45d   : > { %5005 = vpow2.f32 %v2544_v36  ;;  %v2489_v23 = vsub.f32 %v7485_v50, %v2448_v24  ;;  %v2482_v11 = vsub.f32 %v7486_v47, %v2413_v13  ;;  %2672 = vadd.xlane.f32.xlu1 %v2671_v44  ;;  %v7491_v44 = vld [vmem:[#allocation65_spill] sm:$0xff]  ;;  %v7492_v50 = vld [vmem:[#allocation67_spill] sm:$0xff] }
 0x45e   : > { %v4994_v29 = vpop.eup %4993  ;;  %5007 = vpow2.f32 %v2532_v0 }
 0x45f   : > { %v2550_v32 = vmul.f32 1.442695, %v2489_v23  ;;  %v2536_v28 = vmul.f32 1.442695, %v2482_v11  ;;  %v2695_v40 = vsel %vm2075_vm2, %v4994_v29, 0.0  ;;  %v4996_v62 = vpop.eup %4995  ;;  %v7493_v23 = vsub.f32 %v7491_v44, %v7492_v50  ;;  %v7519_v44 = vld [vmem:[#allocation57_spill] sm:$0xff] }
 0x460   : > { %v2443_v37 = vpop.permute.xlu1 %2442  ;;  %2696 = vadd.xlane.f32.xlu0 %v2695_v40  ;;  %v2418_v16 = vpop.permute.xlu0 %2417  ;;  %v2677_v12 = vsel %vm2075_vm2, %v4996_v62, 0.0  ;;  %v7520_v50 = vld [vmem:[#allocation58_spill] sm:$0xff] }
 0x461   : > { %5009 = vpow2.f32 %v2550_v32  ;;  %v2488_v4 = vsub.f32 %v7487_v30, %v2443_v37  ;;  %v2483_v5 = vsub.f32 %v7488_v14, %v2418_v16  ;;  %2669 = vadd.xlane.f32.xlu1 %v2668_v22  ;;  %v2260_v47 = vmul.f32 1.442695, %v7493_v23  ;;  %v7494_v32 = vld [vmem:[#allocation61_spill] sm:$0xff] }
 0x462   : > { %v4998_v35 = vpop.eup %4997  ;;  %5011 = vpow2.f32 %v2536_v28  ;;  %v7495_v28 = vld [vmem:[#allocation62_spill] sm:$0xff]  ;;  %v7498_v14 = vld [vmem:[#allocation69_spill] sm:$0xff]  ;;  %v7521_v23 = vsub.f32 %v7519_v44, %v7520_v50 }
 0x463   : > { %v5000_v45 = vpop.eup %4999  ;;  %v2548_v15 = vmul.f32 1.442695, %v2488_v4  ;;  %v2538_v25 = vmul.f32 1.442695, %v2483_v5  ;;  %4826 = vmatprep.mubr.msk.f32.mxu1 %vm2075_vm2, %v4998_v35  ;;  %v2692_v38 = vsel %vm2075_vm2, %v4998_v35, 0.0  ;;  %v7496_v40 = vsub.f32 %v7494_v32, %v7495_v28  ;;  %v7522_v32 = vld [vmem:[#allocation78_spill] sm:$0xff] }
 0x464   : > { %4801 = vmatprep.mubr.msk.f32.mxu0 %vm2075_vm2, %v5000_v45  ;;  %4827 = vmatmul.mubr.msk.f32.vlgmr.msra.gmra.mxu1 %vm2075_vm2, %v4994_v29  ;;  %v2674_v55 = vsel %vm2075_vm2, %v5000_v45, 0.0  ;;  %v7499_v5 = vsub.f32 %v7498_v14, %v6582_v3  ;;  %v7500_v45 = vld [vmem:[#allocation59_spill] sm:$0xff]  ;;  %v7506_v3 = vsub.f32 %v6647_v34, %v6657_v1 }
 0x465   : > { %5013 = vpow2.f32 %v2548_v15  ;;  %2693 = vadd.xlane.f32.xlu0 %v2692_v38  ;;  %4802 = vmatmul.mubr.msk.f32.gmra.mxu0 %vm2075_vm2, %v4996_v62  ;;  %v2244_v37 = vmul.f32 1.442695, %v7496_v40  ;;  %v7497_v62 = vsub.f32 %v6678_v51, %v6685_v39  ;;  %v7501_v15 = vld [vmem:[#allocation60_spill] sm:$0xff]  ;;  %v7503_v39 = vld [vmem:[#allocation55_spill] sm:$0xff] }
 0x466   : > { %v5002_v43 = vpop.eup %5001  ;;  %5015 = vpow2.f32 %v2538_v25  ;;  %2678 = vadd.xlane.f32.xlu1 %v2677_v12  ;;  %v2276_v35 = vmul.f32 1.442695, %v7499_v5  ;;  %v7502_v25 = vsub.f32 %v7500_v45, %v7501_v15  ;;  %v7504_v51 = vld [vmem:[#allocation56_spill] sm:$0xff]  ;;  %v7523_v28 = vld [vmem:[#allocation79_spill] sm:$0xff] }
 0x467   : > { %v2701_v56 = vsel %vm2075_vm2, %v5002_v43, 0.0  ;;  %v5004_v17 = vpop.eup %5003  ;;  %v2292_v30 = vmul.f32 1.442695, %v7497_v62  ;;  %v7524_v40 = vsub.f32 %v7522_v32, %v7523_v28 }
 0x468   : > { %v2453_v20 = vpop.permute.xlu1 %2452  ;;  %v2683_v59 = vsel %vm2075_vm2, %v5004_v17, 0.0  ;;  %v2258_v38 = vmul.f32 1.442695, %v7502_v25  ;;  %v2565_v25 = vld [vmem:[#allocation5 + $0x48] sm:$0xff] }
 0x469   : > { %v2490_v49 = vsub.f32 %v7489_v2, %v2453_v20  ;;  %2702 = vadd.xlane.f32.xlu0 %v2701_v56  ;;  %v7505_v56 = vsub.f32 %v7503_v39, %v7504_v51  ;;  %v2290_v2 = vmul.f32 1.442695, %v7506_v3  ;;  %v7529_v3 = vld [vmem:[#allocation40_spill] sm:$0xff] }
 0x46a   : > { %v5006_v57 = vpop.eup %5005  ;;  %2675 = vadd.xlane.f32.xlu1 %v2674_v55 }
 0x46b   : > { %v5008_v27 = vpop.eup %5007  ;;  %v2552_v18 = vmul.f32 1.442695, %v2490_v49  ;;  %4829 = vmatprep.mubr.msk.f32.mxu1 %vm2075_vm2, %v5006_v57  ;;  %v2698_v52 = vsel %vm2075_vm2, %v5006_v57, 0.0  ;;  %v2242_v20 = vmul.f32 1.442695, %v7505_v56  ;;  %v7507_v57 = vld [vmem:[#allocation63_spill] sm:$0xff] }
 0x46c   : > { %4804 = vmatprep.mubr.msk.f32.mxu0 %vm2075_vm2, %v5008_v27  ;;  %4830 = vmatmul.mubr.msk.f32.gmra.mxu1 %vm2075_vm2, %v5002_v43  ;;  %v2458_v7 = vpop.permute.xlu1 %2457  ;;  %v2680_v54 = vsel %vm2075_vm2, %v5008_v27, 0.0  ;;  %v7508_v27 = vld [vmem:[#allocation64_spill] sm:$0xff] }
 0x46d   : > { %5017 = vpow2.f32 %v2552_v18  ;;  %v2491_v53 = vsub.f32 %v7490_v8, %v2458_v7  ;;  %2699 = vadd.xlane.f32.xlu0 %v2698_v52  ;;  %4805 = vmatmul.mubr.msk.f32.gmra.mxu0 %vm2075_vm2, %v5004_v17  ;;  %v7509_v18 = vsub.f32 %v7507_v57, %v7508_v27  ;;  %v7510_v8 = vld [vmem:[#allocation43_spill] sm:$0xff] }
 0x46e   : > { %v5010_v48 = vpop.eup %5009  ;;  %2684 = vadd.xlane.f32.xlu1 %v2683_v59 }
 0x46f   : > { %v5012_v46 = vpop.eup %5011  ;;  %v2554_v63 = vmul.f32 1.442695, %v2491_v53  ;;  %v2707_v60 = vsel %vm2075_vm2, %v5010_v48, 0.0  ;;  %v2274_v52 = vmul.f32 1.442695, %v7509_v18  ;;  %v7511_v53 = vld [vmem:[#allocation52_spill] sm:$0xff] }
 0x470   : > { %4807 = vmatprep.mubr.msk.f32.mxu0 %vm2075_vm2, %v5012_v46  ;;  %v2686_v11 = vsel %vm2075_vm2, %v5012_v46, 0.0  ;;  %v6898_v43 = vpop.permute.xlu1 %2849  ;;  %v7512_v59 = vsub.f32 %v7510_v8, %v7511_v53  ;;  %v7514_v46 = vld [vmem:[#allocation44_spill] sm:$0xff]  ;;  %v2564_v8 = vld [vmem:[#allocation5 + $0x40] sm:$0xff] }
 0x471   : > { %5019 = vpow2.f32 %v2554_v63  ;;  %2708 = vadd.xlane.f32.xlu0 %v2707_v60 }
 0x472   : > { %v5014_v36 = vpop.eup %5013  ;;  %2681 = vadd.xlane.f32.xlu1 %v2680_v54  ;;  %5021 = vpow2.f32 %v2260_v47  ;;  %v2254_v34 = vmul.f32 1.442695, %v7512_v59  ;;  %v2240_v47 = vmul.f32 1.442695, %v7521_v23  ;;  %v7531_v59 = vld [vmem:[#allocation74_spill] sm:$0xff] }
 0x473   : > { %v5016_v0 = vpop.eup %5015  ;;  %4832 = vmatprep.mubr.msk.f32.mxu1 %vm2075_vm2, %v5014_v36  ;;  %v2704_v24 = vsel %vm2075_vm2, %v5014_v36, 0.0  ;;  %5023 = vpow2.f32 %v2244_v37  ;;  %v7516_v36 = vld [vmem:[#allocation53_spill] sm:$0xff]  ;;  %v2288_v37 = vmul.f32 1.442695, %v7524_v40  ;;  %v7537_v23 = vld [vmem:[#allocation70_spill] sm:$0xff] }
 0x474   : > { %4808 = vmatmul.mubr.msk.f32.gmra.mxu0 %vm2075_vm2, %v5016_v0  ;;  %4833 = vmatmul.mubr.msk.f32.gmra.mxu1 %vm2075_vm2, %v5010_v48  ;;  %v2689_v13 = vsel %vm2075_vm2, %v5016_v0, 0.0  ;;  %5025 = vpow2.f32 %v2292_v30  ;;  %v6911_v55 = vpop.permute.xlu1 %2884  ;;  %v7513_v48 = vld [vmem:[#allocation42_spill] sm:$0xff] }
 0x475   : > { %2705 = vadd.xlane.f32.xlu0 %v2704_v24  ;;  %5027 = vpow2.f32 %v2276_v35  ;;  %v7515_v63 = vsub.f32 %v7513_v48, %v7514_v46  ;;  %v7517_v0 = vld [vmem:[#allocation54_spill] sm:$0xff] }
 0x476   : > { %2690 = vadd.xlane.f32.xlu1 %v2689_v13  ;;  %5029 = vpow2.f32 %v2258_v38  ;;  %v7518_v24 = vsub.f32 %v7516_v36, %v7517_v0  ;;  %v7525_v30 = vld [vmem:[#allocation66_spill] sm:$0xff] }
 0x477   : > { %5031 = vpow2.f32 %v2242_v20  ;;  %v2256_v60 = vmul.f32 1.442695, %v7515_v63  ;;  %v7528_v20 = vld [vmem:[#allocation38_spill] sm:$0xff] }
 0x478   : > { %5033 = vpow2.f32 %v2290_v2  ;;  %v6923_v1 = vpop.permute.xlu1 %2844  ;;  %v2252_v13 = vmul.f32 1.442695, %v7518_v24  ;;  %v7530_v2 = vsub.f32 %v7528_v20, %v7529_v3  ;;  %v7534_v24 = vld [vmem:[#allocation39_spill] sm:$0xff] }
 0x479   : > { %5035 = vpow2.f32 %v2274_v52 }
 0x47a   : > { %v5018_v29 = vpop.eup %5017  ;;  %2687 = vadd.xlane.f32.xlu1 %v2686_v11  ;;  %5037 = vpow2.f32 %v2254_v34  ;;  %v2238_v57 = vmul.f32 1.442695, %v7530_v2  ;;  %v7532_v34 = vld [vmem:[#allocation75_spill] sm:$0xff]  ;;  %v7540_v2 = vld [vmem:[#allocation76_spill] sm:$0xff] }
 0x47b   : > { %4835 = vmatprep.mubr.msk.f32.mxu1 %vm2075_vm2, %v5018_v29  ;;  %v2710_v4 = vsel %vm2075_vm2, %v5018_v29, 0.0  ;;  %5039 = vpow2.f32 %v2256_v60  ;;  %v7533_v48 = vsub.f32 %v7531_v59, %v7532_v34 }
 0x47c   : > { %v6936_v29 = vpop.permute.xlu1 %2879  ;;  %5041 = vpow2.f32 %v2252_v13  ;;  %v7535_v13 = vld [vmem:[#allocation41_spill] sm:$0xff] }
 0x47d   : > { %5043 = vpow2.f32 %v2240_v47  ;;  %v2286_v46 = vmul.f32 1.442695, %v7533_v48  ;;  %v7536_v44 = vsub.f32 %v7534_v24, %v7535_v13  ;;  %v7538_v47 = vld [vmem:[#allocation71_spill] sm:$0xff]  ;;  %v2557_v48 = vld [vmem:[#allocation5 + $0x8] sm:$0xff] }
 0x47e   : > { %v5020_v16 = vpop.eup %5019  ;;  %5045 = vpow2.f32 %v2288_v37  ;;  %v7539_v32 = vsub.f32 %v7537_v23, %v7538_v47  ;;  %v2569_v24 = vld [vmem:[#allocation5 + $0x68] sm:$0xff] }
 0x47f   : > { %4836 = vmatmul.mubr.msk.f32.gmra.mxu1 %vm2075_vm2, %v5020_v16  ;;  %v2713_v22 = vsel %vm2075_vm2, %v5020_v16, 0.0  ;;  %v6895_v12 = vpop.eup %5021  ;;  %v2236_v50 = vmul.f32 1.442695, %v7536_v44  ;;  %v2601_v47 = vmul.f32 %v6721_v26, %v2569_v24  ;;  %v2563_v26 = vld [vmem:[#allocation5 + $0x38] sm:$0xff]  ;;  %v2560_v24 = vld [vmem:[#allocation5 + $0x20] sm:$0xff] }
 0x480   : > { %2714 = vadd.xlane.f32.xlu0 %v2713_v22  ;;  %v6903_v17 = vpop.eup %5023  ;;  %v6944_v22 = vpop.permute.xlu0 %2889  ;;  %v2270_v28 = vmul.f32 1.442695, %v7539_v32 }
 0x481   : > { %v6909_v49 = vpop.eup %5025  ;;  %v6947_v62 = vpop.permute.xlu1 %2839 }
 0x482   : > { %v6917_v7 = vpop.eup %5027 }
 0x483   : > { %v5030_v54 = vpop.eup %5029 }
 0x484   : > { %2711 = vadd.xlane.f32.xlu0 %v2710_v4  ;;  %v6934_v11 = vpop.eup %5031  ;;  %v7526_v4 = vld [vmem:[#allocation68_spill] sm:$0xff]  ;;  %v6955_v15 = vpop.permute.xlu0 %2929 }
 0x485   : > { %v6942_v16 = vpop.eup %5033  ;;  %v7527_v14 = vsub.f32 %v7525_v30, %v7526_v4  ;;  %v6957_v39 = vpop.permute.xlu1 %2919  ;;  %v2567_v30 = vld [vmem:[#allocation5 + $0x58] sm:$0xff] }
 0x486   : > { %v6952_v35 = vpop.eup %5035 }
 0x487   : > { %v2272_v5 = vmul.f32 1.442695, %v7527_v14  ;;  %v5038_v45 = vpop.eup %5037  ;;  %v2599_v14 = vmul.f32 %v5030_v54, %v2567_v30 }
 0x488   : > { %v5040_v38 = vpop.eup %5039  ;;  %v2597_v51 = vmul.f32 %v5038_v45, %v2565_v25  ;;  %v2566_v25 = vld [vmem:[#allocation5 + $0x50] sm:$0xff] }
 0x489   : > { %5047 = vpow2.f32 %v2272_v5  ;;  %v6959_v56 = vpop.eup %5041  ;;  %v6967_v53 = vpop.permute.xlu1 %2959  ;;  %v2598_v3 = vmul.f32 %v5040_v38, %v2566_v25  ;;  %v2559_v25 = vld [vmem:[#allocation5 + $0x18] sm:$0xff] }
 0x48a   : > { %v6964_v18 = vpop.eup %5043  ;;  %5049 = vpow2.f32 %v2238_v57  ;;  %v2596_v63 = vmul.f32 %v6959_v56, %v2564_v8  ;;  %v7541_v57 = vld [vmem:[#allocation77_spill] sm:$0xff] }
 0x48b   : > { %2874 = vperm.xlu1 %4931, %v6895_v12   ;;  %v6974_v60 = vpop.eup %5045  ;;  %5051 = vpow2.f32 %v2286_v46  ;;  %v7543_v46 = vld [vmem:[#allocation72_spill] sm:$0xff] }
 0x48c   : > { %5053 = vpow2.f32 %v2236_v50  ;;  %v2556_v50 = vld [vmem:[#allocation5] sm:$0xff] }
 0x48d   : > { %v6986_v37 = vpop.permute.xlu1 %2969  ;;  %5055 = vpow2.f32 %v2270_v28 }
 0x48f   : > { %2834 = vperm.xlu1 %4931, %v6903_v17  }
 0x491   : > { %v6989_v4 = vpop.permute.xlu1 %2924 }
 0x493   : > { %2954 = vperm.xlu1 %4931, %v6909_v49  }
 0x495   : > { %v6997_v34 = vpop.permute.xlu1 %2964 }
 0x496   : > { %v6984_v40 = vpop.eup %5047 }
 0x497   : > { %2914 = vperm.xlu1 %4931, %v6917_v7  }
 0x49b   : > { %2869 = vperm.xlu1 %4931, %v5030_v54  }
 0x49f   : > { %2829 = vperm.xlu1 %4931, %v6934_v11  }
 0x4a3   : > { %2949 = vperm.xlu1 %4931, %v6942_v16  }
 0x4a7   : > { %2909 = vperm.xlu1 %4931, %v6952_v35  }
 0x4ab   : > { %2864 = vperm.xlu1 %4931, %v5040_v38  }
 0x4ad   : > { %v2649_v27 = vpop.xlane.xlu0 %2648 }
 0x4ae   : > { %v2725_v52 = vadd.f32 %v2649_v27, %v2597_v51  ;;  %v5050_v51 = vpop.eup %5049  ;;  %v7542_v27 = vsub.f32 %v7540_v2, %v7541_v57  ;;  %v2558_v2 = vld [vmem:[#allocation5 + $0x10] sm:$0xff] }
 0x4af   : > { %2824 = vperm.xlu1 %4931, %v6964_v18   ;;  %v6995_v59 = vpop.eup %5051 }
 0x4b0   : > { %2757 = vst.msk [vmem:[#allocation5 + $0x48] sm:$0xff] %vm1430_vm1, %v2725_v52  ;;  %v2284_v52 = vmul.f32 1.442695, %v7542_v27  ;;  %v5054_v54 = vpop.eup %5053  ;;  %v2595_v27 = vmul.f32 %v6710_v33, %v2563_v26  ;;  %v2562_v26 = vld [vmem:[#allocation5 + $0x30] sm:$0xff] }
 0x4b1   : > { %v7004_v13 = vpop.eup %5055  ;;  %v2588_v28 = vmul.f32 %v5054_v54, %v2556_v50 }
 0x4b2   : > { %v2646_v36 = vpop.xlane.xlu0 %2645  ;;  %5057 = vpow2.f32 %v2284_v52 }
 0x4b3   : > { %v2724_v0 = vadd.f32 %v2646_v36, %v2596_v63  ;;  %2944 = vperm.xlu1 %4931, %v6974_v60   ;;  %v7544_v63 = vld [vmem:[#allocation73_spill] sm:$0xff] }
 0x4b4   : > { %v7545_v36 = vsub.f32 %v7543_v46, %v7544_v63  ;;  %v2561_v63 = vld [vmem:[#allocation5 + $0x28] sm:$0xff] }
 0x4b5   : > { %2756 = vst.msk [vmem:[#allocation5 + $0x40] sm:$0xff] %vm1430_vm1, %v2724_v0  ;;  %v2589_v0 = vmul.f32 %v5050_v51, %v2557_v48 }
 0x4b6   : > { %v2268_v38 = vmul.f32 1.442695, %v7545_v36 }
 0x4b7   : > { %2904 = vperm.xlu1 %4931, %v6984_v40  }
 0x4b8   : > { %5059 = vpow2.f32 %v2268_v38 }
 0x4bb   : > { %2859 = vperm.xlu1 %4931, %v5038_v45  }
 0x4bc   : > { %v3656_v30 = vld [vmem:[#allocation5 + $0x40] sm:$0xff] }
 0x4bd   : > { %v2655_v5 = vpop.xlane.xlu0 %2654  ;;  %5061 = vrcp.f32 %v3656_v30 }
 0x4be   : > { %v2727_v20 = vadd.f32 %v2655_v5, %v2599_v14 }
 0x4bf   : > { %2819 = vperm.xlu1 %4931, %v5050_v51  }
 0x4c0   : > { %2759 = vst.msk [vmem:[#allocation5 + $0x58] sm:$0xff] %vm1430_vm1, %v2727_v20  ;;  %v2591_v20 = vmul.f32 %v6934_v11, %v2559_v25 }
 0x4c1   : > { %v2652_v8 = vpop.xlane.xlu0 %2651 }
 0x4c2   : > { %v2726_v45 = vadd.f32 %v2652_v8, %v2598_v3  ;;  %v2590_v8 = vmul.f32 %v6964_v18, %v2558_v2  ;;  %v2594_v2 = vmul.f32 %v6716_v21, %v2562_v26  ;;  %v2582_v26 = vld [vmem:[#allocation5 + $0xd0] sm:$0xff] }
 0x4c3   : > { %2939 = vperm.xlu1 %4931, %v6995_v59  }
 0x4c4   : > { %2758 = vst.msk [vmem:[#allocation5 + $0x50] sm:$0xff] %vm1430_vm1, %v2726_v45  ;;  %v7016_v45 = vpop.eup %5057 }
 0x4c5   : > { %v5060_v38 = vpop.eup %5059 }
 0x4c6   : > { %v2625_v44 = vpop.xlane.xlu1 %2624 }
 0x4c7   : > { %v2717_v23 = vadd.f32 %v2625_v44, %v2589_v0  ;;  %2899 = vperm.xlu1 %4931, %v7004_v13   ;;  %v3659_v30 = vld [vmem:[#allocation5 + $0x58] sm:$0xff] }
 0x4c9   : > { %2749 = vst.msk [vmem:[#allocation5 + $0x8] sm:$0xff] %vm1430_vm1, %v2717_v23  ;;  %v2661_v32 = vpop.xlane.xlu0 %2660  ;;  %v2592_v23 = vmul.f32 %v6903_v17, %v2560_v24 }
 0x4ca   : > { %v2729_v14 = vadd.f32 %v2661_v32, %v2601_v47  ;;  %v2622_v5 = vpop.xlane.xlu1 %2621  ;;  %v2570_v47 = vld [vmem:[#allocation5 + $0x70] sm:$0xff] }
 0x4cb   : > { %v2716_v51 = vadd.f32 %v2622_v5, %v2588_v28  ;;  %2854 = vperm.xlu1 %4931, %v6959_v56   ;;  %v2568_v56 = vld [vmem:[#allocation5 + $0x60] sm:$0xff]  ;;  %v2571_v28 = vld [vmem:[#allocation5 + $0x78] sm:$0xff] }
 0x4cc   : > { %2761 = vst.msk [vmem:[#allocation5 + $0x68] sm:$0xff] %vm1430_vm1, %v2729_v14  ;;  %v2600_v11 = vmul.f32 %v6895_v12, %v2568_v56  ;;  %v5062_v12 = vpop.eup %5061  ;;  %v2602_v14 = vmul.f32 %v6713_v31, %v2570_v47  ;;  %v2603_v25 = vmul.f32 %v6695_v6, %v2571_v28 }
 0x4cd   : > { %2748 = vst.msk [vmem:[#allocation5] sm:$0xff] %vm1430_vm1, %v2716_v51 }
 0x4ce   : > { %v2631_v3 = vpop.xlane.xlu1 %2630 }
 0x4cf   : > { %v2719_v57 = vadd.f32 %v2631_v3, %v2591_v20  ;;  %2814 = vperm.xlu1 %4931, %v5054_v54   ;;  %v2593_v54 = vmul.f32 %v6724_v19, %v2561_v63  ;;  %v2572_v63 = vld [vmem:[#allocation5 + $0x80] sm:$0xff] }
 0x4d1   : > { %2751 = vst.msk [vmem:[#allocation5 + $0x18] sm:$0xff] %vm1430_vm1, %v2719_v57  ;;  %v2643_v52 = vpop.xlane.xlu0 %2642 }
 0x4d2   : > { %v2723_v48 = vadd.f32 %v2643_v52, %v2595_v27  ;;  %v2628_v46 = vpop.xlane.xlu1 %2627  ;;  %v2573_v27 = vld [vmem:[#allocation5 + $0x88] sm:$0xff] }
 0x4d3   : > { %v2718_v36 = vadd.f32 %v2628_v46, %v2590_v8  ;;  %2934 = vperm.xlu1 %4931, %v7016_v45   ;;  %v2605_v6 = vmul.f32 %v7004_v13, %v2573_v27  ;;  %v2581_v8 = vld [vmem:[#allocation5 + $0xc8] sm:$0xff] }
 0x4d4   : > { %2755 = vst.msk [vmem:[#allocation5 + $0x38] sm:$0xff] %vm1430_vm1, %v2723_v48  ;;  %v3658_v48 = vld [vmem:[#allocation5 + $0x50] sm:$0xff] }
 0x4d5   : > { %2750 = vst.msk [vmem:[#allocation5 + $0x10] sm:$0xff] %vm1430_vm1, %v2718_v36  ;;  %v2658_v33 = vpop.xlane.xlu0 %2657 }
 0x4d6   : > { %v2728_v18 = vadd.f32 %v2658_v33, %v2600_v11  ;;  %v2637_v0 = vpop.xlane.xlu1 %2636  ;;  %v2613_v11 = vmul.f32 %v6995_v59, %v2581_v8  ;;  %v2604_v33 = vmul.f32 %v5060_v38, %v2572_v63 }
 0x4d7   : > { %v2721_v44 = vadd.f32 %v2637_v0, %v2593_v54  ;;  %2894 = vperm.xlu1 %4931, %v5060_v38  }
 0x4d8   : > { %2760 = vst.msk [vmem:[#allocation5 + $0x60] sm:$0xff] %vm1430_vm1, %v2728_v18  ;;  %v3651_v50 = vld [vmem:[#allocation5 + $0x18] sm:$0xff]  ;;  %v3661_v18 = vld [vmem:[#allocation5 + $0x68] sm:$0xff] }
 0x4d9   : > { %2753 = vst.msk [vmem:[#allocation5 + $0x28] sm:$0xff] %vm1430_vm1, %v2721_v44  ;;  %5063 = vrcp.f32 %v3651_v50  ;;  %v2580_v44 = vld [vmem:[#allocation5 + $0xc0] sm:$0xff]  ;;  %v2575_v50 = vld [vmem:[#allocation5 + $0x98] sm:$0xff] }
 0x4da   : > { %v2634_v32 = vpop.xlane.xlu1 %2633  ;;  %5065 = vrcp.f32 %v3659_v30  ;;  %v2612_v59 = vmul.f32 %v7016_v45, %v2580_v44  ;;  %v2607_v38 = vmul.f32 %v6952_v35, %v2575_v50 }
 0x4db   : > { %v2720_v19 = vadd.f32 %v2634_v32, %v2592_v23  ;;  %3754 = vperm.xlu1 %4931, %v5062_v12   ;;  %v2583_v32 = vld [vmem:[#allocation5 + $0xd8] sm:$0xff] }
 0x4dc   : > { %v3650_v17 = vld [vmem:[#allocation5 + $0x10] sm:$0xff] }
 0x4dd   : > { %2752 = vst.msk [vmem:[#allocation5 + $0x20] sm:$0xff] %vm1430_vm1, %v2720_v19  ;;  %v2664_v5 = vpop.xlane.xlu0 %2663  ;;  %5067 = vrcp.f32 %v3650_v17  ;;  %v2574_v19 = vld [vmem:[#allocation5 + $0x90] sm:$0xff] }
 0x4de   : > { %v2730_v51 = vadd.f32 %v2664_v5, %v2602_v14  ;;  %v2667_v20 = vpop.xlane.xlu1 %2666  ;;  %v2615_v5 = vmul.f32 %v6942_v16, %v2583_v32 }
 0x4df   : > { %v2731_v3 = vadd.f32 %v2667_v20, %v2603_v25  ;;  %v2606_v20 = vmul.f32 %v6984_v40, %v2574_v19 }
 0x4e0   : > { %2762 = vst.msk [vmem:[#allocation5 + $0x70] sm:$0xff] %vm1430_vm1, %v2730_v51  ;;  %v3653_v57 = vld [vmem:[#allocation5 + $0x28] sm:$0xff]  ;;  %v3655_v51 = vld [vmem:[#allocation5 + $0x38] sm:$0xff] }
 0x4e1   : > { %2763 = vst.msk [vmem:[#allocation5 + $0x78] sm:$0xff] %vm1430_vm1, %v2731_v3  ;;  %5069 = vrcp.f32 %v3653_v57  ;;  %v2577_v3 = vld [vmem:[#allocation5 + $0xa8] sm:$0xff]  ;;  %v3660_v57 = vld [vmem:[#allocation5 + $0x60] sm:$0xff] }
 0x4e2   : > { %v2640_v31 = vpop.xlane.xlu1 %2639  ;;  %5071 = vrcp.f32 %v3658_v48 }
 0x4e3   : > { %v2722_v52 = vadd.f32 %v2640_v31, %v2594_v2  ;;  %5073 = vrcp.f32 %v3661_v18  ;;  %v2614_v31 = vmul.f32 %v6974_v60, %v2582_v26  ;;  %v2579_v18 = vld [vmem:[#allocation5 + $0xb8] sm:$0xff] }
 0x4e4   : > { %v3652_v47 = vld [vmem:[#allocation5 + $0x20] sm:$0xff]  ;;  %v2611_v50 = vmul.f32 %v6701_v42, %v2579_v18  ;;  %v2587_v42 = vld [vmem:[#allocation5 + $0xf8] sm:$0xff] }
 0x4e5   : > { %2754 = vst.msk [vmem:[#allocation5 + $0x30] sm:$0xff] %vm1430_vm1, %v2722_v52  ;;  %5075 = vrcp.f32 %v3652_v47  ;;  %v2609_v52 = vmul.f32 %v6727_v61, %v2577_v3 }
 0x4e6   : > { %v5064_v56 = vpop.eup %5063  ;;  %v2673_v46 = vpop.xlane.xlu1 %2672  ;;  %5077 = vrcp.f32 %v3655_v51  ;;  %v2586_v51 = vld [vmem:[#allocation5 + $0xf0] sm:$0xff] }
 0x4e7   : > { %v2733_v36 = vadd.f32 %v2673_v46, %v2605_v6  ;;  %3729 = vperm.xlu0 %4932, %v5064_v56   ;;  %v5066_v54 = vpop.eup %5065  ;;  %v2585_v6 = vld [vmem:[#allocation5 + $0xe8] sm:$0xff]  ;;  %v2576_v56 = vld [vmem:[#allocation5 + $0xa0] sm:$0xff]  ;;  %5079 = vrcp.f32 %v3660_v57 }
 0x4e8   : > { %v2617_v63 = vmul.f32 %v6731_v9, %v2585_v6  ;;  %v2608_v61 = vmul.f32 %v6917_v7, %v2576_v56 }
 0x4e9   : > { %2765 = vst.msk [vmem:[#allocation5 + $0x88] sm:$0xff] %vm1430_vm1, %v2733_v36  ;;  %v2697_v21 = vpop.xlane.xlu0 %2696  ;;  %v3663_v36 = vld [vmem:[#allocation5 + $0x78] sm:$0xff] }
 0x4ea   : > { %v2741_v0 = vadd.f32 %v2697_v21, %v2613_v11  ;;  %v2670_v24 = vpop.xlane.xlu1 %2669  ;;  %v5068_v23 = vpop.eup %5067  ;;  %v2584_v21 = vld [vmem:[#allocation5 + $0xe0] sm:$0xff] }
 0x4eb   : > { %v2732_v13 = vadd.f32 %v2670_v24, %v2604_v33  ;;  %3769 = vperm.xlu0 %4932, %v5066_v54   ;;  %v2616_v24 = vmul.f32 %v6909_v49, %v2584_v21 }
 0x4ec   : > { %2773 = vst.msk [vmem:[#allocation5 + $0xc8] sm:$0xff] %vm1430_vm1, %v2741_v0  ;;  %v3654_v9 = vld [vmem:[#allocation5 + $0x30] sm:$0xff] }
 0x4ed   : > { %2764 = vst.msk [vmem:[#allocation5 + $0x80] sm:$0xff] %vm1430_vm1, %v2732_v13 }
 0x4ee   : > { %v2694_v12 = vpop.xlane.xlu0 %2693  ;;  %v5070_v25 = vpop.eup %5069 }
 0x4ef   : > { %v2740_v28 = vadd.f32 %v2694_v12, %v2612_v59  ;;  %v2679_v30 = vpop.xlane.xlu1 %2678  ;;  %3724 = vperm.xlu0 %4932, %v5068_v23   ;;  %v5072_v16 = vpop.eup %5071  ;;  %v2578_v23 = vld [vmem:[#allocation5 + $0xb0] sm:$0xff] }
 0x4f0   : > { %v2735_v14 = vadd.f32 %v2679_v30, %v2607_v38  ;;  %v5074_v60 = vpop.eup %5073  ;;  %v3662_v38 = vld [vmem:[#allocation5 + $0x70] sm:$0xff]  ;;  %v2610_v49 = vmul.f32 %v6739_v10, %v2578_v23 }
 0x4f1   : > { %2772 = vst.msk [vmem:[#allocation5 + $0xc0] sm:$0xff] %vm1430_vm1, %v2740_v28 }
 0x4f2   : > { %2767 = vst.msk [vmem:[#allocation5 + $0x98] sm:$0xff] %vm1430_vm1, %v2735_v14  ;;  %v2703_v45 = vpop.xlane.xlu0 %2702  ;;  %v5076_v44 = vpop.eup %5075 }
 0x4f3   : > { %v2743_v35 = vadd.f32 %v2703_v45, %v2615_v5  ;;  %v2676_v17 = vpop.xlane.xlu1 %2675  ;;  %3739 = vperm.xlu0 %4932, %v5070_v25   ;;  %v5078_v12 = vpop.eup %5077  ;;  %v2619_v5 = vmul.f32 %v6735_v41, %v2587_v42  ;;  %v3920_v25 = vld [vmem:[%s7293_s7] sm:$0xff]  ;;  %v3922_v41 = vld [vmem:[%s7293_s7 + $0x10] sm:$0xff] }
 0x4f4   : > { %v2734_v2 = vadd.f32 %v2676_v17, %v2606_v20  ;;  %v5080_v30 = vpop.eup %5079 }
 0x4f5   : > { %2775 = vst.msk [vmem:[#allocation5 + $0xd8] sm:$0xff] %vm1430_vm1, %v2743_v35  ;;  %v2618_v35 = vmul.f32 %v6743_v58, %v2586_v51  ;;  %v3907_v51 = vld [vmem:[#allocation15 + $0x18] sm:$0xff] }
 0x4f6   : > { %2766 = vst.msk [vmem:[#allocation5 + $0x90] sm:$0xff] %vm1430_vm1, %v2734_v2  ;;  %v2700_v27 = vpop.xlane.xlu0 %2699  ;;  %4093 = vmatprep.mubr.f32.mxu1 %v3907_v51  ;;  %v2985_v51 = vmul.f32 0.0, %v6936_v29 }
 0x4f7   : > { %v2742_v40 = vadd.f32 %v2700_v27, %v2614_v31  ;;  %v2685_v8 = vpop.xlane.xlu1 %2684  ;;  %3764 = vperm.xlu0 %4932, %v5072_v16   ;;  %v4161_v31 = vld [vmem:[%s7294_s8] sm:$0xff]  ;;  %v4163_v27 = vld [vmem:[%s7294_s8 + $0x10] sm:$0xff] }
 0x4f8   : > { %v3672_v48 = vld [vmem:[#allocation5 + $0xc0] sm:$0xff]  ;;  %v2737_v46 = vadd.f32 %v2685_v8, %v2609_v52 }
 0x4f9   : > { %5081 = vrcp.f32 %v3672_v48  ;;  %2774 = vst.msk [vmem:[#allocation5 + $0xd0] sm:$0xff] %vm1430_vm1, %v2742_v40  ;;  %v3667_v14 = vld [vmem:[#allocation5 + $0x98] sm:$0xff]  ;;  %v4189_v40 = vld [vmem:[%s7295_s9] sm:$0xff]  ;;  %v4191_v48 = vld [vmem:[%s7295_s9 + $0x10] sm:$0xff] }
 0x4fa   : > { %2769 = vst.msk [vmem:[#allocation5 + $0xa8] sm:$0xff] %vm1430_vm1, %v2737_v46  ;;  %v2709_v11 = vpop.xlane.xlu0 %2708  ;;  %5083 = vrcp.f32 %v3663_v36 }
 0x4fb   : > { %v2745_v33 = vadd.f32 %v2709_v11, %v2617_v63  ;;  %v2682_v54 = vpop.xlane.xlu1 %2681  ;;  %3779 = vperm.xlu0 %4932, %v5074_v60   ;;  %5085 = vrcp.f32 %v3654_v9  ;;  %v3657_v9 = vld [vmem:[#allocation5 + $0x48] sm:$0xff] }
 0x4fc   : > { %v2736_v0 = vadd.f32 %v2682_v54, %v2608_v61  ;;  %5087 = vrcp.f32 %v3662_v38  ;;  %v3675_v20 = vld [vmem:[#allocation5 + $0xd8] sm:$0xff]  ;;  %v3648_v38 = vld [vmem:[#allocation5] sm:$0xff] }
 0x4fd   : > { %2777 = vst.msk [vmem:[#allocation5 + $0xe8] sm:$0xff] %vm1430_vm1, %v2745_v33  ;;  %5089 = vrcp.f32 %v3667_v14 }
 0x4fe   : > { %2768 = vst.msk [vmem:[#allocation5 + $0xa0] sm:$0xff] %vm1430_vm1, %v2736_v0  ;;  %v2706_v13 = vpop.xlane.xlu0 %2705  ;;  %5091 = vrcp.f32 %v3675_v20 }
 0x4ff   : > { %v2744_v59 = vadd.f32 %v2706_v13, %v2616_v24  ;;  %v2691_v7 = vpop.xlane.xlu1 %2690  ;;  %3734 = vperm.xlu0 %4932, %v5076_v44   ;;  %v3666_v24 = vld [vmem:[#allocation5 + $0x90] sm:$0xff] }
 0x500   : > { %v2739_v47 = vadd.f32 %v2691_v7, %v2611_v50  ;;  %v3674_v58 = vld [vmem:[#allocation5 + $0xd0] sm:$0xff]  ;;  %v3649_v50 = vld [vmem:[#allocation5 + $0x8] sm:$0xff] }
 0x501   : > { %2776 = vst.msk [vmem:[#allocation5 + $0xe0] sm:$0xff] %vm1430_vm1, %v2744_v59  ;;  %v3669_v2 = vld [vmem:[#allocation5 + $0xa8] sm:$0xff] }
 0x502   : > { %2771 = vst.msk [vmem:[#allocation5 + $0xb8] sm:$0xff] %vm1430_vm1, %v2739_v47  ;;  %5093 = vrcp.f32 %v3669_v2  ;;  %v3673_v7 = vld [vmem:[#allocation5 + $0xc8] sm:$0xff]  ;;  %v4164_v2 = vld [vmem:[%s7294_s8 + $0x18] sm:$0xff] }
 0x503   : > { %v2688_v32 = vpop.xlane.xlu1 %2687  ;;  %3749 = vperm.xlu0 %4932, %v5078_v12   ;;  %5095 = vrcp.f32 %v3674_v58  ;;  %v3665_v47 = vld [vmem:[#allocation5 + $0x88] sm:$0xff] }
 0x504   : > { %v2738_v28 = vadd.f32 %v2688_v32, %v2610_v49  ;;  %v3677_v6 = vld [vmem:[#allocation5 + $0xe8] sm:$0xff]  ;;  %v3664_v32 = vld [vmem:[#allocation5 + $0x80] sm:$0xff] }
 0x505   : > { %5097 = vrcp.f32 %v3677_v6  ;;  %v3668_v56 = vld [vmem:[#allocation5 + $0xa0] sm:$0xff]  ;;  %v7120_v6 = vpop.f32.mrf.mxu0 }
 0x506   : > { %v5082_v19 = vpop.eup %5081  ;;  %2770 = vst.msk [vmem:[#allocation5 + $0xb0] sm:$0xff] %vm1430_vm1, %v2738_v28  ;;  %5099 = vrcp.f32 %v3668_v56 }
 0x507   : > { %3834 = vperm.xlu1 %4931, %v5082_v19   ;;  %3774 = vperm.xlu0 %4932, %v5080_v30   ;;  %v5084_v45 = vpop.eup %5083  ;;  %v7082_v28 = vpop.permute.xlu1 %2874 }
 0x508   : > { %v5086_v3 = vpop.eup %5085  ;;  %v3676_v36 = vld [vmem:[#allocation5 + $0xe0] sm:$0xff] }
 0x509   : > { %v2715_v10 = vpop.xlane.xlu0 %2714  ;;  %v5088_v16 = vpop.eup %5087  ;;  %v3671_v63 = vld [vmem:[#allocation5 + $0xb8] sm:$0xff] }
 0x50a   : > { %v2747_v26 = vadd.f32 %v2715_v10, %v2619_v5  ;;  %v5090_v52 = vpop.eup %5089  ;;  %5101 = vrcp.f32 %v3671_v63  ;;  %v3905_v5 = vld [vmem:[#allocation15 + $0x8] sm:$0xff] }
 0x50b   : > { %3926 = vperm.xlu1 %4931, %v3920_v25   ;;  %3789 = vperm.xlu0 %4932, %v5084_v45   ;;  %v5092_v8 = vpop.eup %5091  ;;  %5103 = vrcp.f32 %v3676_v36  ;;  %v7084_v19 = vpop.permute.xlu1 %2834  ;;  %v3921_v45 = vld [vmem:[%s7293_s7 + $0x8] sm:$0xff] }
 0x50c   : > { %2779 = vst.msk [vmem:[#allocation5 + $0xf8] sm:$0xff] %vm1430_vm1, %v2747_v26  ;;  %4008 = vmatprep.mubr.f32.mxu0 %v3905_v5  ;;  %v3923_v26 = vld [vmem:[%s7293_s7 + $0x18] sm:$0xff]  ;;  %v2986_v5 = vmul.f32 0.0, %v6911_v55 }
 0x50d   : > { %v2712_v17 = vpop.xlane.xlu0 %2711  ;;  %v3670_v33 = vld [vmem:[#allocation5 + $0xb0] sm:$0xff] }
 0x50e   : > { %v2746_v57 = vadd.f32 %v2712_v17, %v2618_v35 }
 0x50f   : > { %3936 = vperm.xlu1 %4931, %v3922_v41   ;;  %3744 = vperm.xlu0 %4932, %v5086_v3   ;;  %v5094_v46 = vpop.eup %5093  ;;  %v7086_v25 = vpop.permute.xlu1 %2954  ;;  %v4162_v41 = vld [vmem:[%s7294_s8 + $0x8] sm:$0xff] }
 0x510   : > { %2778 = vst.msk [vmem:[#allocation5 + $0xf0] sm:$0xff] %vm1430_vm1, %v2746_v57  ;;  %v5096_v60 = vpop.eup %5095 }
 0x512   : > { %v5098_v11 = vpop.eup %5097 }
 0x513   : > { %4167 = vperm.xlu1 %4931, %v4161_v31   ;;  %3784 = vperm.xlu0 %4932, %v5088_v16   ;;  %v3679_v61 = vld [vmem:[#allocation5 + $0xf8] sm:$0xff]  ;;  %v5100_v21 = vpop.eup %5099  ;;  %v7091_v20 = vpop.permute.xlu1 %2914  ;;  %v4190_v16 = vld [vmem:[%s7295_s9 + $0x8] sm:$0xff] }
 0x514   : > { %5105 = vrcp.f32 %v3679_v61 }
 0x515   : > { %5107 = vrcp.f32 %v3670_v33 }
 0x517   : > { %4177 = vperm.xlu1 %4931, %v4163_v27   ;;  %3809 = vperm.xlu0 %4932, %v5090_v52   ;;  %v5102_v54 = vpop.eup %5101  ;;  %v3678_v18 = vld [vmem:[#allocation5 + $0xf0] sm:$0xff]  ;;  %v7101_v17 = vpop.permute.xlu1 %2869  ;;  %v4192_v52 = vld [vmem:[%s7295_s9 + $0x18] sm:$0xff] }
 0x518   : > { %5109 = vrcp.f32 %v3678_v18  ;;  %v5104_v0 = vpop.eup %5103  ;;  %v7115_v27 = vpop.f32.mrf.mxu1  ;;  %v2983_v29 = vmul.f32 0.0, %v7101_v17 }
 0x519   : > { %5111 = vrcp.f32 %v3666_v24 }
 0x51a   : > { %5113 = vrcp.f32 %v3657_v9  ;;  %v7126_v56 = vpop.f32.mrf.mxu1 }
 0x51b   : > { %4195 = vperm.xlu1 %4931, %v4189_v40   ;;  %3849 = vperm.xlu0 %4932, %v5092_v8   ;;  %5115 = vrcp.f32 %v3649_v50  ;;  %v7110_v31 = vpop.permute.xlu1 %2829  ;;  %v2987_v50 = vmul.f32 0.0, %v6944_v22  ;;  %v2978_v22 = vmul.f32 0.0, %v6923_v1 }
 0x51c   : > { %5117 = vrcp.f32 %v3673_v7 }
 0x51d   : > { %5119 = vrcp.f32 %v3665_v47 }
 0x51e   : > { %5121 = vrcp.f32 %v3648_v38 }
 0x51f   : > { %4205 = vperm.xlu1 %4931, %v4191_v48   ;;  %3819 = vperm.xlu0 %4932, %v5094_v46   ;;  %5123 = vrcp.f32 %v3664_v32  ;;  %v7122_v40 = vpop.permute.xlu1 %2949  ;;  %v7128_v48 = vpop.f32.mrf.mxu0 }
 0x520   : > { %v4775_v46 = vpop.f32.mrf.mxu1 }
 0x521   : > { %v5106_v44 = vpop.eup %5105 }
 0x522   : > { %v5108_v13 = vpop.eup %5107 }
 0x523   : > { %3844 = vperm.xlu0 %4932, %v5096_v60   ;;  %v4747_v60 = vpop.f32.mrf.mxu0  ;;  %v7130_v36 = vpop.permute.xlu1 %2909 }
 0x525   : > { %v5110_v59 = vpop.eup %5109 }
 0x526   : > { %v5112_v23 = vpop.eup %5111 }
 0x527   : > { %3859 = vperm.xlu0 %4932, %v5098_v11   ;;  %v5114_v12 = vpop.eup %5113  ;;  %v7132_v11 = vpop.f32.mrf.mxu1 }
 0x528   : > { %v5116_v49 = vpop.eup %5115  ;;  %v2865_v18 = vpop.permute.xlu1 %2864 }
 0x529   : > { %v5118_v30 = vpop.eup %5117  ;;  %v4778_v33 = vpop.f32.mrf.mxu1 }
 0x52a   : > { %v5120_v42 = vpop.eup %5119 }
 0x52b   : > { %3814 = vperm.xlu0 %4932, %v5100_v21   ;;  %v5122_v14 = vpop.eup %5121  ;;  %v7134_v21 = vpop.f32.mrf.mxu0 }
 0x52c   : > { %v5124_v10 = vpop.eup %5123  ;;  %v3243_v24 = vpop.f32.mrf.mxu1 }
 0x52d   : > { %v2825_v7 = vpop.permute.xlu1 %2824 }
 0x52e   : > { %v4781_v9 = vpop.f32.mrf.mxu1 }
 0x52f   : > { %3829 = vperm.xlu0 %4932, %v5102_v54   ;;  %v4750_v54 = vpop.f32.mrf.mxu0  ;;  %v3535_v47 = vadd.f32 %v4781_v9, %v2987_v50 }
 0x533   : > { %3854 = vperm.xlu0 %4932, %v5104_v0  }
 0x537   : > { %3869 = vperm.xlu0 %4932, %v5106_v44   ;;  %v3114_v44 = vpop.f32.mrf.mxu0 }
 0x53b   : > { %3824 = vperm.xlu0 %4932, %v5108_v13  }
 0x53f   : > { %3864 = vperm.xlu0 %4932, %v5110_v59   ;;  %v4753_v59 = vpop.f32.mrf.mxu0 }
 0x543   : > { %3804 = vperm.xlu0 %4932, %v5112_v23   ;;  %v2979_v23 = vmul.f32 0.0, %v6898_v43 }
 0x547   : > { %3759 = vperm.xlu0 %4932, %v5114_v12   ;;  %v3527_v12 = vadd.f32 %v4753_v59, %v2979_v23  ;;  %v2976_v59 = vmul.f32 0.0, %v7084_v19 }
 0x54b   : > { %3719 = vperm.xlu0 %4932, %v5116_v49  }
 0x54f   : > { %3839 = vperm.xlu0 %4932, %v5118_v30   ;;  %v7138_v30 = vpop.permute.xlu1 %2944 }
 0x553   : > { %3799 = vperm.xlu0 %4932, %v5120_v42   ;;  %v3253_v42 = vpop.f32.mrf.mxu1 }
 0x557   : > { %3714 = vperm.xlu0 %4932, %v5122_v14  }
 0x55b   : > { %3794 = vperm.xlu0 %4932, %v5124_v10   ;;  %v3124_v10 = vpop.f32.mrf.mxu0 }
 0x55c   : > { %v3526_v43 = vadd.f32 %v3124_v10, %v2978_v22 }
 0x55f   : > { %3931 = vperm.xlu0 %4932, %v3921_v45   ;;  %v3534_v45 = vadd.f32 %v3253_v42, %v2986_v5 }
 0x562   : > { %v7096_v35 = vpop.permute.xlu0 %3729 }
 0x563   : > { %3941 = vperm.xlu0 %4932, %v3923_v26  }
 0x566   : > { %v7103_v3 = vpop.permute.xlu0 %3769 }
 0x567   : > { %4172 = vperm.xlu0 %4932, %v4162_v41   ;;  %v3533_v41 = vadd.f32 %v4778_v33, %v2985_v51 }
 0x56a   : > { %v7108_v57 = vpop.permute.xlu0 %3724 }
 0x56b   : > { %4182 = vperm.xlu0 %4932, %v4164_v2   ;;  %v2984_v2 = vmul.f32 0.0, %v7082_v28 }
 0x56d   : > { %v3532_v23 = vadd.f32 %v3243_v24, %v2984_v2 }
 0x56e   : > { %v3740_v58 = vpop.permute.xlu0 %3739 }
 0x56f   : > { %4200 = vperm.xlu0 %4932, %v4190_v16   ;;  %v7144_v16 = vpop.permute.xlu1 %2904 }
 0x572   : > { %v7124_v8 = vpop.permute.xlu0 %3764 }
 0x573   : > { %4210 = vperm.xlu0 %4932, %v4192_v52   ;;  %v7151_v28 = vpop.permute.xlu1 %2859 }
 0x576   : > { %v3780_v63 = vpop.permute.xlu0 %3779 }
 0x577   : > { %v3885_v50 = vmul.f32 %v3780_v63, %v3533_v41 }
 0x57a   : > { %v3735_v61 = vpop.permute.xlu0 %3734 }
 0x57e   : > { %v3750_v0 = vpop.permute.xlu0 %3749 }
 0x57f   : > { %v3879_v32 = vmul.f32 %v3750_v0, %v3527_v12  ;;  %v2977_v0 = vmul.f32 0.0, %v6947_v62  ;;  %v2975_v12 = vmul.f32 0.0, %v7110_v31  ;;  %v3524_v62 = vadd.f32 %v3114_v44, %v2976_v59  ;;  %v7162_v31 = vpop.f32.mrf.mxu1 }
 0x581   : > { %v3525_v55 = vadd.f32 %v4750_v54, %v2977_v0  ;;  %v2982_v54 = vmul.f32 0.0, %v2865_v18  ;;  %v3876_v19 = vmul.f32 %v3735_v61, %v3524_v62  ;;  %v3523_v17 = vadd.f32 %v4747_v60, %v2975_v12  ;;  %v7165_v18 = vpop.f32.mrf.mxu0  ;;  %v7171_v61 = vpop.f32.mrf.mxu1 }
 0x582   : > { %v3775_v13 = vpop.permute.xlu0 %3774  ;;  %v3003_v0 = vmul.f32 0.0, %v6986_v37  ;;  %v3001_v37 = vmul.f32 0.0, %v6967_v53 }
 0x583   : > { %v3877_v33 = vmul.f32 %v3740_v58, %v3525_v55  ;;  %v7159_v58 = vpop.permute.xlu1 %2819  ;;  %v3875_v44 = vmul.f32 %v7096_v35, %v3523_v17 }
 0x586   : > { %v3790_v38 = vpop.permute.xlu0 %3789 }
 0x587   : > { %v3887_v49 = vmul.f32 %v3790_v38, %v3535_v47  ;;  %v3884_v47 = vmul.f32 %v3775_v13, %v3532_v23  ;;  %v3531_v38 = vadd.f32 %v4775_v46, %v2983_v29  ;;  %v3530_v13 = vadd.f32 %v7132_v11, %v2982_v54  ;;  %v7174_v11 = vpop.f32.mrf.mxu0  ;;  %v7176_v42 = vpop.permute.xlu1 %2939 }
 0x588   : > { %v3002_v54 = vmul.f32 0.0, %v6997_v34 }
 0x589   : > { %3960 = vmatprep.subr.mxu0 %v3887_v49  ;;  %v3883_v49 = vmul.f32 %v7103_v3, %v3531_v38  ;;  %v3882_v46 = vmul.f32 %v7124_v8, %v3530_v13  ;;  %v7178_v5 = vpop.f32.mrf.mxu0 }
 0x58a   : > { %3961 = vmatpush1.xpose.msra.mxu0 %v3879_v32  ;;  %v3745_v14 = vpop.permute.xlu0 %3744  ;;  %v2974_v32 = vmul.f32 0.0, %v2825_v7 }
 0x58b   : > { %v3878_v9 = vmul.f32 %v3745_v14, %v3526_v43  ;;  %v4831_v14 = vpop.f32.mrf.mxu1  ;;  %v7182_v10 = vpop.f32.mrf.mxu0 }
 0x58c   : > { %v3522_v3 = vadd.f32 %v7134_v21, %v2974_v32  ;;  %v7184_v22 = vpop.permute.xlu1 %2899 }
 0x58d   : > { %v7180_v8 = vpop.f32.mrf.mxu1 }
 0x58e   : > { %v3785_v26 = vpop.permute.xlu0 %3784  ;;  %v3874_v7 = vmul.f32 %v7108_v57, %v3522_v3 }
 0x58f   : > { %v3886_v52 = vmul.f32 %v3785_v26, %v3534_v45  ;;  %v4834_v51 = vpop.f32.mrf.mxu1  ;;  %v4806_v45 = vpop.f32.mrf.mxu0 }
 0x590   : > { %v2855_v41 = vpop.permute.xlu1 %2854  ;;  %v3549_v13 = vadd.f32 %v4834_v51, %v3001_v37 }
 0x591   : > { %3962 = vmatprep.subr.mxu0 %v3886_v52  ;;  %v3501_v57 = vpop.f32.mrf.mxu1  ;;  %v3372_v26 = vpop.f32.mrf.mxu0 }
 0x592   : > { %3963 = vmatpush1.xpose.msra.mxu0 %v3878_v9  ;;  %v7148_v1 = vpop.permute.xlu0 %3809 }
 0x593   : > { %3964 = vmatprep.subr.mxu0 %v3885_v50  ;;  %v4837_v2 = vpop.f32.mrf.mxu1  ;;  %v4809_v9 = vpop.f32.mrf.mxu0  ;;  %v2995_v50 = vmul.f32 0.0, %v6955_v15 }
 0x594   : > { %v3551_v55 = vadd.f32 %v4837_v2, %v3003_v0  ;;  %v7188_v23 = vpop.permute.xlu1 %2814 }
 0x595   : > { %v3543_v59 = vadd.f32 %v4809_v9, %v2995_v50  ;;  %v3511_v12 = vpop.f32.mrf.mxu1  ;;  %v3382_v38 = vpop.f32.mrf.mxu0  ;;  %v2992_v9 = vmul.f32 0.0, %v7091_v20  ;;  %v2999_v50 = vmul.f32 0.0, %v7122_v40 }
 0x596   : > { %3965 = vmatpush1.xpose.msra.mxu0 %v3877_v33  ;;  %v7154_v63 = vpop.permute.xlu0 %3849 }
 0x597   : > { %3966 = vmatprep.subr.mxu0 %v3884_v47 }
 0x598   : > { %v2935_v15 = vpop.permute.xlu1 %2934 }
 0x59a   : > { %3967 = vmatpush1.xpose.msra.mxu0 %v3876_v19  ;;  %v7157_v24 = vpop.permute.xlu0 %3819  ;;  %v2994_v19 = vmul.f32 0.0, %v6989_v4 }
 0x59b   : > { %3968 = vmatprep.subr.mxu0 %v3883_v49  ;;  %v3550_v49 = vadd.f32 %v3511_v12, %v3002_v54  ;;  %v2972_v12 = vmul.f32 0.0, %v7188_v23 }
 0x59c   : > { %v3542_v32 = vadd.f32 %v3382_v38, %v2994_v19  ;;  %v2895_v53 = vpop.permute.xlu1 %2894 }
 0x59d   : > { %v3520_v37 = vadd.f32 %v7128_v48, %v2972_v12  ;;  %v3912_v48 = vld [vmem:[#allocation15 + $0x40] sm:$0xff] }
 0x59e   : > { %3969 = vmatpush1.xpose.msra.mxu0 %v3875_v44  ;;  %v7169_v60 = vpop.permute.xlu0 %3844 }
 0x59f   : > { %3970 = vmatprep.subr.mxu0 %v3882_v46  ;;  %v2993_v46 = vmul.f32 0.0, %v6957_v39  ;;  %v2973_v39 = vmul.f32 0.0, %v7159_v58 }
 0x5a1   : > { %v3541_v34 = vadd.f32 %v4806_v45, %v2993_v46  ;;  %v2980_v45 = vmul.f32 0.0, %v2855_v41  ;;  %v3521_v58 = vadd.f32 %v7120_v6, %v2973_v39  ;;  %v3911_v46 = vld [vmem:[#allocation15 + $0x38] sm:$0xff] }
 0x5a2   : > { %3971 = vmatpush1.xpose.msra.mxu0 %v3874_v7  ;;  %v3860_v35 = vpop.permute.xlu0 %3859  ;;  %v3000_v7 = vmul.f32 0.0, %v7086_v25 }
 0x5a3   : > { %v3901_v2 = vmul.f32 %v3860_v35, %v3549_v13  ;;  %v3893_v51 = vmul.f32 %v7157_v24, %v3541_v34  ;;  %v3540_v35 = vadd.f32 %v3372_v26, %v2992_v9  ;;  %v3755_v24 = vpop.permute.xlu1 %3754  ;;  %v3528_v26 = vadd.f32 %v7126_v56, %v2980_v45  ;;  %v3906_v13 = vld [vmem:[#allocation15 + $0x10] sm:$0xff]  ;;  %v3919_v34 = vld [vmem:[#allocation15 + $0x78] sm:$0xff] }
 0x5a4   : > { %v3548_v0 = vadd.f32 %v3501_v57, %v3000_v7  ;;  %v3547_v57 = vadd.f32 %v4831_v14, %v2999_v50  ;;  %v2997_v14 = vmul.f32 0.0, %v7176_v42  ;;  %v3917_v7 = vld [vmem:[#allocation15 + $0x68] sm:$0xff] }
 0x5a6   : > { %v3815_v21 = vpop.permute.xlu0 %3814  ;;  %v3899_v40 = vmul.f32 %v7154_v63, %v3547_v57  ;;  %v3545_v42 = vadd.f32 %v7162_v31, %v2997_v14  ;;  %v7547_v14 = vld [vmem:[#allocation27_spill] sm:$0xff] }
 0x5a7   : > { %v3892_v20 = vmul.f32 %v3815_v21, %v3540_v35  ;;  %v3880_v21 = vmul.f32 %v3755_v24, %v3528_v26  ;;  %v3835_v54 = vpop.permute.xlu1 %3834 }
 0x5aa   : > { %v3830_v43 = vpop.permute.xlu0 %3829 }
 0x5ab   : > { %v3895_v47 = vmul.f32 %v3830_v43, %v3543_v59  ;;  %v2981_v43 = vmul.f32 0.0, %v7151_v28  ;;  %v2991_v28 = vmul.f32 0.0, %v7130_v36  ;;  %v2990_v36 = vmul.f32 0.0, %v7144_v16  ;;  %v3927_v9 = vpop.permute.xlu1 %3926 }
 0x5ad   : > { %v3529_v25 = vadd.f32 %v7115_v27, %v2981_v43  ;;  %v3539_v27 = vadd.f32 %v7178_v5, %v2991_v28  ;;  %v3538_v16 = vadd.f32 %v7182_v10, %v2990_v36  ;;  %v2996_v5 = vmul.f32 0.0, %v2935_v15  ;;  %v3904_v15 = vld [vmem:[#allocation15] sm:$0xff]  ;;  %v3915_v43 = vld [vmem:[#allocation15 + $0x58] sm:$0xff] }
 0x5ae   : > { %v3855_v52 = vpop.permute.xlu0 %3854  ;;  %v2988_v10 = vmul.f32 0.0, %v2895_v53 }
 0x5af   : > { %v3891_v63 = vmul.f32 %v7148_v1, %v3539_v27  ;;  %v3937_v57 = vpop.permute.xlu1 %3936 }
 0x5b0   : > { %v3536_v23 = vadd.f32 %v7174_v11, %v2988_v10  ;;  %v3916_v11 = vld [vmem:[#allocation15 + $0x60] sm:$0xff] }
 0x5b2   : > { %v3870_v29 = vpop.permute.xlu0 %3869 }
 0x5b3   : > { %v3903_v33 = vmul.f32 %v3870_v29, %v3551_v55  ;;  %v3900_v55 = vmul.f32 %v3855_v52, %v3548_v0  ;;  %v2998_v29 = vmul.f32 0.0, %v7138_v30 }
 0x5b5   : > { %4045 = vmatprep.subr.mxu1 %v3903_v33  ;;  %v3546_v30 = vadd.f32 %v7180_v8, %v2998_v29 }
 0x5b6   : > { %4046 = vmatpush1.xpose.msra.mxu1 %v3895_v47  ;;  %v3825_v62 = vpop.permute.xlu0 %3824  ;;  %v2989_v47 = vmul.f32 0.0, %v7184_v22 }
 0x5b7   : > { %v3894_v3 = vmul.f32 %v3825_v62, %v3542_v32  ;;  %v3898_v6 = vmul.f32 %v7169_v60, %v3546_v30  ;;  %v3544_v60 = vadd.f32 %v7171_v61, %v2996_v5  ;;  %v3909_v32 = vld [vmem:[#allocation15 + $0x28] sm:$0xff]  ;;  %v3908_v61 = vld [vmem:[#allocation15 + $0x20] sm:$0xff] }
 0x5b8   : > { %v3537_v1 = vadd.f32 %v7165_v18, %v2989_v47 }
 0x5b9   : > { %v3896_v19 = vmul.f32 %v3835_v54, %v3544_v60  ;;  %v7549_v54 = vld [vmem:[#allocation30_spill] sm:$0xff] }
 0x5ba   : > { %v3865_v17 = vpop.permute.xlu0 %3864 }
 0x5bb   : > { %v3902_v44 = vmul.f32 %v3865_v17, %v3550_v49 }
 0x5bd   : > { %4047 = vmatprep.subr.mxu1 %v3902_v44  ;;  %v3913_v44 = vld [vmem:[#allocation15 + $0x48] sm:$0xff] }
 0x5be   : > { %4048 = vmatpush1.xpose.msra.mxu1 %v3894_v3  ;;  %v3805_v4 = vpop.permute.xlu0 %3804  ;;  %v3910_v3 = vld [vmem:[#allocation15 + $0x30] sm:$0xff] }
 0x5bf   : > { %4049 = vmatprep.subr.mxu1 %v3901_v2  ;;  %v3890_v8 = vmul.f32 %v3805_v4, %v3538_v16  ;;  %v3914_v2 = vld [vmem:[#allocation15 + $0x50] sm:$0xff] }
 0x5c0   : > { %v3918_v4 = vld [vmem:[#allocation15 + $0x70] sm:$0xff] }
 0x5c1   : > { %v7548_v16 = vld [vmem:[#allocation29_spill] sm:$0xff] }
 0x5c2   : > { %4050 = vmatpush1.xpose.msra.mxu1 %v3893_v51  ;;  %v3760_v59 = vpop.permute.xlu0 %3759 }
 0x5c3   : > { %v3881_v33 = vmul.f32 %v3760_v59, %v3529_v25  ;;  %4051 = vmatprep.subr.mxu1 %v3900_v55 }
 0x5c5   : > { %3972 = vmatprep.subr.mxu0 %v3881_v33 }
 0x5c6   : > { %4052 = vmatpush1.xpose.msra.mxu1 %v3892_v20  ;;  %v3720_v41 = vpop.permute.xlu0 %3719 }
 0x5c7   : > { %v3873_v52 = vmul.f32 %v3720_v41, %v3521_v58  ;;  %4053 = vmatprep.subr.mxu1 %v3899_v40  ;;  %v7546_v58 = vld [vmem:[#allocation28_spill] sm:$0xff] }
 0x5c9   : > { %3973 = vmatpush1.xpose.msra.mxu0 %v3873_v52 }
 0x5ca   : > { %3974 = vmatprep.subr.mxu0 %v3880_v21  ;;  %4054 = vmatpush1.xpose.msra.mxu1 %v3891_v63  ;;  %v3840_v56 = vpop.permute.xlu0 %3839 }
 0x5cb   : > { %4055 = vmatprep.subr.mxu1 %v3898_v6  ;;  %v3897_v62 = vmul.f32 %v3840_v56, %v3545_v42 }
 0x5ce   : > { %4056 = vmatpush1.xpose.msra.mxu1 %v3890_v8  ;;  %v3800_v22 = vpop.permute.xlu0 %3799 }
 0x5cf   : > { %v3889_v38 = vmul.f32 %v3800_v22, %v3537_v1  ;;  %4057 = vmatprep.subr.mxu1 %v3897_v62 }
 0x5d2   : > { %4058 = vmatpush1.xpose.msra.mxu1 %v3889_v38  ;;  %v3715_v31 = vpop.permute.xlu0 %3714 }
 0x5d3   : > { %v3872_v49 = vmul.f32 %v3715_v31, %v3520_v37  ;;  %4059 = vmatprep.subr.mxu1 %v3896_v19 }
 0x5d5   : > { %3975 = vmatpush1.xpose.msra.mxu0 %v3872_v49 }
 0x5d6   : > { %v3795_v18 = vpop.permute.xlu0 %3794 }
 0x5d7   : > { %v3888_v17 = vmul.f32 %v3795_v18, %v3536_v23 }
 0x5d8   : > { %4009 = vmatmul.mubr.f32.vlgmr.msra.gmra.mxu0 %v3904_v15 }
 0x5d9   : > { %4060 = vmatpush1.xpose.msra.mxu1 %v3888_v17  ;;  %4013 = vmatprep.mubr.f32.mxu0 %v3909_v32 }
 0x5da   : > { %v3932_v39 = vpop.permute.xlu0 %3931 }
 0x5dc   : > { %4014 = vmatmul.mubr.f32.gmra.mxu0 %v3908_v61  ;;  %4094 = vmatmul.mubr.f32.vlgmr.msra.gmra.mxu1 %v3906_v13 }
 0x5dd   : > { %4018 = vmatprep.mubr.f32.mxu0 %v3913_v44  ;;  %4098 = vmatprep.mubr.f32.mxu1 %v3911_v46 }
 0x5de   : > { %v3942_v41 = vpop.permute.xlu0 %3941 }
 0x5e0   : > { %4019 = vmatmul.mubr.f32.gmra.mxu0 %v3912_v48  ;;  %4099 = vmatmul.mubr.f32.gmra.mxu1 %v3910_v3 }
 0x5e1   : > { %4023 = vmatprep.mubr.f32.mxu0 %v3917_v7  ;;  %4103 = vmatprep.mubr.f32.mxu1 %v3915_v43 }
 0x5e4   : > { %4024 = vmatmul.mubr.f32.gmra.mxu0 %v3916_v11  ;;  %4104 = vmatmul.mubr.f32.gmra.mxu1 %v3914_v2 }
 0x5e5   : > { %4108 = vmatprep.mubr.f32.mxu1 %v3919_v34 }
 0x5e8   : > { %4109 = vmatmul.mubr.f32.gmra.mxu1 %v3918_v4 }
 0x698   : > { %v4010_v0 = vpop.f32.mrf.mxu0 }
 0x699   : > { %v4011_v28 = vadd.f32 %v4010_v0, %v3927_v9 }
 0x69a   : > { %v4012_v53 = vpop.f32.mrf.mxu0 }
 0x69c   : > { %v4015_v51 = vpop.f32.mrf.mxu0  ;;  %v4095_v50 = vpop.f32.mrf.mxu1 }
 0x69d   : > { %v4016_v35 = vadd.f32 %v4015_v51, %v3932_v39  ;;  %v4096_v29 = vadd.f32 %v4095_v50, %v4011_v28 }
 0x69e   : > { %v4017_v55 = vpop.f32.mrf.mxu0  ;;  %v4097_v25 = vpop.f32.mrf.mxu1 }
 0x69f   : > { %v4114_v30 = vadd.f32 %v4096_v29, %v7547_v14 }
 0x6a0   : > { %v4020_v45 = vpop.f32.mrf.mxu0  ;;  %v4100_v59 = vpop.f32.mrf.mxu1 }
 0x6a1   : > { %v4101_v33 = vadd.f32 %v4100_v59, %v4016_v35  ;;  %v4021_v40 = vadd.f32 %v4020_v45, %v3937_v57  ;;  %v4118_v42 = vsel %vm2075_vm2, %v4114_v30, 0.0  ;;  %v4168_v35 = vpop.permute.xlu1 %4167  ;;  %v4173_v45 = vpop.permute.xlu0 %4172 }
 0x6a2   : > { %v4022_v20 = vpop.f32.mrf.mxu0  ;;  %v4102_v24 = vpop.f32.mrf.mxu1 }
 0x6a3   : > { %v4115_v27 = vadd.f32 %v4101_v33, %v7546_v58 }
 0x6a4   : > { %v4025_v36 = vpop.f32.mrf.mxu0  ;;  %v4105_v26 = vpop.f32.mrf.mxu1 }
 0x6a5   : > { %v4106_v52 = vadd.f32 %v4105_v26, %v4021_v40  ;;  %v4119_v47 = vsel %vm2075_vm2, %v4115_v27, 0.0  ;;  %v4026_v6 = vadd.f32 %v4025_v36, %v3942_v41  ;;  %v4178_v59 = vpop.permute.xlu1 %4177  ;;  %v4183_v57 = vpop.permute.xlu0 %4182 }
 0x6a6   : > { %v4107_v21 = vpop.f32.mrf.mxu1  ;;  %v4027_v63 = vpop.f32.mrf.mxu0  ;;  %v4120_v62 = vadd.f32 %v4119_v47, %v4118_v42 }
 0x6a7   : > { %v4116_v56 = vadd.f32 %v4106_v52, %v7548_v16 }
 0x6a8   : > { %v4110_v5 = vpop.f32.mrf.mxu1 }
 0x6a9   : > { %v4121_v8 = vsel %vm2075_vm2, %v4116_v56, 0.0  ;;  %v4111_v12 = vadd.f32 %v4110_v5, %v4026_v6  ;;  %v4196_v29 = vpop.permute.xlu1 %4195  ;;  %v4201_v33 = vpop.permute.xlu0 %4200 }
 0x6aa   : > { %v4112_v1 = vpop.f32.mrf.mxu1  ;;  %v4122_v60 = vadd.f32 %v4121_v8, %v4120_v62 }
 0x6ab   : > { %v4117_v22 = vadd.f32 %v4111_v12, %v7549_v54 }
 0x6ad   : > { %v4123_v38 = vsel %vm2075_vm2, %v4117_v22, 0.0  ;;  %v4211_v52 = vpop.permute.xlu0 %4210 }
 0x6ae   : > { %v4124_v10 = vadd.f32 %v4123_v38, %v4122_v60 }
 0x6b0   : > { %v4125_v19 = vrot.slane %v4124_v10, 4 }
 0x6b2   : > { %v4126_v37 = vadd.f32 %v4125_v19, %v4124_v10 }
 0x6b4   : > { %v4127_v31 = vrot.slane %v4126_v37, 2 }
 0x6b6   : > { %v4128_v49 = vadd.f32 %v4127_v31, %v4126_v37 }
 0x6b8   : > { %v4129_v23 = vrot.slane %v4128_v49, 1 }
 0x6ba   : > { %v4130_v15 = vadd.f32 %v4129_v23, %v4128_v49 }
 0x6bc   : > { %v4132_v18 = vmul.f32 0.03125, %v4130_v15 }
 0x6be   : > { %v4133_v32 = vsub.f32 %v4114_v30, %v4132_v18  ;;  %v4134_v17 = vsub.f32 %v4115_v27, %v4132_v18  ;;  %v4135_v61 = vsub.f32 %v4116_v56, %v4132_v18  ;;  %v4136_v13 = vsub.f32 %v4117_v22, %v4132_v18  ;;  %v4206_v30 = vpop.permute.xlu1 %4205 }
 0x6c0   : > { %v4137_v44 = vmul.f32 %v4133_v32, %v4133_v32  ;;  %v4138_v46 = vmul.f32 %v4134_v17, %v4134_v17  ;;  %v4139_v48 = vmul.f32 %v4135_v61, %v4135_v61  ;;  %v4140_v3 = vmul.f32 %v4136_v13, %v4136_v13 }
 0x6c2   : > { %v4141_v7 = vsel %vm2075_vm2, %v4137_v44, 0.0  ;;  %v4142_v43 = vsel %vm2075_vm2, %v4138_v46, 0.0  ;;  %v4144_v2 = vsel %vm2075_vm2, %v4139_v48, 0.0  ;;  %v4146_v4 = vsel %vm2075_vm2, %v4140_v3, 0.0 }
 0x6c3   : > { %v4143_v11 = vadd.f32 %v4142_v43, %v4141_v7 }
 0x6c5   : > { %v4145_v34 = vadd.f32 %v4144_v2, %v4143_v11 }
 0x6c7   : > { %v4147_v0 = vadd.f32 %v4146_v4, %v4145_v34 }
 0x6c9   : > { %v4148_v53 = vrot.slane %v4147_v0, 4 }
 0x6cb   : > { %v4149_v9 = vadd.f32 %v4148_v53, %v4147_v0 }
 0x6cd   : > { %v4150_v51 = vrot.slane %v4149_v9, 2 }
 0x6cf   : > { %v4151_v50 = vadd.f32 %v4150_v51, %v4149_v9 }
 0x6d1   : > { %v4152_v39 = vrot.slane %v4151_v50, 1 }
 0x6d3   : > { %v4153_v55 = vadd.f32 %v4152_v39, %v4151_v50 }
 0x6d5   : > { %v4154_v25 = vmul.f32 0.03125, %v4153_v55 }
 0x6d7   : > { %v4155_v28 = vadd.f32 1e-05, %v4154_v25 }
 0x6d9   : > { %5125 = vrsqrt.f32 %v4155_v28 }
 0x6e6   : > { %v5126_v20 = vpop.eup %5125 }
 0x6e7   : > { %v4157_v24 = vmul.f32 %v5126_v20, %v4133_v32  ;;  %v4158_v40 = vmul.f32 %v5126_v20, %v4134_v17  ;;  %v4159_v58 = vmul.f32 %v5126_v20, %v4135_v61  ;;  %v4160_v27 = vmul.f32 %v5126_v20, %v4136_v13 }
 0x6e9   : > { %v4185_v36 = vmul.f32 %v4168_v35, %v4157_v24  ;;  %v4186_v26 = vmul.f32 %v4173_v45, %v4158_v40  ;;  %v4187_v41 = vmul.f32 %v4178_v59, %v4159_v58  ;;  %v4188_v14 = vmul.f32 %v4183_v57, %v4160_v27 }
 0x6eb   : > { %v4215_v21 = vadd.f32 %v4206_v30, %v4187_v41  ;;  %v4216_v63 = vadd.f32 %v4211_v52, %v4188_v14  ;;  %v4213_v47 = vadd.f32 %v4196_v29, %v4185_v36  ;;  %v4214_v6 = vadd.f32 %v4201_v33, %v4186_v26 }
 0x6ed   : > { %4220 = vst.msk [vmem:[%s475_s28 + $0x18] sm:$0xff] %vm2075_vm2, %v4216_v63  ;;  %4219 = vst.msk [vmem:[%s475_s28 + $0x10] sm:$0xff] %vm2075_vm2, %v4215_v21 }
 0x6ee   : > { %4217 = vst.msk [vmem:[%s475_s28] sm:$0xff] %vm2075_vm2, %v4213_v47  ;;  %4218 = vst.msk [vmem:[%s475_s28 + $0x8] sm:$0xff] %vm2075_vm2, %v4214_v6 }
 0x6ef   : > { %5263 = shalt.err (!%p5260_p6)
}
 0x6f0   : > { %s5264_s21 = scalar_lea.hbm %s7237_s11, 512  ;;  %s5268_s19 = scalar_lea.hbm %s7296_s10, 1024 }
 0x6f1   : > { %p5265_p11 = scmp.ne.s32.totalorder %s7237_s11, %s5264_s21  ;;  %p5269_p0 = scmp.lt.s32.totalorder %s7237_s11, %s7296_s10 }
 0x6f2   : > { %p5270_p10 = scmp.lt.s32.totalorder %s5268_s19, %s5264_s21 }
 0x6f3   : > { %p5266_p8 = pnand %p5265_p11, %p5498_p5 }
 0x6f4   : > { %p5271_p7 = por %p5270_p10, %p5269_p0 }
 0x6f5   : > { %p5267_p12 = pneg %p5266_p8 }
 0x6f7   : > { %p5272_p1 = pnand %p5271_p7, %p5267_p12 }
 0x6f9   : > { %5275 = shalt.err (!%p5272_p1)
}
 0x6fa   : > { %s5347_s30 = smov 128   ;;  %s5348_s18 = smov 8  }
 0x6fb   : > { %4854 = dma.vmem_to_hbm [thread:$0]  (%p5498_p5), %s7239_s24, 512, %s7237_s11, %s4222_s17, %s5347_s30, %s5347_s30, %s5348_s18  }
 0x6fc PF: > { %s4250_s28 = sand.u32 1, %s5318_s13   ;;  %p7550_p9 = scmp.ne.s32.totalorder %s7369_s20, 0 }
 0x6fd   : > { %p7551_p13 = scmp.ge.s32.totalorder %s5330_s16, 2  ;;  %s4251_s2 = scalar_lea.sflag [#allocation9], %s4250_s28 }
 0x6ff   : > { %p4874_p4 = pnand %p7551_p13, %p7550_p9 }
 0x701   : > { %p4875_p3 = pneg %p4874_p4 }
 0x703   : > { %5313 = dma.done.wait (%p4875_p3), %s4251_s2, 512  }
 0x704   : > { %5315 = vsyncadd (%p4875_p3), %s4251_s2, 4294966784  ;;  %s7552_s16 = sld [smem:[#allocation25_spill]]  ;;  %s7555_s13 = smov %s5322_s14 }
 0x705   : > { %s7553_s29 = sld [smem:[#allocation24_spill]] }
 0x706   : > { %s7554_s15 = sld [smem:[#allocation26_spill]] }
 0x70a   : > { %p28_p2 = scmp.ge.s32.totalorder %s7552_s16, 4  }
 0x70b   : > { %s7556_s14 = smov %s7553_s29 }
 0x70c   :  { %30 = sbr.rel (!%p28_p2) target bundleno = 14 (0xe), region = 134 }
 0x711   :  { %4256 = vsyncpa [#allocation8], 1 }
 0x712   :  { %4258 = vsyncpa [#allocation8 + $0x1], 1 }
 0x713   :  { %4259 = vsyncpa [#allocation13], 1 }
 0x714   :  { %4261 = vsyncpa [#allocation13 + $0x1], 1 }
 0x715   :  { %4262 = vsyncpa [#allocation16], 1 }
 0x716   :  { %4263 = vsyncpa [#allocation9], 1 }
 0x717   :  { %4265 = vsyncpa [#allocation9 + $0x1], 1 }
 0x718   :  { %4266 = vsyncpa [#allocation10], 1 }
 0x719   :  { %4268 = vsyncpa [#allocation10 + $0x1], 1 }

</bundles_post_ra>
